<compile_context>
chip_gen: v7x
topology: tpu7x:2x2x1
jax: 0.10.0
libtpu: 0.0.40
codegen_flags: <defaults>
</compile_context>

<pallas_src>
import numpy as np
import jax
import jax.numpy as jnp
from jax.experimental import pallas as pl
from jax.experimental.pallas import tpu as pltpu

C1 = 32   # conv1 output channels padded 20 -> 32
C2 = 64   # conv2 output channels padded 50 -> 64


# ---------------------------------------------------------------------------
# Batch tiling: largest multiple-of-8 divisor of B that is <= target and
# leaves >= 2 grid steps; otherwise fall back to the whole batch (block = full
# array, which is always legal for the 2-D output BlockSpec).
# ---------------------------------------------------------------------------
def _batch_tile(batch, target=64):
    best = None
    for per in range(8, min(target, batch // 2) + 1, 8):
        if batch % per == 0:
            best = per
    return best if best is not None else batch


# ---------------------------------------------------------------------------
# The fused kernel: conv1 -> ReLU -> pool -> conv2 -> ReLU -> pool -> fc1 ->
# ReLU -> fc2, all on one VMEM-resident batch tile.
# ---------------------------------------------------------------------------
def digitconv_kernel(x_ref, w1_ref, b1_ref, w2_ref, b2_ref,
                     fw1_ref, fb1_ref, fw2_ref, fb2_ref, o_ref):
    f32 = jnp.float32
    tb = x_ref.shape[0]
    x = x_ref[...]                                            # (TB, 28, 28) bf16

    # ---- conv1 (1->20, 5x5) as one banded GEMM: rows=(b,oh), lanes=(ow,c32) --
    xcat = jnp.concatenate([x[:, kh:kh + 24, :] for kh in range(5)], axis=-1)
    xcat = xcat.reshape(tb * 24, 5 * 28)                      # (TB*24, 140)
    z1 = jnp.dot(xcat, w1_ref[...], preferred_element_type=f32)
    z1 = jnp.maximum(z1 + b1_ref[...], 0.0)                   # (TB*24, 24*C1)

    # ---- max-pool 2x2/2 #1 --------------------------------------------------
    # width: even/odd 32-lane channel groups; height: fold row pairs into lanes
    ev = jnp.concatenate([z1[:, (2 * p) * C1:(2 * p + 1) * C1]
                          for p in range(12)], axis=-1)
    od = jnp.concatenate([z1[:, (2 * p + 1) * C1:(2 * p + 2) * C1]
                          for p in range(12)], axis=-1)
    zw = jnp.maximum(ev, od)                                  # (TB*24, 12*C1)
    zh = zw.reshape(tb * 12, 2 * 12 * C1)                     # row pairs -> lanes
    p1 = jnp.maximum(zh[:, :12 * C1], zh[:, 12 * C1:])        # (TB*12, 12*C1)
    p1 = p1.astype(x.dtype).reshape(tb, 12, 12 * C1)

    # ---- conv2 (20->50, 5x5) as one banded GEMM (K = 5*12*C1 = 1920) ---------
    xc2 = jnp.concatenate(
        [p1[:, kh:kh + 8, :].reshape(tb * 8, 12 * C1) for kh in range(5)],
        axis=-1)                                              # (TB*8, 1920)
    z2 = jnp.dot(xc2, w2_ref[...], preferred_element_type=f32)
    z2 = jnp.maximum(z2 + b2_ref[...], 0.0)                   # (TB*8, 8*C2)

    # ---- max-pool 2x2/2 #2 --------------------------------------------------
    ev2 = jnp.concatenate([z2[:, (2 * p) * C2:(2 * p + 1) * C2]
                           for p in range(4)], axis=-1)
    od2 = jnp.concatenate([z2[:, (2 * p + 1) * C2:(2 * p + 2) * C2]
                           for p in range(4)], axis=-1)
    zw2 = jnp.maximum(ev2, od2)                               # (TB*8, 4*C2)
    zh2 = zw2.reshape(tb * 4, 2 * 4 * C2)
    p2 = jnp.maximum(zh2[:, :4 * C2], zh2[:, 4 * C2:])        # (TB*4, 4*C2)

    # ---- flatten (ph, pw, c64) -> fc1 -> ReLU -> fc2 (lane-dense, padded) ----
    feat = p2.reshape(tb, 16 * C2).astype(x.dtype)            # (TB, 1024) bf16
    h = jnp.dot(feat, fw1_ref[...], preferred_element_type=f32)
    h = jnp.maximum(h + fb1_ref[...], 0.0).astype(x.dtype)    # (TB, 512) bf16
    o = jnp.dot(h, fw2_ref[...], preferred_element_type=f32)
    o_ref[...] = (o + fb2_ref[...]).astype(o_ref.dtype)       # (TB, 128) f32


# ---------------------------------------------------------------------------
# Wrapper: batch-tiled grid, resident weights (constant index_map), explicit
# VMEM limit; returns the first 9 (real) logits like the PyTorch module.
# ---------------------------------------------------------------------------
def digit_conv_forward(x_nchw, params, *, batch_tile=None):
    if x_nchw.shape[-1] == 32:                      # static shape check
        x_nchw = x_nchw[:, :, 2:-2, 2:-2]
    B = x_nchw.shape[0]
    x = x_nchw[:, 0, :, :].astype(jnp.bfloat16)     # (B, 28, 28), Cin == 1
    tb = _batch_tile(B) if batch_tile is None else batch_tile

    def _const(shape):
        return pl.BlockSpec(shape, lambda i: tuple(0 for _ in shape))

    logits = pl.pallas_call(
        digitconv_kernel,
        out_shape=jax.ShapeDtypeStruct((B, 128), jnp.float32),
        grid=(B // tb,),
        in_specs=[
            pl.BlockSpec((tb, 28, 28), lambda i: (i, 0, 0)),
            _const((5 * 28, 24 * C1)),              # w1 banded   (140, 768)
            _const((1, 24 * C1)),                   # b1          (1, 768)
            _const((5 * 12 * C1, 8 * C2)),          # w2 banded   (1920, 512)
            _const((1, 8 * C2)),                    # b2          (1, 512)
            _const((16 * C2, 512)),                 # fc1         (1024, 512)
            _const((1, 512)),                       # fc1 bias
            _const((512, 128)),                     # fc2         (512, 128)
            _const((1, 128)),                       # fc2 bias
        ],
        out_specs=pl.BlockSpec((tb, 128), lambda i: (i, 0)),
        compiler_params=pltpu.CompilerParams(
            dimension_semantics=("parallel",),      # 2 TCs on v7x
            vmem_limit_bytes=48 * 1024 * 1024,      # safe on v5e/v6e/v7x
        ),
    )(x, params["w1"], params["b1"], params["w2"], params["b2"],
      params["fw1"], params["fb1"], params["fw2"], params["fb2"])
    return logits[:, :9]                            # x[:, :9].contiguous()


# ---------------------------------------------------------------------------
# Parameters: deterministic synthetic init with the PyTorch shapes, converted
# once (zero runtime cost) into the banded / padded / permuted kernel layouts.
# ---------------------------------------------------------------------------
def init_params(dtype=jnp.bfloat16):
    ks = jax.random.split(jax.random.PRNGKey(1234), 8)
    raw = dict(
        conv1_w=0.10 * jax.random.normal(ks[0], (20, 1, 5, 5), jnp.float32),
        conv1_b=0.10 * jax.random.normal(ks[1], (20,), jnp.float32),
        conv2_w=0.05 * jax.random.normal(ks[2], (50, 20, 5, 5), jnp.float32),
        conv2_b=0.05 * jax.random.normal(ks[3], (50,), jnp.float32),
        fc1_w=0.02 * jax.random.normal(ks[4], (500, 800), jnp.float32),
        fc1_b=0.02 * jax.random.normal(ks[5], (500,), jnp.float32),
        fc2_w=0.05 * jax.random.normal(ks[6], (10, 500), jnp.float32),
        fc2_b=0.05 * jax.random.normal(ks[7], (10,), jnp.float32),
    )
    cw1, cb1 = np.asarray(raw["conv1_w"]), np.asarray(raw["conv1_b"])
    cw2, cb2 = np.asarray(raw["conv2_w"]), np.asarray(raw["conv2_b"])
    f1w, f1b = np.asarray(raw["fc1_w"]), np.asarray(raw["fc1_b"])
    f2w, f2b = np.asarray(raw["fc2_w"]), np.asarray(raw["fc2_b"])

    # conv1 banded weight: LHS lane (kh*28 + w) = x[oh+kh, w]; out lane = ow*C1 + c
    w1b = np.zeros((5 * 28, 24 * C1), np.float32)
    for kh in range(5):
        for kw in range(5):
            for ow in range(24):
                w1b[kh * 28 + ow + kw, ow * C1:ow * C1 + 20] = cw1[:, 0, kh, kw]
    b1 = np.zeros((24, C1), np.float32)
    b1[:, :20] = cb1[None, :]
    b1 = b1.reshape(1, 24 * C1)

    # conv2 banded weight: LHS lane (kh*12*C1 + ow1*C1 + ci); out lane = ow2*C2 + co
    w2b = np.zeros((5 * 12 * C1, 8 * C2), np.float32)
    for kh in range(5):
        for kw in range(5):
            for ow2 in range(8):
                ow1 = ow2 + kw
                w2b[kh * 12 * C1 + ow1 * C1:kh * 12 * C1 + ow1 * C1 + 20,
                    ow2 * C2:ow2 * C2 + 50] = cw2[:, :, kh, kw].T
    b2 = np.zeros((8, C2), np.float32)
    b2[:, :50] = cb2[None, :]
    b2 = b2.reshape(1, 8 * C2)

    # fc1: rows in the kernel's (ph, pw, c64) order; torch col = c*16 + h*4 + w
    fw1 = np.zeros((16 * C2, 512), np.float32)
    for ph in range(4):
        for pw in range(4):
            cols = np.arange(50) * 16 + ph * 4 + pw
            r0 = ph * 4 * C2 + pw * C2
            fw1[r0:r0 + 50, :500] = f1w[:, cols].T
    fb1 = np.zeros((1, 512), np.float32)
    fb1[0, :500] = f1b

    fw2 = np.zeros((512, 128), np.float32)
    fw2[:500, :10] = f2w.T
    fb2 = np.zeros((1, 128), np.float32)
    fb2[0, :10] = f2b

    params = dict(
        w1=jnp.asarray(w1b, dtype), b1=jnp.asarray(b1),
        w2=jnp.asarray(w2b, dtype), b2=jnp.asarray(b2),
        fw1=jnp.asarray(fw1, dtype), fb1=jnp.asarray(fb1),
        fw2=jnp.asarray(fw2, dtype), fb2=jnp.asarray(fb2),
    )
    return params, raw


# ---------------------------------------------------------------------------
# Pure-JAX f32 reference (matches DigitConv.forward) for a correctness check.
# ---------------------------------------------------------------------------
def _pool2x2_nchw(y):
    b, c, h, w = y.shape
    return y.reshape(b, c, h // 2, 2, w // 2, 2).max(axis=(3, 5))


def reference_forward(x_nchw, raw):
    x = x_nchw
    if x.shape[-1] == 32:
        x = x[:, :, 2:-2, 2:-2]
    dn = ("NCHW", "OIHW", "NCHW")
    y = jax.lax.conv_general_dilated(x, raw["conv1_w"], (1, 1), "VALID",
                                     dimension_numbers=dn)
    y = jnp.maximum(y + raw["conv1_b"][None, :, None, None], 0.0)
    y = _pool2x2_nchw(y)
    y = jax.lax.conv_general_dilated(y, raw["conv2_w"], (1, 1), "VALID",
                                     dimension_numbers=dn)
    y = jnp.maximum(y + raw["conv2_b"][None, :, None, None], 0.0)
    y = _pool2x2_nchw(y)
    y = y.reshape(y.shape[0], -1)                   # NCHW flatten: c*16 + h*4 + w
    y = jnp.maximum(y @ raw["fc1_w"].T + raw["fc1_b"], 0.0)
    y = y @ raw["fc2_w"].T + raw["fc2_b"]
    return y[:, :9]


if __name__ == "__main__":
    params, raw = init_params()
    x = jax.random.normal(jax.random.PRNGKey(0), (2, 1, 28, 28), jnp.float32)
    fwd = jax.jit(lambda inp: digit_conv_forward(inp, params))
    out = jax.block_until_ready(fwd(x))
    assert out.shape == (2, 9) and out.dtype == jnp.float32
    assert bool(jnp.all(jnp.isfinite(out)))
    ref = reference_forward(x, raw)
    err = float(jnp.max(jnp.abs(out - ref)))
    assert err < 5e-2, f"kernel/reference mismatch: max abs err {err}"
    print("KERNEL_OK")
</pallas_src>

<mosaic_0001>
module attributes {stable_mosaic.version = 11 : i64} {
  func.func @digitconv_kernel(%arg0: i32, %arg1: memref<2x28x28xbf16, #tpu.memory_space<vmem>>, %arg2: memref<140x768xbf16, #tpu.memory_space<vmem>>, %arg3: memref<1x768xf32, #tpu.memory_space<vmem>>, %arg4: memref<1920x512xbf16, #tpu.memory_space<vmem>>, %arg5: memref<1x512xf32, #tpu.memory_space<vmem>>, %arg6: memref<1024x512xbf16, #tpu.memory_space<vmem>>, %arg7: memref<1x512xf32, #tpu.memory_space<vmem>>, %arg8: memref<512x128xbf16, #tpu.memory_space<vmem>>, %arg9: memref<1x128xf32, #tpu.memory_space<vmem>>, %arg10: memref<2x128xf32, #tpu.memory_space<vmem>>) attributes {dimension_semantics = [#tpu.dimension_semantics<parallel>], iteration_bounds = array<i64: 1>, scalar_prefetch = 0 : i64, scratch_operands = 0 : i64, tpu.core_type = #tpu.core_type<tc>, window_params = [{transform_indices = @transform_0, window_bounds = array<i64: 2, 28, 28>}, {pipeline_mode = #tpu.pipeline_mode<synchronous>, transform_indices = @transform_1, window_bounds = array<i64: 140, 768>}, {pipeline_mode = #tpu.pipeline_mode<synchronous>, transform_indices = @transform_2, window_bounds = array<i64: 1, 768>}, {pipeline_mode = #tpu.pipeline_mode<synchronous>, transform_indices = @transform_3, window_bounds = array<i64: 1920, 512>}, {pipeline_mode = #tpu.pipeline_mode<synchronous>, transform_indices = @transform_4, window_bounds = array<i64: 1, 512>}, {pipeline_mode = #tpu.pipeline_mode<synchronous>, transform_indices = @transform_5, window_bounds = array<i64: 1024, 512>}, {pipeline_mode = #tpu.pipeline_mode<synchronous>, transform_indices = @transform_6, window_bounds = array<i64: 1, 512>}, {pipeline_mode = #tpu.pipeline_mode<synchronous>, transform_indices = @transform_7, window_bounds = array<i64: 512, 128>}, {pipeline_mode = #tpu.pipeline_mode<synchronous>, transform_indices = @transform_8, window_bounds = array<i64: 1, 128>}, {transform_indices = @transform_9, window_bounds = array<i64: 2, 128>}]} {
    %c0 = arith.constant 0 : index
    %c0_0 = arith.constant 0 : index
    %c0_1 = arith.constant 0 : index
    %0 = vector.load %arg1[%c0, %c0_0, %c0_1] : memref<2x28x28xbf16, #tpu.memory_space<vmem>>, vector<2x28x28xbf16>
    %1 = vector.extract_strided_slice %0 {offsets = [0, 0, 0], sizes = [2, 24, 28], strides = [1, 1, 1]} : vector<2x28x28xbf16> to vector<2x24x28xbf16>
    %2 = vector.extract_strided_slice %0 {offsets = [0, 1, 0], sizes = [2, 24, 28], strides = [1, 1, 1]} : vector<2x28x28xbf16> to vector<2x24x28xbf16>
    %3 = vector.extract_strided_slice %0 {offsets = [0, 2, 0], sizes = [2, 24, 28], strides = [1, 1, 1]} : vector<2x28x28xbf16> to vector<2x24x28xbf16>
    %4 = vector.extract_strided_slice %0 {offsets = [0, 3, 0], sizes = [2, 24, 28], strides = [1, 1, 1]} : vector<2x28x28xbf16> to vector<2x24x28xbf16>
    %5 = vector.extract_strided_slice %0 {offsets = [0, 4, 0], sizes = [2, 24, 28], strides = [1, 1, 1]} : vector<2x28x28xbf16> to vector<2x24x28xbf16>
    %6 = tpu.concatenate %1, %2, %3, %4, %5 in 2 : vector<2x24x28xbf16>, vector<2x24x28xbf16>, vector<2x24x28xbf16>, vector<2x24x28xbf16>, vector<2x24x28xbf16> -> vector<2x24x140xbf16>
    %7 = vector.shape_cast %6 : vector<2x24x140xbf16> to vector<48x140xbf16>
    %c0_2 = arith.constant 0 : index
    %c0_3 = arith.constant 0 : index
    %8 = vector.load %arg2[%c0_2, %c0_3] : memref<140x768xbf16, #tpu.memory_space<vmem>>, vector<140x768xbf16>
    %cst = arith.constant dense<0.000000e+00> : vector<48x768xf32>
    %9 = tpu.matmul %7, %8, %cst {dimension_numbers = #tpu.dot_dimension_numbers<[1], [0], [0], [1], [0, 0, 1, 1], [], []>} : vector<48x140xbf16>, vector<140x768xbf16>, vector<48x768xf32> -> vector<48x768xf32>
    %c0_4 = arith.constant 0 : index
    %c0_5 = arith.constant 0 : index
    %10 = vector.load %arg3[%c0_4, %c0_5] : memref<1x768xf32, #tpu.memory_space<vmem>>, vector<1x768xf32>
    %11 = vector.broadcast %10 : vector<1x768xf32> to vector<48x768xf32>
    %12 = arith.addf %9, %11 : vector<48x768xf32>
    %cst_6 = arith.constant 0.000000e+00 : f32
    %13 = vector.broadcast %cst_6 : f32 to vector<48x768xf32>
    %14 = arith.maximumf %12, %13 : vector<48x768xf32>
    %15 = vector.extract_strided_slice %14 {offsets = [0, 0], sizes = [48, 32], strides = [1, 1]} : vector<48x768xf32> to vector<48x32xf32>
    %16 = vector.extract_strided_slice %14 {offsets = [0, 64], sizes = [48, 32], strides = [1, 1]} : vector<48x768xf32> to vector<48x32xf32>
    %17 = vector.extract_strided_slice %14 {offsets = [0, 128], sizes = [48, 32], strides = [1, 1]} : vector<48x768xf32> to vector<48x32xf32>
    %18 = vector.extract_strided_slice %14 {offsets = [0, 192], sizes = [48, 32], strides = [1, 1]} : vector<48x768xf32> to vector<48x32xf32>
    %19 = vector.extract_strided_slice %14 {offsets = [0, 256], sizes = [48, 32], strides = [1, 1]} : vector<48x768xf32> to vector<48x32xf32>
    %20 = vector.extract_strided_slice %14 {offsets = [0, 320], sizes = [48, 32], strides = [1, 1]} : vector<48x768xf32> to vector<48x32xf32>
    %21 = vector.extract_strided_slice %14 {offsets = [0, 384], sizes = [48, 32], strides = [1, 1]} : vector<48x768xf32> to vector<48x32xf32>
    %22 = vector.extract_strided_slice %14 {offsets = [0, 448], sizes = [48, 32], strides = [1, 1]} : vector<48x768xf32> to vector<48x32xf32>
    %23 = vector.extract_strided_slice %14 {offsets = [0, 512], sizes = [48, 32], strides = [1, 1]} : vector<48x768xf32> to vector<48x32xf32>
    %24 = vector.extract_strided_slice %14 {offsets = [0, 576], sizes = [48, 32], strides = [1, 1]} : vector<48x768xf32> to vector<48x32xf32>
    %25 = vector.extract_strided_slice %14 {offsets = [0, 640], sizes = [48, 32], strides = [1, 1]} : vector<48x768xf32> to vector<48x32xf32>
    %26 = vector.extract_strided_slice %14 {offsets = [0, 704], sizes = [48, 32], strides = [1, 1]} : vector<48x768xf32> to vector<48x32xf32>
    %27 = tpu.concatenate %15, %16, %17, %18, %19, %20, %21, %22, %23, %24, %25, %26 in 1 : vector<48x32xf32>, vector<48x32xf32>, vector<48x32xf32>, vector<48x32xf32>, vector<48x32xf32>, vector<48x32xf32>, vector<48x32xf32>, vector<48x32xf32>, vector<48x32xf32>, vector<48x32xf32>, vector<48x32xf32>, vector<48x32xf32> -> vector<48x384xf32>
    %28 = vector.extract_strided_slice %14 {offsets = [0, 32], sizes = [48, 32], strides = [1, 1]} : vector<48x768xf32> to vector<48x32xf32>
    %29 = vector.extract_strided_slice %14 {offsets = [0, 96], sizes = [48, 32], strides = [1, 1]} : vector<48x768xf32> to vector<48x32xf32>
    %30 = vector.extract_strided_slice %14 {offsets = [0, 160], sizes = [48, 32], strides = [1, 1]} : vector<48x768xf32> to vector<48x32xf32>
    %31 = vector.extract_strided_slice %14 {offsets = [0, 224], sizes = [48, 32], strides = [1, 1]} : vector<48x768xf32> to vector<48x32xf32>
    %32 = vector.extract_strided_slice %14 {offsets = [0, 288], sizes = [48, 32], strides = [1, 1]} : vector<48x768xf32> to vector<48x32xf32>
    %33 = vector.extract_strided_slice %14 {offsets = [0, 352], sizes = [48, 32], strides = [1, 1]} : vector<48x768xf32> to vector<48x32xf32>
    %34 = vector.extract_strided_slice %14 {offsets = [0, 416], sizes = [48, 32], strides = [1, 1]} : vector<48x768xf32> to vector<48x32xf32>
    %35 = vector.extract_strided_slice %14 {offsets = [0, 480], sizes = [48, 32], strides = [1, 1]} : vector<48x768xf32> to vector<48x32xf32>
    %36 = vector.extract_strided_slice %14 {offsets = [0, 544], sizes = [48, 32], strides = [1, 1]} : vector<48x768xf32> to vector<48x32xf32>
    %37 = vector.extract_strided_slice %14 {offsets = [0, 608], sizes = [48, 32], strides = [1, 1]} : vector<48x768xf32> to vector<48x32xf32>
    %38 = vector.extract_strided_slice %14 {offsets = [0, 672], sizes = [48, 32], strides = [1, 1]} : vector<48x768xf32> to vector<48x32xf32>
    %39 = vector.extract_strided_slice %14 {offsets = [0, 736], sizes = [48, 32], strides = [1, 1]} : vector<48x768xf32> to vector<48x32xf32>
    %40 = tpu.concatenate %28, %29, %30, %31, %32, %33, %34, %35, %36, %37, %38, %39 in 1 : vector<48x32xf32>, vector<48x32xf32>, vector<48x32xf32>, vector<48x32xf32>, vector<48x32xf32>, vector<48x32xf32>, vector<48x32xf32>, vector<48x32xf32>, vector<48x32xf32>, vector<48x32xf32>, vector<48x32xf32>, vector<48x32xf32> -> vector<48x384xf32>
    %41 = arith.maximumf %27, %40 : vector<48x384xf32>
    %42 = vector.shape_cast %41 : vector<48x384xf32> to vector<24x768xf32>
    %43 = vector.extract_strided_slice %42 {offsets = [0, 0], sizes = [24, 384], strides = [1, 1]} : vector<24x768xf32> to vector<24x384xf32>
    %44 = vector.extract_strided_slice %42 {offsets = [0, 384], sizes = [24, 384], strides = [1, 1]} : vector<24x768xf32> to vector<24x384xf32>
    %45 = arith.maximumf %43, %44 : vector<24x384xf32>
    %46 = arith.truncf %45 : vector<24x384xf32> to vector<24x384xbf16>
    %47 = vector.shape_cast %46 : vector<24x384xbf16> to vector<2x12x384xbf16>
    %48 = vector.extract_strided_slice %47 {offsets = [0, 0, 0], sizes = [2, 8, 384], strides = [1, 1, 1]} : vector<2x12x384xbf16> to vector<2x8x384xbf16>
    %49 = vector.shape_cast %48 : vector<2x8x384xbf16> to vector<16x384xbf16>
    %50 = vector.extract_strided_slice %47 {offsets = [0, 1, 0], sizes = [2, 8, 384], strides = [1, 1, 1]} : vector<2x12x384xbf16> to vector<2x8x384xbf16>
    %51 = vector.shape_cast %50 : vector<2x8x384xbf16> to vector<16x384xbf16>
    %52 = vector.extract_strided_slice %47 {offsets = [0, 2, 0], sizes = [2, 8, 384], strides = [1, 1, 1]} : vector<2x12x384xbf16> to vector<2x8x384xbf16>
    %53 = vector.shape_cast %52 : vector<2x8x384xbf16> to vector<16x384xbf16>
    %54 = vector.extract_strided_slice %47 {offsets = [0, 3, 0], sizes = [2, 8, 384], strides = [1, 1, 1]} : vector<2x12x384xbf16> to vector<2x8x384xbf16>
    %55 = vector.shape_cast %54 : vector<2x8x384xbf16> to vector<16x384xbf16>
    %56 = vector.extract_strided_slice %47 {offsets = [0, 4, 0], sizes = [2, 8, 384], strides = [1, 1, 1]} : vector<2x12x384xbf16> to vector<2x8x384xbf16>
    %57 = vector.shape_cast %56 : vector<2x8x384xbf16> to vector<16x384xbf16>
    %58 = tpu.concatenate %49, %51, %53, %55, %57 in 1 : vector<16x384xbf16>, vector<16x384xbf16>, vector<16x384xbf16>, vector<16x384xbf16>, vector<16x384xbf16> -> vector<16x1920xbf16>
    %c0_7 = arith.constant 0 : index
    %c0_8 = arith.constant 0 : index
    %59 = vector.load %arg4[%c0_7, %c0_8] : memref<1920x512xbf16, #tpu.memory_space<vmem>>, vector<1920x512xbf16>
    %cst_9 = arith.constant dense<0.000000e+00> : vector<16x512xf32>
    %60 = tpu.matmul %58, %59, %cst_9 {dimension_numbers = #tpu.dot_dimension_numbers<[1], [0], [0], [1], [0, 0, 1, 1], [], []>} : vector<16x1920xbf16>, vector<1920x512xbf16>, vector<16x512xf32> -> vector<16x512xf32>
    %c0_10 = arith.constant 0 : index
    %c0_11 = arith.constant 0 : index
    %61 = vector.load %arg5[%c0_10, %c0_11] : memref<1x512xf32, #tpu.memory_space<vmem>>, vector<1x512xf32>
    %62 = vector.broadcast %61 : vector<1x512xf32> to vector<16x512xf32>
    %63 = arith.addf %60, %62 : vector<16x512xf32>
    %cst_12 = arith.constant 0.000000e+00 : f32
    %64 = vector.broadcast %cst_12 : f32 to vector<16x512xf32>
    %65 = arith.maximumf %63, %64 : vector<16x512xf32>
    %66 = vector.extract_strided_slice %65 {offsets = [0, 0], sizes = [16, 64], strides = [1, 1]} : vector<16x512xf32> to vector<16x64xf32>
    %67 = vector.extract_strided_slice %65 {offsets = [0, 128], sizes = [16, 64], strides = [1, 1]} : vector<16x512xf32> to vector<16x64xf32>
    %68 = vector.extract_strided_slice %65 {offsets = [0, 256], sizes = [16, 64], strides = [1, 1]} : vector<16x512xf32> to vector<16x64xf32>
    %69 = vector.extract_strided_slice %65 {offsets = [0, 384], sizes = [16, 64], strides = [1, 1]} : vector<16x512xf32> to vector<16x64xf32>
    %70 = tpu.concatenate %66, %67, %68, %69 in 1 : vector<16x64xf32>, vector<16x64xf32>, vector<16x64xf32>, vector<16x64xf32> -> vector<16x256xf32>
    %71 = vector.extract_strided_slice %65 {offsets = [0, 64], sizes = [16, 64], strides = [1, 1]} : vector<16x512xf32> to vector<16x64xf32>
    %72 = vector.extract_strided_slice %65 {offsets = [0, 192], sizes = [16, 64], strides = [1, 1]} : vector<16x512xf32> to vector<16x64xf32>
    %73 = vector.extract_strided_slice %65 {offsets = [0, 320], sizes = [16, 64], strides = [1, 1]} : vector<16x512xf32> to vector<16x64xf32>
    %74 = vector.extract_strided_slice %65 {offsets = [0, 448], sizes = [16, 64], strides = [1, 1]} : vector<16x512xf32> to vector<16x64xf32>
    %75 = tpu.concatenate %71, %72, %73, %74 in 1 : vector<16x64xf32>, vector<16x64xf32>, vector<16x64xf32>, vector<16x64xf32> -> vector<16x256xf32>
    %76 = arith.maximumf %70, %75 : vector<16x256xf32>
    %77 = vector.shape_cast %76 : vector<16x256xf32> to vector<8x512xf32>
    %78 = vector.extract_strided_slice %77 {offsets = [0, 0], sizes = [8, 256], strides = [1, 1]} : vector<8x512xf32> to vector<8x256xf32>
    %79 = vector.extract_strided_slice %77 {offsets = [0, 256], sizes = [8, 256], strides = [1, 1]} : vector<8x512xf32> to vector<8x256xf32>
    %80 = arith.maximumf %78, %79 : vector<8x256xf32>
    %81 = vector.shape_cast %80 : vector<8x256xf32> to vector<2x1024xf32>
    %82 = arith.truncf %81 : vector<2x1024xf32> to vector<2x1024xbf16>
    %c0_13 = arith.constant 0 : index
    %c0_14 = arith.constant 0 : index
    %83 = vector.load %arg6[%c0_13, %c0_14] : memref<1024x512xbf16, #tpu.memory_space<vmem>>, vector<1024x512xbf16>
    %cst_15 = arith.constant dense<0.000000e+00> : vector<2x512xf32>
    %84 = tpu.matmul %82, %83, %cst_15 {dimension_numbers = #tpu.dot_dimension_numbers<[1], [0], [0], [1], [0, 0, 1, 1], [], []>} : vector<2x1024xbf16>, vector<1024x512xbf16>, vector<2x512xf32> -> vector<2x512xf32>
    %c0_16 = arith.constant 0 : index
    %c0_17 = arith.constant 0 : index
    %85 = vector.load %arg7[%c0_16, %c0_17] : memref<1x512xf32, #tpu.memory_space<vmem>>, vector<1x512xf32>
    %86 = vector.broadcast %85 : vector<1x512xf32> to vector<2x512xf32>
    %87 = arith.addf %84, %86 : vector<2x512xf32>
    %cst_18 = arith.constant 0.000000e+00 : f32
    %88 = vector.broadcast %cst_18 : f32 to vector<2x512xf32>
    %89 = arith.maximumf %87, %88 : vector<2x512xf32>
    %90 = arith.truncf %89 : vector<2x512xf32> to vector<2x512xbf16>
    %c0_19 = arith.constant 0 : index
    %c0_20 = arith.constant 0 : index
    %91 = vector.load %arg8[%c0_19, %c0_20] : memref<512x128xbf16, #tpu.memory_space<vmem>>, vector<512x128xbf16>
    %cst_21 = arith.constant dense<0.000000e+00> : vector<2x128xf32>
    %92 = tpu.matmul %90, %91, %cst_21 {dimension_numbers = #tpu.dot_dimension_numbers<[1], [0], [0], [1], [0, 0, 1, 1], [], []>} : vector<2x512xbf16>, vector<512x128xbf16>, vector<2x128xf32> -> vector<2x128xf32>
    %c0_22 = arith.constant 0 : index
    %c0_23 = arith.constant 0 : index
    %93 = vector.load %arg9[%c0_22, %c0_23] : memref<1x128xf32, #tpu.memory_space<vmem>>, vector<1x128xf32>
    %94 = vector.broadcast %93 : vector<1x128xf32> to vector<2x128xf32>
    %95 = arith.addf %92, %94 : vector<2x128xf32>
    %c0_24 = arith.constant 0 : index
    %c0_25 = arith.constant 0 : index
    %96 = vector.load %arg10[%c0_24, %c0_25] : memref<2x128xf32, #tpu.memory_space<vmem>>, vector<2x128xf32>
    tpu.vector_store %arg10[%c0_24, %c0_25], %95 {strides = array<i32>} : memref<2x128xf32, #tpu.memory_space<vmem>>, vector<2x128xf32>,
    return
  }
  func.func @transform_0(%arg0: i32) -> (i32, i32, i32) {
    %c0_i32 = arith.constant 0 : i32
    %c0_i32_0 = arith.constant 0 : i32
    %c0_i32_1 = arith.constant 0 : i32
    return %arg0, %c0_i32, %c0_i32_0 : i32, i32, i32
  }
  func.func @transform_1(%arg0: i32) -> (i32, i32) {
    %c0_i32 = arith.constant 0 : i32
    %c0_i32_0 = arith.constant 0 : i32
    %c0_i32_1 = arith.constant 0 : i32
    return %c0_i32, %c0_i32_0 : i32, i32
  }
  func.func @transform_2(%arg0: i32) -> (i32, i32) {
    %c0_i32 = arith.constant 0 : i32
    %c0_i32_0 = arith.constant 0 : i32
    %c0_i32_1 = arith.constant 0 : i32
    return %c0_i32, %c0_i32_0 : i32, i32
  }
  func.func @transform_3(%arg0: i32) -> (i32, i32) {
    %c0_i32 = arith.constant 0 : i32
    %c0_i32_0 = arith.constant 0 : i32
    %c0_i32_1 = arith.constant 0 : i32
    return %c0_i32, %c0_i32_0 : i32, i32
  }
  func.func @transform_4(%arg0: i32) -> (i32, i32) {
    %c0_i32 = arith.constant 0 : i32
    %c0_i32_0 = arith.constant 0 : i32
    %c0_i32_1 = arith.constant 0 : i32
    return %c0_i32, %c0_i32_0 : i32, i32
  }
  func.func @transform_5(%arg0: i32) -> (i32, i32) {
    %c0_i32 = arith.constant 0 : i32
    %c0_i32_0 = arith.constant 0 : i32
    %c0_i32_1 = arith.constant 0 : i32
    return %c0_i32, %c0_i32_0 : i32, i32
  }
  func.func @transform_6(%arg0: i32) -> (i32, i32) {
    %c0_i32 = arith.constant 0 : i32
    %c0_i32_0 = arith.constant 0 : i32
    %c0_i32_1 = arith.constant 0 : i32
    return %c0_i32, %c0_i32_0 : i32, i32
  }
  func.func @transform_7(%arg0: i32) -> (i32, i32) {
    %c0_i32 = arith.constant 0 : i32
    %c0_i32_0 = arith.constant 0 : i32
    %c0_i32_1 = arith.constant 0 : i32
    return %c0_i32, %c0_i32_0 : i32, i32
  }
  func.func @transform_8(%arg0: i32) -> (i32, i32) {
    %c0_i32 = arith.constant 0 : i32
    %c0_i32_0 = arith.constant 0 : i32
    %c0_i32_1 = arith.constant 0 : i32
    return %c0_i32, %c0_i32_0 : i32, i32
  }
  func.func @transform_9(%arg0: i32) -> (i32, i32) {
    %c0_i32 = arith.constant 0 : i32
    %c0_i32_0 = arith.constant 0 : i32
    return %arg0, %c0_i32 : i32, i32
  }
}

</mosaic_0001>

<bundles_post_ra>
// kernel: _lambda_.1
= control target key start
LH: loop header
LB: loop body
LE: loop exit
PB: predicated region body
PF: predicated region fallthrough
CT: control target
= control target key end

     0   :  { %vm141_vm0 = vcmask 1045504   ;;  %vm118_vm1 = vsmask.f32 6400  ;;  %vm64_vm2 = vsmask.f32 7424  ;;  %s10283_s21 = smov 112   ;;  %s14193_s0 = inlined_call_operand.vmem [shape: bf16[2,28,28], index: 0, kind: input, shape index: {}]   ;;  %s14194_s1 = inlined_call_operand.vmem [shape: bf16[140,768], index: 1, kind: input, shape index: {}]   ;;  %s14195_s2 = inlined_call_operand.vmem [shape: f32[1,768], index: 2, kind: input, shape index: {}]   ;;  %s14196_s3 = inlined_call_operand.vmem [shape: bf16[1920,512], index: 3, kind: input, shape index: {}]   ;;  %s14197_s4 = inlined_call_operand.vmem [shape: f32[1,512], index: 4, kind: input, shape index: {}]   ;;  %s14198_s5 = inlined_call_operand.vmem [shape: bf16[1024,512], index: 5, kind: input, shape index: {}]   ;;  %s14199_s6 = inlined_call_operand.vmem [shape: f32[1,512], index: 6, kind: input, shape index: {}]   ;;  %s14200_s7 = inlined_call_operand.vmem [shape: bf16[512,128], index: 7, kind: input, shape index: {}]   ;;  %s14201_s8 = inlined_call_operand.vmem [shape: f32[1,128], index: 8, kind: input, shape index: {}]   ;;  %s14202_s9 = inlined_call_operand.hbm [shape: f32[2,128], index: 9, kind: output, shape index: {}]  }
   0x1   :  { %v36_v0 = vld [vmem:[%s14193_s0 + $0x8] sm:$0xf]  ;;  %v37_v1 = vld [vmem:[%s14193_s0 + $0xc] sm:$0x3]  ;;  %v10354_v2 = vld [vmem:[%s14193_s0] sm:$0xff]   ;;  %vm103_vm3 = vcmask 1046528  }
   0x2   :  { %v10356_v3 = vcombine.low %v36_v0, %v37_v1  ;;  %v10361_v4 = vld [vmem:[%s14193_s0 + $0x10] sm:$0xff]   ;;  %v142_v5 = vrot.slane %v10354_v2, 2  ;;  %v66_v6 = vshrl.u32 %v10354_v2, 16  ;;  %v68_v7 = vshll.u32 %v10354_v2, 16  ;;  %v40_v15 = vld [vmem:[%s14193_s0 + $0x18] sm:$0xf] }
   0x3   :  { %v81_v11 = vshrl.u32 %v10361_v4, 16  ;;  %v83_v16 = vshll.u32 %v10361_v4, 16  ;;  %v41_v21 = vld [vmem:[%s14193_s0 + $0x1c] sm:$0x3]  ;;  %v104_v28 = vrot.slane %v10354_v2, 1  ;;  %s10284_s28 = smov 28  }
   0x4   :  { %v143_v8 = vrot.slane %v10356_v3, 2  ;;  %v73_v9 = vshll.u32 %v10356_v3, 16  ;;  %v77_v10 = vshrl.u32 %v10356_v3, 16  ;;  %v119_v12 = vrot.slane %v66_v6, 1  ;;  %v9037_v26 = vld [vmem:[%s14194_s1 + $0x4] ss:$24 sps:$4 sm:$0xff]  }
   0x5   :  { %v120_v13 = vrot.slane %v68_v7, 2  ;;  %v70_v14 = vrot.slane %v68_v7, 1  ;;  %v10381_v24 = vcombine.low %v40_v15, %v41_v21  ;;  %v85_v25 = vrot.slane %v83_v16, 1  ;;  %v9039_v30 = vld [vmem:[%s14194_s1] ss:$24 sps:$4 sm:$0xff]   ;;  %598 = vmatprep.subr.bf16.mxu0 %v9037_v26  ;;  %s10285_s12 = smov 84  }
   0x6   :  { %v144_v17 = vsel %vm141_vm0, %v142_v5, %v143_v8  ;;  %v122_v18 = vrot.slane %v77_v10, 1  ;;  %v123_v19 = vrot.slane %v73_v9, 2  ;;  %v75_v20 = vrot.slane %v73_v9, 1  ;;  %v9040_v34 = vld [vmem:[%s14194_s1 + $0xc] ss:$24 sps:$4 sm:$0xff]   ;;  %599 = vmatpush1.bf16.msra.mxu0 %v9039_v30  ;;  %s10286_s19 = smov 56  }
   0x7   :  { %148 = vrot.lane.b32.xlu1 %v144_v17, %s10283_s21  ;;  %v121_v22 = vor.u32 %v120_v13, %v119_v12  ;;  %v71_v23 = vor.u32 %v70_v14, %v66_v6  ;;  %v105_v29 = vrot.slane %v10356_v3, 1  ;;  %v86_v32 = vor.u32 %v85_v25, %v81_v11  ;;  %v9042_v37 = vld [vmem:[%s14194_s1 + $0x8] ss:$24 sps:$4 sm:$0xff]   ;;  %v9043_v38 = vld [vmem:[%s14194_s1 + $0x34] ss:$24 sps:$4 sm:$0xff]   ;;  %661 = vmatprep.subr.bf16.mxu1 %v9040_v34 }
   0x8   :  { %v10386_v27 = vor.u32 %v123_v19, %v122_v18  ;;  %v88_v33 = vshll.u32 %v10381_v24, 16  ;;  %v92_v36 = vshrl.u32 %v10381_v24, 16  ;;  %v107_v41 = vrot.slane %v10361_v4, 1  ;;  %v9045_v43 = vld [vmem:[%s14194_s1 + $0x30] ss:$24 sps:$4 sm:$0xff]   ;;  %662 = vmatpush1.bf16.msra.mxu1 %v9042_v37  ;;  %600 = vmatprep.subr.bf16.mxu0 %v9043_v38 }
   0x9   :  { %v76_v31 = vsel %vm64_vm2, %v71_v23, %v75_v20  ;;  %v106_v40 = vsel %vm103_vm3, %v104_v28, %v105_v29  ;;  %v108_v42 = vrot.slane %v10381_v24, 1  ;;  %v126_v44 = vrot.slane %v81_v11, 1  ;;  %v9046_v49 = vld [vmem:[%s14194_s1 + $0x3c] ss:$24 sps:$4 sm:$0xff]   ;;  %v9048_v50 = vld [vmem:[%s14194_s1 + $0x38] ss:$24 sps:$4 sm:$0xff]  }
   0xa   :  { %v125_v35 = vsel %vm118_vm1, %v121_v22, %v10386_v27  ;;  %95 = vrot.lane.b32.xlu0 %v76_v31, %s10284_s28  ;;  %v10409_v39 = vrot.slane %v88_v33, 1  ;;  %v127_v45 = vrot.slane %v83_v16, 2  ;;  %v129_v46 = vrot.slane %v92_v36, 1  ;;  %601 = vmatpush1.bf16.msra.mxu0 %v9045_v43  ;;  %v9049_v52 = vld [vmem:[%s14194_s1 + $0x64] ss:$24 sps:$4 sm:$0xff]  }
   0xb   :  { %133 = vrot.lane.b32.xlu1 %v125_v35, %s10285_s12  ;;  %v130_v47 = vrot.slane %v88_v33, 2  ;;  %v79_v51 = vor.u32 %v77_v10, %v75_v20  ;;  %v9051_v53 = vld [vmem:[%s14194_s1 + $0x60] ss:$24 sps:$4 sm:$0xff]   ;;  %663 = vmatprep.subr.bf16.mxu1 %v9046_v49  ;;  %v9052_v54 = vld [vmem:[%s14194_s1 + $0x6c] ss:$24 sps:$4 sm:$0xff]   ;;  %v109_v56 = vsel %vm103_vm3, %v107_v41, %v108_v42  ;;  %v145_v0 = vrot.slane %v10361_v4, 2 }
   0xc   :  { %v91_v48 = vsel %vm64_vm2, %v86_v32, %v10409_v39  ;;  %v9054_v55 = vld [vmem:[%s14194_s1 + $0x68] ss:$24 sps:$4 sm:$0xff]   ;;  %v128_v57 = vor.u32 %v127_v45, %v126_v44  ;;  %664 = vmatpush1.bf16.msra.mxu1 %v9048_v50  ;;  %602 = vmatprep.subr.bf16.mxu0 %v9049_v52  ;;  %v9055_v59 = vld [vmem:[%s14194_s1 + $0x94] ss:$24 sps:$4 sm:$0xff]   ;;  %v9061_v62 = vld [vmem:[%s14194_s1 + $0xc4] ss:$24 sps:$4 sm:$0xff]   ;;  %v94_v16 = vor.u32 %v92_v36, %v10409_v39 }
   0xd   :  { %v131_v58 = vor.u32 %v130_v47, %v129_v46  ;;  %665 = vmatprep.subr.bf16.mxu1 %v9052_v54  ;;  %v9057_v60 = vld [vmem:[%s14194_s1 + $0x90] ss:$24 sps:$4 sm:$0xff]   ;;  %v9058_v61 = vld [vmem:[%s14194_s1 + $0x9c] ss:$24 sps:$4 sm:$0xff]   ;;  %v146_v1 = vrot.slane %v10381_v24, 2  ;;  %vm569_vm4 = vcmask 97280  }
   0xe   :  { %110 = vrot.lane.b32.xlu0 %v106_v40, %s10286_s19  ;;  %603 = vmatpush1.bf16.msra.mxu0 %v9051_v53  ;;  %v9060_v5 = vld [vmem:[%s14194_s1 + $0x98] ss:$24 sps:$4 sm:$0xff]   ;;  %v9064_v6 = vld [vmem:[%s14194_s1 + $0xcc] ss:$24 sps:$4 sm:$0xff]   ;;  %v9066_v10 = vld [vmem:[%s14194_s1 + $0xc8] ss:$24 sps:$4 sm:$0xff]  }
   0xf   :  { %99 = vrot.lane.b32.xlu1 %v91_v48, %s10284_s28  ;;  %604 = vmatprep.subr.bf16.mxu0 %v9055_v59  ;;  %v132_v63 = vsel %vm118_vm1, %v128_v57, %v131_v58  ;;  %v9063_v7 = vld [vmem:[%s14194_s1 + $0xc0] ss:$24 sps:$4 sm:$0xff]   ;;  %v9067_v4 = vld [vmem:[%s14194_s1 + $0xf4] ss:$24 sps:$4 sm:$0xff]   ;;  %v147_v9 = vsel %vm141_vm0, %v145_v0, %v146_v1  ;;  %v9069_v12 = vld [vmem:[%s14194_s1 + $0xf0] ss:$24 sps:$4 sm:$0xff]  }
  0x10   :  { %666 = vmatpush1.bf16.msra.mxu1 %v9054_v55  ;;  %v9070_v11 = vld [vmem:[%s14194_s1 + $0xfc] ss:$24 sps:$4 sm:$0xff]   ;;  %v9072_v14 = vld [vmem:[%s14194_s1 + $0xf8] ss:$24 sps:$4 sm:$0xff]   ;;  %v9076_v15 = vld [vmem:[%s14194_s1 + $0x12c] ss:$24 sps:$4 sm:$0xff]  }
  0x11   :  { %667 = vmatprep.subr.bf16.mxu1 %v9058_v61  ;;  %v9073_v13 = vld [vmem:[%s14194_s1 + $0x124] ss:$24 sps:$4 sm:$0xff]   ;;  %v9075_v17 = vld [vmem:[%s14194_s1 + $0x120] ss:$24 sps:$4 sm:$0xff]   ;;  %v9079_v18 = vld [vmem:[%s14194_s1 + $0x154] ss:$24 sps:$4 sm:$0xff]  }
  0x12   :  { %97 = vrot.lane.b32.xlu0 %v79_v51, %s10284_s28  ;;  %605 = vmatpush1.bf16.msra.mxu0 %v9057_v60  ;;  %v9078_v3 = vld [vmem:[%s14194_s1 + $0x128] ss:$24 sps:$4 sm:$0xff]   ;;  %v9082_v19 = vld [vmem:[%s14194_s1 + $0x15c] ss:$24 sps:$4 sm:$0xff]   ;;  %v9084_v20 = vld [vmem:[%s14194_s1 + $0x158] ss:$24 sps:$4 sm:$0xff]  }
  0x13   :  { %114 = vrot.lane.b32.xlu1 %v109_v56, %s10286_s19  ;;  %606 = vmatprep.subr.bf16.mxu0 %v9061_v62  ;;  %v9085_v21 = vld [vmem:[%s14194_s1 + $0x184] ss:$24 sps:$4 sm:$0x3f]   ;;  %v9087_v22 = vld [vmem:[%s14194_s1 + $0x180] ss:$24 sps:$4 sm:$0x3f]  }
  0x14   :  { %668 = vmatpush1.bf16.msra.mxu1 %v9060_v5  ;;  %v9088_v23 = vld [vmem:[%s14194_s1 + $0x18c] ss:$24 sps:$4 sm:$0x3f]   ;;  %v9090_v24 = vld [vmem:[%s14194_s1 + $0x188] ss:$24 sps:$4 sm:$0x3f]  }
  0x15   :  { %669 = vmatprep.subr.bf16.mxu1 %v9064_v6  ;;  %v581_v25 = vsel %vm141_vm0, %v9087_v22, 0  ;;  %v9093_v26 = vld [vmem:[%s14194_s1 + $0x14] ss:$24 sps:$4 sm:$0xff]   ;;  %vm156_vm5 = vcmask 228352   ;;  %vm167_vm6 = vcmask 457728   ;;  %vm176_vm7 = vcmask 687104  }
  0x16   :  { %112 = vrot.lane.b32.xlu0 %v105_v29, %s10286_s19  ;;  %607 = vmatpush1.bf16.msra.mxu0 %v9063_v7  ;;  %v9091_v31 = vld [vmem:[%s14194_s1 + $0x10] ss:$24 sps:$4 sm:$0xff]   ;;  %vm185_vm8 = vcmask 916480   ;;  %v9097_v34 = vld [vmem:[%s14194_s1 + $0x44] ss:$24 sps:$4 sm:$0xff]  }
  0x17   :  { %137 = vrot.lane.b32.xlu1 %v132_v63, %s10285_s12  ;;  %608 = vmatprep.subr.bf16.mxu0 %v9067_v4  ;;  %v9095_v39 = vld [vmem:[%s14194_s1 + $0x40] ss:$24 sps:$4 sm:$0xff]   ;;  %v9100_v40 = vld [vmem:[%s14194_s1 + $0x74] ss:$24 sps:$4 sm:$0xff]   ;;  %v9103_v44 = vld [vmem:[%s14194_s1 + $0xa4] ss:$24 sps:$4 sm:$0xff]  }
  0x18   :  { %670 = vmatpush1.bf16.msra.mxu1 %v9066_v10  ;;  %v10256_v46 = vld [vmem:[%s14193_s0 + $0x8] sm:$0xf]  ;;  %v9101_v48 = vld [vmem:[%s14194_s1 + $0xa0] ss:$24 sps:$4 sm:$0xff]   ;;  %v10257_v49 = vld [vmem:[%s14193_s0 + $0x10] sm:$0xff]  }
  0x19   :  { %671 = vmatprep.subr.bf16.mxu1 %v9070_v11  ;;  %v7851_v47 = vcombine.low %v10256_v46, %v10256_v46  ;;  %v9106_v52 = vld [vmem:[%s14194_s1 + $0xd4] ss:$24 sps:$4 sm:$0xff]   ;;  %v9104_v57 = vld [vmem:[%s14194_s1 + $0xd0] ss:$24 sps:$4 sm:$0xff]   ;;  %v9110_v61 = vld [vmem:[%s14194_s1 + $0x104] ss:$24 sps:$4 sm:$0xff]  }
  0x1a   :  { %135 = vrot.lane.b32.xlu0 %v10386_v27, %s10285_s12  ;;  %609 = vmatpush1.bf16.msra.mxu0 %v9069_v12  ;;  %v587_v27 = vsel %vm141_vm0, %v9090_v24, 0  ;;  %v10258_v5 = vld [vmem:[%s14193_s0 + $0x18] sm:$0xf]  ;;  %v9113_v12 = vld [vmem:[%s14194_s1 + $0x134] ss:$24 sps:$4 sm:$0xff]  }
  0x1b   :  { %152 = vrot.lane.b32.xlu1 %v147_v9, %s10283_s21  ;;  %610 = vmatprep.subr.bf16.mxu0 %v9073_v13  ;;  %v7853_v6 = vcombine.low %v10258_v5, %v10258_v5  ;;  %v9108_v4 = vld [vmem:[%s14194_s1 + $0x100] ss:$24 sps:$4 sm:$0xff]   ;;  %v9119_v24 = vld [vmem:[%s14194_s1 + $0x190] ss:$24 sps:$4 sm:$0x3f]  }
  0x1c   :  { %672 = vmatpush1.bf16.msra.mxu1 %v9072_v14  ;;  %v9114_v22 = vld [vmem:[%s14194_s1 + $0x160] ss:$24 sps:$4 sm:$0xff]  }
  0x1d   :  { %673 = vmatprep.subr.bf16.mxu1 %v9076_v15 }
  0x1e   :  { %150 = vrot.lane.b32.xlu0 %v143_v8, %s10283_s21  ;;  %v9081_v8 = vld [vmem:[%s14194_s1 + $0x150] ss:$24 sps:$4 sm:$0xff]   ;;  %611 = vmatpush1.bf16.msra.mxu0 %v9075_v17 }
  0x1f   :  { %116 = vrot.lane.b32.xlu1 %v108_v42, %s10286_s19  ;;  %612 = vmatprep.subr.bf16.mxu0 %v9079_v18  ;;  %v9098_v42 = vld [vmem:[%s14194_s1 + $0x70] ss:$24 sps:$4 sm:$0xff]  }
  0x20   :  { %674 = vmatpush1.bf16.msra.mxu1 %v9078_v3  ;;  %v9116_v3 = vld [vmem:[%s14194_s1 + $0x164] ss:$24 sps:$4 sm:$0xff]  }
  0x21   :  { %675 = vmatprep.subr.bf16.mxu1 %v9082_v19 }
  0x22   :  { %101 = vrot.lane.b32.xlu0 %v94_v16, %s10284_s28  ;;  %613 = vmatpush1.bf16.msra.mxu0 %v9081_v8  ;;  %v9111_v16 = vld [vmem:[%s14194_s1 + $0x130] ss:$24 sps:$4 sm:$0xff]  }
  0x23   :  { %154 = vrot.lane.b32.xlu1 %v146_v1, %s10283_s21  ;;  %7912 = vmatprep.subr.msk.bf16.mxu0 %vm141_vm0, %v9085_v21 }
  0x24   :  { %676 = vmatpush1.bf16.msra.mxu1 %v9084_v20 }
  0x25   :  { %7916 = vmatprep.subr.msk.bf16.mxu1 %vm141_vm0, %v9088_v23  ;;  %v9117_v23 = vld [vmem:[%s14194_s1 + $0x194] ss:$24 sps:$4 sm:$0x3f]  }
  0x26   :  { %139 = vrot.lane.b32.xlu0 %v131_v58, %s10285_s12  ;;  %615 = vmatpush1.bf16.msra.mxu0 %v581_v25 }
  0x27   :  { %724 = vmatprep.subr.bf16.mxu0 %v9093_v26  ;;  %v593_v26 = vsel %vm141_vm0, %v9119_v24, 0 }
  0x28   :  { %678 = vmatpush1.bf16.msra.mxu1 %v587_v27 }
  0x79   :  { %v10546_v28 = vpop.permute.xlu1 %148 }
  0x7a   :  { %7913 = vmatprep.mubr.msk.bf16.mxu0 %vm569_vm4, %v10546_v28  ;;  %7917 = vmatprep.mubr.msk.bf16.mxu1 %vm569_vm4, %v10546_v28 }
  0x7c   :  { %v96_v29 = vpop.permute.xlu0 %95 }
  0x7d   :  { %v134_v30 = vpop.permute.xlu1 %133  ;;  %v158_v32 = vsel %vm156_vm5, %v10354_v2, %v96_v29 }
  0x80   :  { %v111_v33 = vpop.permute.xlu0 %110 }
  0x81   :  { %v100_v35 = vpop.permute.xlu1 %99  ;;  %v169_v36 = vsel %vm167_vm6, %v158_v32, %v111_v33 }
  0x82   :  { %v178_v37 = vsel %vm176_vm7, %v169_v36, %v134_v30  ;;  %v163_v50 = vsel %vm156_vm5, %v10257_v49, %v100_v35 }
  0x83   :  { %v10564_v38 = vsel %vm185_vm8, %v178_v37, %v10546_v28 }
  0x84   :  { %631 = vmatmul.mubr.bf16.vlgmr.msra.gmra.mrb[0].mxu0 %v10564_v38  ;;  %694 = vmatmul.mubr.bf16.vlgmr.msra.gmra.mrb[0].mxu1 %v10564_v38  ;;  %v98_v2 = vpop.permute.xlu0 %97 }
  0x85   :  { %v115_v41 = vpop.permute.xlu1 %114  ;;  %725 = vmatpush1.bf16.msra.mxu0 %v9091_v31  ;;  %v161_v54 = vsel %vm156_vm5, %v7851_v47, %v98_v2 }
  0x86   :  { %726 = vmatprep.subr.bf16.mxu0 %v9097_v34  ;;  %v173_v55 = vsel %vm167_vm6, %v163_v50, %v115_v41 }
  0x88   :  { %v113_v43 = vpop.permute.xlu0 %112 }
  0x89   :  { %v138_v45 = vpop.permute.xlu1 %137  ;;  %727 = vmatpush1.bf16.msra.mxu0 %v9095_v39  ;;  %v171_v56 = vsel %vm167_vm6, %v161_v54, %v113_v43 }
  0x8a   :  { %728 = vmatprep.subr.bf16.mxu0 %v9100_v40  ;;  %v182_v58 = vsel %vm176_vm7, %v173_v55, %v138_v45 }
  0x8c   :  { %v136_v51 = vpop.permute.xlu0 %135 }
  0x8d   :  { %v153_v53 = vpop.permute.xlu1 %152  ;;  %729 = vmatpush1.bf16.msra.mxu0 %v9098_v42  ;;  %v180_v59 = vsel %vm176_vm7, %v171_v56, %v136_v51 }
  0x8e   :  { %730 = vmatprep.subr.bf16.mxu0 %v9103_v44  ;;  %v191_v62 = vsel %vm185_vm8, %v182_v58, %v153_v53  ;;  %v207_v13 = vunpack.c.h.b16 %v153_v53 }
  0x8f   :  { %v206_v20 = vunpack.c.h.b16 %v191_v62 }
  0x90   :  { %v151_v60 = vpop.permute.xlu0 %150 }
  0x91   :  { %v117_v63 = vpop.permute.xlu1 %116  ;;  %731 = vmatpush1.bf16.msra.mxu0 %v9101_v48  ;;  %v189_v0 = vsel %vm185_vm8, %v180_v59, %v151_v60  ;;  %v7857_v1 = vcombine.low %v151_v60, %v153_v53 }
  0x92   :  { %v7856_v7 = vcombine.low %v189_v0, %v191_v62  ;;  %732 = vmatprep.subr.bf16.mxu0 %v9106_v52 }
  0x93   :  { %7914 = vmatprep.mubr.msk.bf16.mxu0 %vm569_vm4, %v7857_v1  ;;  %7918 = vmatprep.mubr.msk.bf16.mxu1 %vm569_vm4, %v7857_v1 }
  0x94   :  { %641 = vmatmul.mubr.bf16.gmra.mrb[4].mxu0 %v7856_v7  ;;  %704 = vmatmul.mubr.bf16.gmra.mrb[4].mxu1 %v7856_v7  ;;  %v102_v9 = vpop.permute.xlu0 %101 }
  0x95   :  { %v155_v10 = vpop.permute.xlu1 %154  ;;  %733 = vmatpush1.bf16.msra.mxu0 %v9104_v57  ;;  %v166_v11 = vsel %vm156_vm5, %v7853_v6, %v102_v9 }
  0x96   :  { %v209_v14 = vunpack.c.l.b16 %v155_v10  ;;  %734 = vmatprep.subr.bf16.mxu0 %v9110_v61  ;;  %v175_v15 = vsel %vm167_vm6, %v166_v11, %v117_v63 }
  0x98   :  { %v301_v17 = vpack.c.b16 %v209_v14, %v207_v13  ;;  %v140_v18 = vpop.permute.xlu0 %139 }
  0x99   :  { %735 = vmatpush1.bf16.msra.mxu0 %v9108_v4  ;;  %v184_v8 = vsel %vm176_vm7, %v175_v15, %v140_v18 }
  0x9a   :  { %v193_v19 = vsel %vm185_vm8, %v184_v8, %v155_v10  ;;  %7915 = vmatprep.mubr.msk.bf16.mxu0 %vm569_vm4, %v301_v17  ;;  %7919 = vmatprep.mubr.msk.bf16.mxu1 %vm569_vm4, %v301_v17 }
  0x9b   :  { %v208_v21 = vunpack.c.l.b16 %v193_v19  ;;  %736 = vmatprep.subr.bf16.mxu0 %v9113_v12 }
  0x9d   :  { %737 = vmatpush1.bf16.msra.mxu0 %v9111_v16  ;;  %v300_v25 = vpack.c.b16 %v208_v21, %v206_v20 }
  0x9e   :  { %738 = vmatprep.subr.bf16.mxu0 %v9116_v3 }
  0x9f   :  { %651 = vmatmul.mubr.bf16.gmra.mrb[8].mxu0 %v300_v25  ;;  %714 = vmatmul.mubr.bf16.gmra.mrb[8].mxu1 %v300_v25 }
  0xa0   :  { %7921 = vmatprep.mubr.msk.bf16.mxu0 %vm569_vm4, %v10546_v28 }
  0xa1   :  { %739 = vmatpush1.bf16.msra.mxu0 %v9114_v22 }
  0xa2   :  { %7920 = vmatprep.subr.msk.bf16.mxu0 %vm141_vm0, %v9117_v23 }
  0xa5   :  { %741 = vmatpush1.bf16.msra.mxu0 %v593_v26 }
  0xa8   :  { %757 = vmatmul.mubr.bf16.vlgmr.msra.gmra.mrb[12].mxu0 %v10564_v38 }
  0xa9   :  { %7922 = vmatprep.mubr.msk.bf16.mxu0 %vm569_vm4, %v7857_v1 }
  0xb0   :  { %767 = vmatmul.mubr.bf16.gmra.mrb[16].mxu0 %v7856_v7 }
  0xb1   :  { %7923 = vmatprep.mubr.msk.bf16.mxu0 %vm569_vm4, %v301_v17 }
  0xb8   :  { %777 = vmatmul.mubr.bf16.gmra.mrb[20].mxu0 %v300_v25 }
  0xb9   :  { %14 = vsyncpa [#allocation3], 0  ;;  %v266_v27 = vlaneseq  ;;  %v10656_v31 = vld [vmem:[%s14195_s2] sm:$0x3f]  ;;  %s10287_s2 = smov 64   ;;  %s10288_s21 = smov 96  }
  0xba   :  { %v9122_v55 = vld [vmem:[%s14196_s3 + $0x4] ss:$16 sps:$4 sm:$0xff]   ;;  %v9125_v56 = vld [vmem:[%s14196_s3 + $0xc] ss:$16 sps:$4 sm:$0xff]   ;;  %v9120_v60 = vld [vmem:[%s14196_s3] ss:$16 sps:$4 sm:$0xff]  }
  0xbb   :  { %v10645_v29 = vshrl.u32 %v266_v27, 7  ;;  %4698 = vmatprep.subr.bf16.mxu1 %v9122_v55  ;;  %v9123_v6 = vld [vmem:[%s14196_s3 + $0x8] ss:$16 sps:$4 sm:$0xff]   ;;  %5042 = vmatprep.subr.bf16.mxu0 %v9125_v56  ;;  %v9128_v13 = vld [vmem:[%s14196_s3 + $0x24] ss:$16 sps:$4 sm:$0xff]   ;;  %s10289_s27 = smov 32  }
  0xbc   :  { %4699 = vmatpush1.bf16.msra.mxu1 %v9120_v60  ;;  %5043 = vmatpush1.bf16.msra.mxu0 %v9123_v6  ;;  %v9131_v14 = vld [vmem:[%s14196_s3 + $0x2c] ss:$16 sps:$4 sm:$0xff]   ;;  %v9126_v16 = vld [vmem:[%s14196_s3 + $0x20] ss:$16 sps:$4 sm:$0xff]   ;;  %v9129_v17 = vld [vmem:[%s14196_s3 + $0x28] ss:$16 sps:$4 sm:$0xff]  }
  0xbd   :  { %14236 = vst [vmem:[#allocation5_spill] sm:$0xff] %v10645_v29  ;;  %v10648_v28 = vsub.s32 0, %v10645_v29  ;;  %v10651_v30 = vsub.s32 2, %v10645_v29  ;;  %v10687_v46 = vsub.s32 1, %v10645_v29  ;;  %v10690_v47 = vsub.s32 3, %v10645_v29  ;;  %4700 = vmatprep.subr.bf16.mxu1 %v9128_v13  ;;  %5044 = vmatprep.subr.bf16.mxu0 %v9131_v14  ;;  %s10294_s13 = smov [#allocation2]  }
  0xbe   :  { %v9134_v23 = vld [vmem:[%s14196_s3 + $0x44] ss:$16 sps:$4 sm:$0xff]   ;;  %v9132_v27 = vld [vmem:[%s14196_s3 + $0x40] ss:$16 sps:$4 sm:$0xff]   ;;  %v9141_v6 = vld [vmem:[%s14196_s3 + $0x68] ss:$16 sps:$4 sm:$0xff]  }
  0xbf   :  { %14237 = vst [vmem:[#allocation6_spill] sm:$0xff] %v10648_v28  ;;  %14238 = vst [vmem:[#allocation7_spill] sm:$0xff] %v10651_v30  ;;  %v10660_v34 = vrot.slane %v10656_v31, %v10648_v28  ;;  %v10664_v35 = vrot.slane %v10656_v31, %v10651_v30  ;;  %v10707_v57 = vrot.slane %v10656_v31, %v10687_v46  ;;  %v9140_v56 = vld [vmem:[%s14196_s3 + $0x64] ss:$16 sps:$4 sm:$0xff]   ;;  %vm1021_vm9 = vcmask 261120   ;;  %s7842_s19 = sshll.u32 %s10294_s13, 4  ;;  %s7843_s19 = int_to_ptr.vmem [resolvable:$true] %s7842_s19 }
  0xc0   :  { %14239 = vst [vmem:[#allocation8_spill] sm:$0xff] %v10687_v46  ;;  %14240 = vst [vmem:[#allocation9_spill] sm:$0xff] %v10690_v47  ;;  %v10714_v61 = vrot.slane %v10656_v31, %v10690_v47  ;;  %4701 = vmatpush1.bf16.msra.mxu1 %v9126_v16  ;;  %5045 = vmatpush1.bf16.msra.mxu0 %v9129_v17  ;;  %vm1028_vm10 = vcmask 523264   ;;  %vm1035_vm11 = vcmask 785408   ;;  %vm1204_vm12 = vcmask 1040384   ;;  %p10264_p1 = scmp.lt.s32.totalorder %s7843_s19, %s7843_s19 }
  0xc1   :  { %4702 = vmatprep.subr.bf16.mxu1 %v9134_v23  ;;  %v9147_v23 = vld [vmem:[%s14196_s3 + $0x88] ss:$16 sps:$4 sm:$0xff]   ;;  %vm1207_vm13 = vcmask 1041409   ;;  %vm1210_vm14 = vcmask 1042434   ;;  %vm1213_vm15 = vcmask 1043459   ;;  %vm1216_vm0 = vcmask 1044484  }
  0xc2   :  { %vm1219_vm1 = vcmask 1045509   ;;  %vm1222_vm2 = vcmask 1046534   ;;  %vm1225_vm3 = vcmask 1047559   ;;  %vm1501_vm4 = vsmask.f32 1280 }
  0xc3   :  { %vm1502_vm5 = vsmask.f32 3336  ;;  %vm1504_vm6 = vsmask.f32 5392  ;;  %vm1506_vm7 = vsmask.f32 7448 }
  0xc4   :  { %4703 = vmatpush1.bf16.msra.mxu1 %v9132_v27  ;;  %vm1503_vm8 = vmor %vm1501_vm4, %vm1502_vm5 }
  0xc5   :  { %4704 = vmatprep.subr.bf16.mxu1 %v9140_v56 }
 0x157   :  { %v632_v32 = vpop.f32.mrb[0].mxu0  ;;  %v695_v33 = vpop.f32.mrb[0].mxu1 }
 0x158   :  { %v10666_v36 = vpop.f32.mrb[1].mxu0  ;;  %v697_v37 = vpop.f32.mrb[1].mxu1  ;;  %v696_v48 = vadd.f32 %v695_v33, %v10664_v35  ;;  %v633_v7 = vadd.f32 %v632_v32, %v10660_v34  ;;  %v9135_v32 = vld [vmem:[%s14196_s3 + $0x48] ss:$16 sps:$4 sm:$0xff]  }
 0x159   :  { %v636_v38 = vpop.f32.mrb[2].mxu0  ;;  %v699_v39 = vpop.f32.mrb[2].mxu1  ;;  %v10756_v8 = vadd.f32 %v697_v37, %v10714_v61 }
 0x15a   :  { %v10669_v2 = vadd.f32 %v636_v38, %v10660_v34  ;;  %v10672_v40 = vadd.f32 %v699_v39, %v10664_v35  ;;  %v10674_v41 = vpop.f32.mrb[3].mxu0  ;;  %v10676_v42 = vpop.f32.mrb[3].mxu1  ;;  %v10725_v4 = vmax.f32 %v696_v48, 0.0  ;;  %v10753_v3 = vmax.f32 %v633_v7, 0.0  ;;  %v9137_v39 = vld [vmem:[%s14196_s3 + $0x4c] ss:$16 sps:$4 sm:$0xff]  }
 0x15b   :  { %5046 = vmatprep.subr.bf16.mxu0 %v9137_v39  ;;  %v9143_v7 = vld [vmem:[%s14196_s3 + $0x6c] ss:$16 sps:$4 sm:$0xff]  }
 0x15c   :  { %v14223_v43 = vmax.f32 %v10669_v2, 0.0  ;;  %v795_v44 = vmax.f32 %v10672_v40, 0.0  ;;  %5047 = vmatpush1.bf16.msra.mxu0 %v9135_v32  ;;  %v284_v32 = vsub.s32 4, %v10645_v29 }
 0x15d   :  { %5048 = vmatprep.subr.bf16.mxu0 %v9143_v7 }
 0x15e   :  { %v8858_v45 = vpack.i.bf16 %v795_v44, %v14223_v43 }
 0x160   :  { %8859 = vrot.lane.b32.xlu1 %v8858_v45, %s10287_s2  ;;  %8854 = vrot.lane.b32.xlu0 %v8858_v45, %s10288_s21  ;;  %v14220_v45 = vmax.f32 %v10756_v8, 0.0 }
 0x161   :  { %5049 = vmatpush1.bf16.msra.mxu0 %v9141_v6 }
 0x167   :  { %v642_v49 = vpop.f32.mrb[4].mxu0  ;;  %v705_v50 = vpop.f32.mrb[4].mxu1 }
 0x168   :  { %v10694_v51 = vadd.f32 %v642_v49, %v10660_v34  ;;  %v10697_v52 = vadd.f32 %v705_v50, %v10664_v35  ;;  %v644_v53 = vpop.f32.mrb[5].mxu0  ;;  %v707_v54 = vpop.f32.mrb[5].mxu1 }
 0x169   :  { %v646_v58 = vpop.f32.mrb[6].mxu0  ;;  %v709_v59 = vpop.f32.mrb[6].mxu1  ;;  %v645_v9 = vadd.f32 %v644_v53, %v10707_v57  ;;  %v708_v10 = vadd.f32 %v707_v54, %v10714_v61 }
 0x16a   :  { %v14221_v62 = vmax.f32 %v10694_v51, 0.0  ;;  %v14222_v63 = vmax.f32 %v10697_v52, 0.0  ;;  %v647_v0 = vadd.f32 %v646_v58, %v10660_v34  ;;  %v648_v1 = vpop.f32.mrb[7].mxu0  ;;  %v10719_v5 = vpop.f32.mrb[7].mxu1  ;;  %v710_v21 = vadd.f32 %v709_v59, %v10664_v35 }
 0x16b   :  { %v10742_v15 = vadd.f32 %v648_v1, %v10707_v57  ;;  %v10758_v19 = vmax.f32 %v645_v9, 0.0  ;;  %v10760_v20 = vmax.f32 %v708_v10, 0.0  ;;  %v9138_v1 = vld [vmem:[%s14196_s3 + $0x60] ss:$16 sps:$4 sm:$0xff]   ;;  %v14244_v40 = vmax.f32 %v10694_v51, 0.0 }
 0x16c   :  { %v10729_v11 = vmax.f32 %v647_v0, 0.0  ;;  %v8863_v12 = vpack.i.bf16 %v14222_v63, %v14221_v62  ;;  %v10782_v48 = vmax.f32 %v710_v21, 0.0  ;;  %4705 = vmatpush1.bf16.msra.mxu1 %v9138_v1 }
 0x16d   :  { %v14219_v22 = vmax.f32 %v10742_v15, 0.0  ;;  %v8873_v53 = vpack.i.bf16 %v10760_v20, %v10758_v19 }
 0x16e   :  { %8864 = vrot.lane.b32.xlu0 %v8863_v12, %s10288_s21  ;;  %v8878_v18 = vpack.i.bf16 %v10725_v4, %v10729_v11  ;;  %v8883_v26 = vpack.i.bf16 %v10729_v11, %v10753_v3  ;;  %v8888_v10 = vpack.i.bf16 %v10782_v48, %v10725_v4 }
 0x16f   :  { %v8898_v0 = vpack.i.bf16 %v14220_v45, %v14219_v22 }
 0x170   :  { %8879 = vrot.lane.b32.xlu1 %v8878_v18, %s10288_s21  ;;  %v9146_v18 = vld [vmem:[%s14196_s3 + $0x84] ss:$16 sps:$4 sm:$0xff]  }
 0x171   :  { %4706 = vmatprep.subr.bf16.mxu1 %v9146_v18 }
 0x172   :  { %8869 = vrot.lane.b32.xlu0 %v8863_v12, %s10287_s2  ;;  %v652_v24 = vpop.f32.mrb[8].mxu0  ;;  %v715_v25 = vpop.f32.mrb[8].mxu1 }
 0x173   :  { %v716_v33 = vadd.f32 %v715_v25, %v10664_v35  ;;  %v654_v37 = vpop.f32.mrb[9].mxu0  ;;  %v717_v38 = vpop.f32.mrb[9].mxu1  ;;  %v653_v9 = vadd.f32 %v652_v24, %v10660_v34 }
 0x174   :  { %8884 = vrot.lane.b32.xlu1 %v8883_v26, %s10287_s2  ;;  %v656_v49 = vpop.f32.mrb[10].mxu0  ;;  %v719_v50 = vpop.f32.mrb[10].mxu1  ;;  %v655_v59 = vadd.f32 %v654_v37, %v10707_v57  ;;  %v718_v60 = vadd.f32 %v717_v38, %v10714_v61  ;;  %v635_v26 = vadd.f32 %v10666_v36, %v10707_v57 }
 0x175   :  { %v658_v54 = vpop.f32.mrb[11].mxu0  ;;  %v721_v55 = vpop.f32.mrb[11].mxu1  ;;  %v10790_v58 = vmax.f32 %v716_v33, 0.0  ;;  %v10813_v12 = vadd.f32 %v656_v49, %v10660_v34  ;;  %v10820_v16 = vadd.f32 %v719_v50, %v10664_v35  ;;  %v9149_v34 = vld [vmem:[%s14196_s3 + $0x8c] ss:$16 sps:$4 sm:$0xff]   ;;  %v10839_v24 = vmax.f32 %v653_v9, 0.0 }
 0x176   :  { %8874 = vrot.lane.b32.xlu0 %v8873_v53, %s10289_s27  ;;  %v10815_v13 = vmax.f32 %v655_v59, 0.0  ;;  %v10817_v14 = vmax.f32 %v718_v60, 0.0  ;;  %v9144_v35 = vld [vmem:[%s14196_s3 + $0x80] ss:$16 sps:$4 sm:$0xff]   ;;  %5050 = vmatprep.subr.bf16.mxu0 %v9149_v34  ;;  %v10852_v38 = vadd.f32 %v658_v54, %v10707_v57  ;;  %v10855_v39 = vadd.f32 %v721_v55, %v10714_v61  ;;  %v9152_v50 = vld [vmem:[%s14196_s3 + $0xa4] ss:$16 sps:$4 sm:$0xff]  }
 0x177   :  { %v8903_v17 = vpack.i.bf16 %v10753_v3, %v10790_v58  ;;  %v14217_v27 = vmax.f32 %v10813_v12, 0.0  ;;  %4707 = vmatpush1.bf16.msra.mxu1 %v9144_v35  ;;  %v14218_v37 = vmax.f32 %v10820_v16, 0.0  ;;  %5051 = vmatpush1.bf16.msra.mxu0 %v9147_v23  ;;  %v9155_v53 = vld [vmem:[%s14196_s3 + $0xac] ss:$16 sps:$4 sm:$0xff]   ;;  %v9150_v54 = vld [vmem:[%s14196_s3 + $0xa0] ss:$16 sps:$4 sm:$0xff]   ;;  %v8908_v56 = vpack.i.bf16 %v10790_v58, %v10839_v24 }
 0x178   :  { %8899 = vrot.lane.b32.xlu1 %v8898_v0, %s10289_s27  ;;  %v8913_v36 = vpack.i.bf16 %v10817_v14, %v10815_v13  ;;  %v9153_v55 = vld [vmem:[%s14196_s3 + $0xa8] ss:$16 sps:$4 sm:$0xff]   ;;  %4708 = vmatprep.subr.bf16.mxu1 %v9152_v50  ;;  %v10878_v59 = vrot.slane %v10656_v31, %v284_v32  ;;  %v288_v60 = vsub.s32 5, %v10645_v29  ;;  %v14216_v1 = vmax.f32 %v10852_v38, 0.0  ;;  %v9156_v23 = vld [vmem:[%s14196_s3 + $0xc0] ss:$16 sps:$4 sm:$0xff]  }
 0x179   :  { %5052 = vmatprep.subr.bf16.mxu0 %v9155_v53  ;;  %v14207_v6 = vmax.f32 %v10855_v39, 0.0  ;;  %v8928_v7 = vpack.i.bf16 %v14218_v37, %v14217_v27 }
 0x17a   :  { %8889 = vrot.lane.b32.xlu0 %v8888_v10, %s10287_s2  ;;  %v9158_v10 = vld [vmem:[%s14196_s3 + $0xc4] ss:$16 sps:$4 sm:$0xff]  }
 0x17b   :  { %v10831_v21 = vpop.f32.mrb[12].mxu0  ;;  %4709 = vmatpush1.bf16.msra.mxu1 %v9150_v54  ;;  %5053 = vmatpush1.bf16.msra.mxu0 %v9153_v55  ;;  %v8938_v54 = vpack.i.bf16 %v14207_v6, %v14216_v1 }
 0x17c   :  { %v10841_v25 = vpop.f32.mrb[13].mxu0  ;;  %8904 = vrot.lane.b32.xlu1 %v8903_v17, %s10288_s21  ;;  %v9161_v17 = vld [vmem:[%s14196_s3 + $0xcc] ss:$16 sps:$4 sm:$0xff]   ;;  %4710 = vmatprep.subr.bf16.mxu1 %v9158_v10 }
 0x17d   :  { %v10848_v33 = vpop.f32.mrb[14].mxu0  ;;  %5054 = vmatprep.subr.bf16.mxu0 %v9161_v17  ;;  %v9164_v17 = vld [vmem:[%s14196_s3 + $0xe4] ss:$16 sps:$4 sm:$0xff]  }
 0x17e   :  { %v10857_v49 = vpop.f32.mrb[15].mxu0  ;;  %8894 = vrot.lane.b32.xlu0 %v8898_v0, %s10287_s2  ;;  %v10881_v0 = vmax.f32 %v635_v26, 0.0  ;;  %v9159_v26 = vld [vmem:[%s14196_s3 + $0xc8] ss:$16 sps:$4 sm:$0xff]   ;;  %v11037_v6 = vadd.f32 %v10848_v33, %v10878_v59 }
 0x17f   :  { %4711 = vmatpush1.bf16.msra.mxu1 %v9156_v23  ;;  %5055 = vmatpush1.bf16.msra.mxu0 %v9159_v26 }
 0x180   :  { %8914 = vrot.lane.b32.xlu1 %v8913_v36, %s10287_s2  ;;  %v8918_v35 = vpack.i.bf16 %v10881_v0, %v10817_v14  ;;  %v10907_v36 = vrot.slane %v10656_v31, %v288_v60  ;;  %4712 = vmatprep.subr.bf16.mxu1 %v9164_v17 }
 0x182   :  { %8909 = vrot.lane.b32.xlu0 %v8908_v56, %s10287_s2  ;;  %v11052_v33 = vadd.f32 %v10857_v49, %v10907_v36  ;;  %v9185_v49 = vld [vmem:[%s14196_s3 + $0x14c] ss:$16 sps:$4 sm:$0xff]  }
 0x183   :  { %v768_v9 = vpop.f32.mrb[16].mxu0 }
 0x184   :  { %v769_v18 = vadd.f32 %v768_v9, %v10878_v59  ;;  %v770_v34 = vpop.f32.mrb[17].mxu0  ;;  %8929 = vrot.lane.b32.xlu1 %v8928_v7, %s10287_s2 }
 0x185   :  { %v772_v32 = vpop.f32.mrb[18].mxu0  ;;  %v771_v55 = vadd.f32 %v770_v34, %v10907_v36  ;;  %v9162_v34 = vld [vmem:[%s14196_s3 + $0xe0] ss:$16 sps:$4 sm:$0xff]  }
 0x186   :  { %v10909_v50 = vmax.f32 %v769_v18, 0.0  ;;  %v774_v53 = vpop.f32.mrb[19].mxu0  ;;  %8919 = vrot.lane.b32.xlu0 %v8918_v35, %s10289_s27  ;;  %v773_v9 = vadd.f32 %v772_v32, %v10878_v59  ;;  %v9167_v18 = vld [vmem:[%s14196_s3 + $0xec] ss:$16 sps:$4 sm:$0xff]   ;;  %v9165_v35 = vld [vmem:[%s14196_s3 + $0xe8] ss:$16 sps:$4 sm:$0xff]   ;;  %4713 = vmatpush1.bf16.msra.mxu1 %v9162_v34 }
 0x187   :  { %v10921_v60 = vmax.f32 %v771_v55, 0.0  ;;  %5056 = vmatprep.subr.bf16.mxu0 %v9167_v18  ;;  %v10943_v55 = vadd.f32 %v774_v53, %v10907_v36  ;;  %v10961_v53 = vadd.f32 %v10676_v42, %v10714_v61 }
 0x188   :  { %8939 = vrot.lane.b32.xlu1 %v8938_v54, %s10289_s27  ;;  %v8943_v31 = vpack.i.bf16 %v10839_v24, %v10909_v50  ;;  %v8948_v26 = vpack.i.bf16 %v10758_v19, %v10909_v50  ;;  %v10940_v32 = vmax.f32 %v773_v9, 0.0  ;;  %5057 = vmatpush1.bf16.msra.mxu0 %v9165_v35  ;;  %v10957_v9 = vadd.f32 %v10674_v41, %v10707_v57 }
 0x189   :  { %v8953_v17 = vpack.i.bf16 %v10921_v60, %v10760_v20  ;;  %v14203_v18 = vmax.f32 %v10943_v55, 0.0  ;;  %v14206_v57 = vmax.f32 %v10961_v53, 0.0 }
 0x18a   :  { %8924 = vrot.lane.b32.xlu0 %v8928_v7, %s10288_s21  ;;  %v8968_v35 = vpack.i.bf16 %v10881_v0, %v10940_v32  ;;  %v14205_v41 = vmax.f32 %v10957_v9, 0.0 }
 0x18b   :  { %v778_v56 = vpop.f32.mrb[20].mxu0 }
 0x18c   :  { %v780_v10 = vpop.f32.mrb[21].mxu0  ;;  %8944 = vrot.lane.b32.xlu1 %v8943_v31, %s10288_s21  ;;  %v8958_v31 = vpack.i.bf16 %v10815_v13, %v10921_v60  ;;  %v10974_v42 = vadd.f32 %v778_v56, %v10878_v59  ;;  %v9168_v56 = vld [vmem:[%s14196_s3 + $0x100] ss:$16 sps:$4 sm:$0xff]  }
 0x18d   :  { %v782_v7 = vpop.f32.mrb[22].mxu0 }
 0x18e   :  { %v784_v23 = vpop.f32.mrb[23].mxu0  ;;  %8934 = vrot.lane.b32.xlu0 %v8938_v54, %s10287_s2  ;;  %v10950_v54 = vadd.f32 %v10719_v5, %v10714_v61  ;;  %v8963_v5 = vpack.i.bf16 %v10940_v32, %v10782_v48 }
 0x190   :  { %8949 = vrot.lane.b32.xlu1 %v8948_v26, %s10287_s2  ;;  %v14204_v34 = vmax.f32 %v10950_v54, 0.0  ;;  %v9170_v26 = vld [vmem:[%s14196_s3 + $0x104] ss:$16 sps:$4 sm:$0xff]  }
 0x191   :  { %4714 = vmatprep.subr.bf16.mxu1 %v9170_v26  ;;  %v11010_v26 = vadd.f32 %v10841_v25, %v10907_v36 }
 0x192   :  { %8959 = vrot.lane.b32.xlu0 %v8958_v31, %s10289_s27  ;;  %v8973_v61 = vpack.i.bf16 %v14203_v18, %v14204_v34  ;;  %v9173_v31 = vld [vmem:[%s14196_s3 + $0x10c] ss:$16 sps:$4 sm:$0xff]   ;;  %4715 = vmatpush1.bf16.msra.mxu1 %v9168_v56  ;;  %v11000_v18 = vadd.f32 %v780_v10, %v10907_v36  ;;  %v8978_v34 = vpack.i.bf16 %v14206_v57, %v14205_v41  ;;  %v9176_v10 = vld [vmem:[%s14196_s3 + $0x124] ss:$16 sps:$4 sm:$0xff]   ;;  %v9177_v56 = vld [vmem:[%s14196_s3 + $0x128] ss:$16 sps:$4 sm:$0xff]  }
 0x193   :  { %5058 = vmatprep.subr.bf16.mxu0 %v9173_v31  ;;  %v9174_v31 = vld [vmem:[%s14196_s3 + $0x120] ss:$16 sps:$4 sm:$0xff]   ;;  %4716 = vmatprep.subr.bf16.mxu1 %v9176_v10  ;;  %v14213_v57 = vmax.f32 %v11010_v26, 0.0 }
 0x194   :  { %8954 = vrot.lane.b32.xlu1 %v8953_v17, %s10287_s2  ;;  %v9171_v17 = vld [vmem:[%s14196_s3 + $0x108] ss:$16 sps:$4 sm:$0xff]   ;;  %v14212_v25 = vmax.f32 %v11000_v18, 0.0 }
 0x195   :  { %5059 = vmatpush1.bf16.msra.mxu0 %v9171_v17  ;;  %v11027_v17 = vadd.f32 %v782_v7, %v10878_v59 }
 0x196   :  { %8964 = vrot.lane.b32.xlu0 %v8963_v5, %s10288_s21  ;;  %v10995_v5 = vadd.f32 %v10831_v21, %v10878_v59  ;;  %4717 = vmatpush1.bf16.msra.mxu1 %v9174_v31  ;;  %v9003_v10 = vpack.i.bf16 %v14212_v25, %v14213_v57  ;;  %v9183_v31 = vld [vmem:[%s14196_s3 + $0x148] ss:$16 sps:$4 sm:$0xff]  }
 0x197   :  { %v14209_v7 = vmax.f32 %v11027_v17, 0.0 }
 0x198   :  { %8969 = vrot.lane.b32.xlu1 %v8968_v35, %s10287_s2  ;;  %v14215_v35 = vmax.f32 %v10974_v42, 0.0  ;;  %v14214_v21 = vmax.f32 %v10995_v5, 0.0 }
 0x19a   :  { %8974 = vrot.lane.b32.xlu0 %v8973_v61, %s10287_s2  ;;  %v8993_v41 = vpack.i.bf16 %v14215_v35, %v14214_v21 }
 0x19c   :  { %8984 = vrot.lane.b32.xlu1 %v8973_v61, %s10289_s27  ;;  %v9179_v61 = vld [vmem:[%s14196_s3 + $0x12c] ss:$16 sps:$4 sm:$0xff]  }
 0x19d   :  { %5060 = vmatprep.subr.bf16.mxu0 %v9179_v61  ;;  %v14208_v61 = vmax.f32 %v11037_v6, 0.0 }
 0x19e   :  { %8979 = vrot.lane.b32.xlu0 %v8978_v34, %s10287_s2  ;;  %5061 = vmatpush1.bf16.msra.mxu0 %v9177_v56  ;;  %v14211_v56 = vmax.f32 %v11052_v33, 0.0 }
 0x19f   :  { %5062 = vmatprep.subr.bf16.mxu0 %v9185_v49  ;;  %v9194_v49 = vld [vmem:[%s14196_s3 + $0x184] ss:$16 sps:$4 sm:$0xff]  }
 0x1a0   :  { %8989 = vrot.lane.b32.xlu1 %v8978_v34, %s10289_s27  ;;  %v11042_v34 = vadd.f32 %v784_v23, %v10907_v36  ;;  %v9013_v23 = vpack.i.bf16 %v14209_v7, %v14208_v61  ;;  %v9180_v36 = vld [vmem:[%s14196_s3 + $0x140] ss:$16 sps:$4 sm:$0xff]   ;;  %v9188_v61 = vld [vmem:[%s14196_s3 + $0x164] ss:$16 sps:$4 sm:$0xff]   ;;  %v9191_v7 = vld [vmem:[%s14196_s3 + $0x16c] ss:$16 sps:$4 sm:$0xff]  }
 0x1a2   :  { %8994 = vrot.lane.b32.xlu0 %v8993_v41, %s10288_s21  ;;  %v14210_v59 = vmax.f32 %v11042_v34, 0.0  ;;  %5063 = vmatpush1.bf16.msra.mxu0 %v9183_v31  ;;  %v9192_v31 = vld [vmem:[%s14196_s3 + $0x180] ss:$16 sps:$4 sm:$0xff]  }
 0x1a3   :  { %5064 = vmatprep.subr.bf16.mxu0 %v9191_v7  ;;  %v9195_v7 = vld [vmem:[%s14196_s3 + $0x188] ss:$16 sps:$4 sm:$0xff]  }
 0x1a4   :  { %8999 = vrot.lane.b32.xlu1 %v8993_v41, %s10287_s2  ;;  %v9182_v41 = vld [vmem:[%s14196_s3 + $0x144] ss:$16 sps:$4 sm:$0xff]  }
 0x1a5   :  { %4718 = vmatprep.subr.bf16.mxu1 %v9182_v41  ;;  %v9189_v41 = vld [vmem:[%s14196_s3 + $0x168] ss:$16 sps:$4 sm:$0xff]  }
 0x1a6   :  { %9004 = vrot.lane.b32.xlu0 %v9003_v10, %s10287_s2  ;;  %4719 = vmatpush1.bf16.msra.mxu1 %v9180_v36  ;;  %v9197_v36 = vld [vmem:[%s14196_s3 + $0x18c] ss:$16 sps:$4 sm:$0xff]  }
 0x1a7   :  { %4720 = vmatprep.subr.bf16.mxu1 %v9188_v61  ;;  %5065 = vmatpush1.bf16.msra.mxu0 %v9189_v41  ;;  %v9200_v61 = vld [vmem:[%s14196_s3 + $0x1a4] ss:$16 sps:$4 sm:$0xff]   ;;  %v9201_v41 = vld [vmem:[%s14196_s3 + $0x1a8] ss:$16 sps:$4 sm:$0xff]  }
 0x1a8   :  { %9009 = vrot.lane.b32.xlu1 %v9003_v10, %s10289_s27  ;;  %v9023_v10 = vpack.i.bf16 %v14210_v59, %v14211_v56  ;;  %5066 = vmatprep.subr.bf16.mxu0 %v9197_v36  ;;  %v9209_v36 = vld [vmem:[%s14196_s3 + $0x1cc] ss:$16 sps:$4 sm:$0xff]  }
 0x1aa   :  { %9014 = vrot.lane.b32.xlu0 %v9013_v23, %s10288_s21 }
 0x1ab   :  { %5067 = vmatpush1.bf16.msra.mxu0 %v9195_v7  ;;  %v9207_v7 = vld [vmem:[%s14196_s3 + $0x1c8] ss:$16 sps:$4 sm:$0xff]  }
 0x1ac   :  { %9019 = vrot.lane.b32.xlu1 %v9013_v23, %s10287_s2  ;;  %v9186_v23 = vld [vmem:[%s14196_s3 + $0x160] ss:$16 sps:$4 sm:$0xff]  }
 0x1ad   :  { %4721 = vmatpush1.bf16.msra.mxu1 %v9186_v23  ;;  %v9198_v23 = vld [vmem:[%s14196_s3 + $0x1a0] ss:$16 sps:$4 sm:$0xff]  }
 0x1ae   :  { %9024 = vrot.lane.b32.xlu0 %v9023_v10, %s10287_s2  ;;  %4722 = vmatprep.subr.bf16.mxu1 %v9194_v49  ;;  %v9206_v49 = vld [vmem:[%s14196_s3 + $0x1c4] ss:$16 sps:$4 sm:$0xff]  }
 0x1b0   :  { %9029 = vrot.lane.b32.xlu1 %v9023_v10, %s10289_s27  ;;  %v9203_v10 = vld [vmem:[%s14196_s3 + $0x1ac] ss:$16 sps:$4 sm:$0xff]  }
 0x1b1   :  { %4723 = vmatpush1.bf16.msra.mxu1 %v9192_v31  ;;  %5068 = vmatprep.subr.bf16.mxu0 %v9203_v10  ;;  %v9204_v31 = vld [vmem:[%s14196_s3 + $0x1c0] ss:$16 sps:$4 sm:$0xff]   ;;  %v9215_v10 = vld [vmem:[%s14196_s3 + $0x1ec] ss:$16 sps:$4 sm:$0xff]  }
 0x1b2   :  { %4724 = vmatprep.subr.bf16.mxu1 %v9200_v61  ;;  %5069 = vmatpush1.bf16.msra.mxu0 %v9201_v41  ;;  %v9212_v61 = vld [vmem:[%s14196_s3 + $0x1e4] ss:$16 sps:$4 sm:$0xff]   ;;  %v9213_v41 = vld [vmem:[%s14196_s3 + $0x1e8] ss:$16 sps:$4 sm:$0xff]  }
 0x1b3   :  { %5070 = vmatprep.subr.bf16.mxu0 %v9209_v36 }
 0x1b5   :  { %4725 = vmatpush1.bf16.msra.mxu1 %v9198_v23  ;;  %v9210_v23 = vld [vmem:[%s14196_s3 + $0x1e0] ss:$16 sps:$4 sm:$0xff]  }
 0x1b6   :  { %4726 = vmatprep.subr.bf16.mxu1 %v9206_v49  ;;  %5071 = vmatpush1.bf16.msra.mxu0 %v9207_v7 }
 0x1b7   :  { %5072 = vmatprep.subr.bf16.mxu0 %v9215_v10 }
 0x1b9   :  { %4727 = vmatpush1.bf16.msra.mxu1 %v9204_v31 }
 0x1ba   :  { %4728 = vmatprep.subr.bf16.mxu1 %v9212_v61  ;;  %5073 = vmatpush1.bf16.msra.mxu0 %v9213_v41  ;;  %v9218_v61 = vld [vmem:[%s14196_s3 + $0x204] ss:$16 sps:$4 sm:$0xff]  }
 0x1bd   :  { %4729 = vmatpush1.bf16.msra.mxu1 %v9210_v23  ;;  %v9221_v23 = vld [vmem:[%s14196_s3 + $0x20c] ss:$16 sps:$4 sm:$0xff]  }
 0x1be   :  { %4741 = vmatprep.subr.bf16.mxu1 %v9218_v61  ;;  %5085 = vmatprep.subr.bf16.mxu0 %v9221_v23  ;;  %v14243_v61 = vmax.f32 %v10697_v52, 0.0 }
 0x1d2   :  { %v8860_v49 = vpop.permute.xlu1 %8859  ;;  %v8855_v36 = vpop.permute.xlu0 %8854 }
 0x1d3   :  { %v8862_v31 = vunpack.i.h.bf16 %v8860_v49  ;;  %v8861_v7 = vunpack.i.l.bf16 %v8860_v49  ;;  %v8857_v59 = vunpack.i.h.bf16 %v8855_v36  ;;  %v8856_v56 = vunpack.i.l.bf16 %v8855_v36 }
 0x1d4   :  { %v10290_v49 = vmov 1983009808  }
 0x1d5   :  { %v11143_v25 = vsel %vm1021_vm9, %v8857_v59, %v8862_v31  ;;  %v11146_v57 = vsel %vm1021_vm9, %v8856_v56, %v8861_v7  ;;  %v1453_v36 = vunpack.c.l.s4 %v10290_v49  ;;  %v11163_v49 = vsel %vm1021_vm9, %v795_v44, %v8857_v59 }
 0x1d7   :  { %v1454_v7 = vunpack.c.0.s8 %v1453_v36 }
 0x1e0   :  { %v8865_v21 = vpop.permute.xlu0 %8864 }
 0x1e1   :  { %v8867_v1 = vunpack.i.h.bf16 %v8865_v21  ;;  %v8866_v27 = vunpack.i.l.bf16 %v8865_v21 }
 0x1e2   :  { %v8880_v10 = vpop.permute.xlu1 %8879 }
 0x1e3   :  { %v8882_v62 = vunpack.i.h.bf16 %v8880_v10  ;;  %v8881_v63 = vunpack.i.l.bf16 %v8880_v10  ;;  %v14242_v10 = vmax.f32 %v10669_v2, 0.0  ;;  %v11177_v30 = vsel %vm1021_vm9, %v14243_v61, %v8867_v1 }
 0x1e4   :  { %v8870_v41 = vpop.permute.xlu0 %8869  ;;  %v11182_v44 = vsel %vm1021_vm9, %v14244_v40, %v8866_v27 }
 0x1e5   :  { %v8872_v22 = vunpack.i.h.bf16 %v8870_v41  ;;  %v8871_v45 = vunpack.i.l.bf16 %v8870_v41  ;;  %v11167_v41 = vsub.s32 %v1454_v7, %v10645_v29  ;;  %v11172_v43 = vsel %vm1021_vm9, %v14242_v10, %v8856_v56 }
 0x1e6   :  { %v8885_v31 = vpop.permute.xlu1 %8884  ;;  %v1042_v52 = vsel %vm1021_vm9, %v10725_v4, %v8882_v62  ;;  %v1025_v61 = vsel %vm1021_vm9, %v10729_v11, %v8881_v63 }
 0x1e7   :  { %v8887_v21 = vunpack.i.h.bf16 %v8885_v31  ;;  %14241 = vst [vmem:[#allocation10_spill] sm:$0xff] %v11167_v41  ;;  %v1134_v7 = vsel %vm1021_vm9, %v8866_v27, %v8871_v45  ;;  %v1152_v2 = vsel %vm1021_vm9, %v8867_v1, %v8872_v22 }
 0x1e8   :  { %v11154_v35 = vpop.permute.xlu0 %8874 }
 0x1e9   :  { %v14245_v51 = vunpack.i.l.bf16 %v11154_v35  ;;  %v14246_v40 = vunpack.i.h.bf16 %v11154_v35  ;;  %v1135_v22 = vsel %vm1021_vm9, %v8881_v63, %v8887_v21 }
 0x1ea   :  { %v8900_v37 = vpop.permute.xlu1 %8899 }
 0x1eb   :  { %v8901_v59 = vunpack.i.l.bf16 %v8900_v37  ;;  %v8902_v29 = vunpack.i.h.bf16 %v8900_v37  ;;  %v1140_v10 = vsel %vm1028_vm10, %v1134_v7, %v14245_v51  ;;  %v1158_v46 = vsel %vm1028_vm10, %v1152_v2, %v14246_v40 }
 0x1ec   :  { %v11158_v23 = vpop.permute.xlu0 %8889  ;;  %v11204_v7 = vsel %vm1035_vm11, %v1140_v10, %v10758_v19  ;;  %v11208_v2 = vsel %vm1035_vm11, %v1158_v46, %v10760_v20  ;;  %v14248_v46 = vmax.f32 %v10742_v15, 0.0 }
 0x1ed   :  { %v8891_v36 = vunpack.i.l.bf16 %v11158_v23  ;;  %v1141_v4 = vsel %vm1028_vm10, %v1135_v22, %v8901_v59 }
 0x1ee   :  { %v8905_v47 = vpop.permute.xlu1 %8904  ;;  %v1147_v20 = vsel %vm1035_vm11, %v1141_v4, %v14248_v46 }
 0x1ef   :  { %v1150_v56 = vsel %vm1021_vm9, %v8882_v62, %v8891_v36  ;;  %v8907_v37 = vunpack.i.h.bf16 %v8905_v47  ;;  %v8886_v62 = vunpack.i.l.bf16 %v8885_v31  ;;  %v8906_v11 = vunpack.i.l.bf16 %v8905_v47 }
 0x1f0   :  { %v8895_v45 = vpop.permute.xlu0 %8894  ;;  %v1156_v27 = vsel %vm1028_vm10, %v1150_v56, %v8902_v29  ;;  %v14247_v56 = vmax.f32 %v10756_v8, 0.0 }
 0x1f1   :  { %v8897_v1 = vunpack.i.h.bf16 %v8895_v45  ;;  %v8896_v36 = vunpack.i.l.bf16 %v8895_v45  ;;  %v1046_v8 = vsel %vm1021_vm9, %v10790_v58, %v8906_v11 }
 0x1f2   :  { %v11200_v28 = vpop.permute.xlu1 %8914  ;;  %v1162_v51 = vsel %vm1035_vm11, %v1156_v27, %v14247_v56 }
 0x1f3   :  { %v1048_v21 = vsel %vm1028_vm10, %v1042_v52, %v8897_v1  ;;  %v1032_v47 = vsel %vm1028_vm10, %v1025_v61, %v8896_v36  ;;  %v8917_v19 = vunpack.i.h.bf16 %v11200_v28  ;;  %v11225_v52 = vsel %vm1021_vm9, %v10753_v3, %v8907_v37 }
 0x1f4   :  { %v1054_v31 = vsel %vm1035_vm11, %v1048_v21, %v8902_v29  ;;  %v11218_v10 = vpop.permute.xlu0 %8909  ;;  %v1039_v29 = vsel %vm1035_vm11, %v1032_v47, %v8901_v59  ;;  %v1132_v61 = vsel %vm1021_vm9, %v8907_v37, %v8886_v62 }
 0x1f5   :  { %v1187_v40 = vmax.f32 %v1054_v31, %v1162_v51  ;;  %v11231_v45 = vmax.f32 %v1039_v29, %v1147_v20  ;;  %v8912_v22 = vunpack.i.h.bf16 %v11218_v10  ;;  %v1052_v59 = vsel %vm1028_vm10, %v1046_v8, %v8917_v19 }
 0x1f6   :  { %v8930_v27 = vpop.permute.xlu1 %8929  ;;  %v8911_v37 = vunpack.i.l.bf16 %v11218_v10 }
 0x1f7   :  { %v1227_v15 = vsel %vm1204_vm12, %v1187_v40, 0.0  ;;  %v1228_v1 = vrot.slane %v1187_v40, 1  ;;  %v1230_v4 = vrot.slane %v1187_v40, 2  ;;  %v1232_v36 = vrot.slane %v1187_v40, 3 }
 0x1f8   :  { %v1269_v21 = vrot.slane %v1187_v40, 4  ;;  %v11238_v62 = vpop.permute.xlu0 %8919  ;;  %v1154_v19 = vsel %vm1021_vm9, %v8906_v11, %v8912_v22  ;;  %v8931_v63 = vunpack.i.l.bf16 %v8930_v27 }
 0x1f9   :  { %v1229_v58 = vsel %vm1207_vm13, %v1228_v1, %v1227_v15  ;;  %v1266_v31 = vsel %vm1204_vm12, %v1228_v1, 0.0  ;;  %v14234_v8 = vunpack.i.h.bf16 %v11238_v62  ;;  %v8921_v15 = vunpack.i.l.bf16 %v11238_v62 }
 0x1fa   :  { %v1267_v51 = vsel %vm1207_vm13, %v1230_v4, %v1266_v31  ;;  %v8940_v29 = vpop.permute.xlu1 %8939  ;;  %v1231_v10 = vsel %vm1210_vm14, %v1230_v4, %v1229_v58  ;;  %v8932_v1 = vunpack.i.h.bf16 %v8930_v27 }
 0x1fb   :  { %v1268_v40 = vsel %vm1210_vm14, %v1232_v36, %v1267_v51  ;;  %v8942_v56 = vunpack.i.h.bf16 %v8940_v29  ;;  %v8941_v47 = vunpack.i.l.bf16 %v8940_v29  ;;  %v1138_v20 = vsel %vm1028_vm10, %v1132_v61, %v14234_v8 }
 0x1fc   :  { %v8925_v31 = vpop.permute.xlu0 %8924  ;;  %v1058_v11 = vsel %vm1035_vm11, %v1052_v59, %v8921_v15  ;;  %v1160_v22 = vsel %vm1028_vm10, %v1154_v19, %v8921_v15  ;;  %v11260_v3 = vsel %vm1213_vm15, %v1232_v36, %v1231_v10  ;;  %v11263_v27 = vsel %vm1213_vm15, %v1269_v21, %v1268_v40 }
 0x1fd   :  { %v8927_v4 = vunpack.i.h.bf16 %v8925_v31  ;;  %v1166_v58 = vsel %vm1035_vm11, %v1160_v22, %v10817_v14  ;;  %v8926_v51 = vunpack.i.l.bf16 %v8925_v31  ;;  %14249 = vst [vmem:[#allocation11_spill] sm:$0xff] %v11263_v27  ;;  %v11267_v29 = vsel %vm1035_vm11, %v1138_v20, %v10881_v0 }
 0x1fe   :  { %v8945_v46 = vpop.permute.xlu1 %8944  ;;  %v1199_v61 = vmax.f32 %v1058_v11, %v1166_v58  ;;  %v14250_v15 = vmax.f32 %v10820_v16, 0.0  ;;  %v14251_v20 = vmax.f32 %v10813_v12, 0.0 }
 0x1ff   :  { %v1155_v59 = vsel %vm1021_vm9, %v8927_v4, %v8932_v1  ;;  %v8947_v19 = vunpack.i.h.bf16 %v8945_v46  ;;  %v1137_v36 = vsel %vm1021_vm9, %v8926_v51, %v8931_v63  ;;  %v8946_v10 = vunpack.i.l.bf16 %v8945_v46 }
 0x200   :  { %v1047_v14 = vsel %vm1021_vm9, %v14250_v15, %v8927_v4  ;;  %v1161_v31 = vsel %vm1028_vm10, %v1155_v59, %v8942_v56  ;;  %v8935_v21 = vpop.permute.xlu0 %8934  ;;  %v1371_v40 = vsel %vm1204_vm12, %v1199_v61, 0.0  ;;  %v1372_v22 = vrot.slane %v1199_v61, 1 }
 0x201   :  { %v1374_v0 = vrot.slane %v1199_v61, 2  ;;  %v1027_v1 = vsel %vm1021_vm9, %v14251_v20, %v8926_v51  ;;  %v1376_v11 = vrot.slane %v1199_v61, 3  ;;  %v1413_v58 = vrot.slane %v1199_v61, 4 }
 0x202   :  { %v1143_v16 = vsel %vm1028_vm10, %v1137_v36, %v8941_v47  ;;  %v1026_v4 = vsel %vm1021_vm9, %v10839_v24, %v8947_v19  ;;  %v1373_v63 = vsel %vm1207_vm13, %v1372_v22, %v1371_v40  ;;  %v1410_v46 = vsel %vm1204_vm12, %v1372_v22, 0.0  ;;  %v8950_v8 = vpop.permute.xlu1 %8949 }
 0x203   :  { %v1062_v59 = vsel %vm1021_vm9, %v10909_v50, %v8946_v10  ;;  %v8937_v15 = vunpack.i.h.bf16 %v8935_v21  ;;  %v1375_v12 = vsel %vm1210_vm14, %v1374_v0, %v1373_v63  ;;  %v1411_v51 = vsel %vm1207_vm13, %v1374_v0, %v1410_v46 }
 0x204   :  { %v1136_v61 = vsel %vm1021_vm9, %v8947_v19, %v8911_v37  ;;  %v8936_v20 = vunpack.i.l.bf16 %v8935_v21  ;;  %v1377_v36 = vsel %vm1213_vm15, %v1376_v11, %v1375_v12  ;;  %v1412_v24 = vsel %vm1210_vm14, %v1376_v11, %v1411_v51  ;;  %v8960_v50 = vpop.permute.xlu0 %8959 }
 0x205   :  { %v1053_v40 = vsel %vm1028_vm10, %v1047_v14, %v8937_v15  ;;  %v14252_v22 = vmax.f32 %v10852_v38, 0.0  ;;  %v14253_v0 = vmax.f32 %v10855_v39, 0.0  ;;  %v8952_v19 = vunpack.i.h.bf16 %v8950_v8 }
 0x206   :  { %v1034_v27 = vsel %vm1028_vm10, %v1027_v1, %v8936_v20  ;;  %v1059_v63 = vsel %vm1035_vm11, %v1053_v40, %v8942_v56  ;;  %v1414_v21 = vsel %vm1213_vm15, %v1413_v58, %v1412_v24  ;;  %v8951_v14 = vunpack.i.l.bf16 %v8950_v8  ;;  %v8955_v12 = vpop.permute.xlu1 %8954 }
 0x207   :  { %v1149_v41 = vsel %vm1035_vm11, %v1143_v16, %v14252_v22  ;;  %v1167_v37 = vsel %vm1035_vm11, %v1161_v31, %v14253_v0  ;;  %v1041_v11 = vsel %vm1035_vm11, %v1034_v27, %v8941_v47  ;;  %v1031_v16 = vsel %vm1028_vm10, %v11182_v44, %v8952_v19 }
 0x208   :  { %v11302_v46 = vmax.f32 %v1059_v63, %v1167_v37  ;;  %v11304_v38 = vmax.f32 %v1041_v11, %v1149_v41  ;;  %v8962_v1 = vunpack.i.h.bf16 %v8960_v50  ;;  %v8961_v15 = vunpack.i.l.bf16 %v8960_v50 }
 0x209   :  { %v14254_v58 = vunpack.i.l.bf16 %v11200_v28  ;;  %v14255_v24 = vunpack.i.l.bf16 %v11154_v35  ;;  %v8957_v37 = vunpack.i.h.bf16 %v8955_v12  ;;  %v8956_v19 = vunpack.i.l.bf16 %v8955_v12 }
 0x20a   :  { %v1378_v56 = vrot.slane %v11302_v46, 4  ;;  %v1380_v39 = vrot.slane %v11302_v46, 5  ;;  %v1382_v31 = vrot.slane %v11302_v46, 6  ;;  %v1363_v27 = vrot.slane %v11304_v38, 4 }
 0x20b   :  { %v1033_v47 = vsel %vm1028_vm10, %v1026_v4, %v14254_v58  ;;  %v1365_v41 = vrot.slane %v11304_v38, 5  ;;  %v1367_v8 = vrot.slane %v11304_v38, 6  ;;  %v1369_v51 = vrot.slane %v11304_v38, 7 }
 0x20c   :  { %v11320_v20 = vsel %vm1216_vm0, %v1378_v56, %v1377_v36  ;;  %v1038_v28 = vsel %vm1035_vm11, %v1031_v16, %v14255_v24  ;;  %v1170_v4 = vsel %vm1021_vm9, %v8946_v10, %v8951_v14  ;;  %v1040_v22 = vsel %vm1035_vm11, %v1033_v47, %v8962_v1 }
 0x20d   :  { %v1192_v40 = vmax.f32 %v1038_v28, %v11204_v7  ;;  %v1142_v50 = vsel %vm1028_vm10, %v1136_v61, %v8962_v1  ;;  %v1176_v63 = vsel %vm1028_vm10, %v1170_v4, %v8961_v15  ;;  %v11333_v0 = vsel %vm1216_vm0, %v1380_v39, %v1414_v21 }
 0x20e   :  { %v1148_v36 = vsel %vm1035_vm11, %v1142_v50, %v10815_v13  ;;  %v1182_v14 = vsel %vm1035_vm11, %v1176_v63, %v10921_v60  ;;  %v1050_v1 = vsel %vm1028_vm10, %v11177_v30, %v8956_v19  ;;  %v1068_v21 = vsel %vm1028_vm10, %v1062_v59, %v8957_v37  ;;  %v11354_v63 = vpop.permute.xlu0 %8964 }
 0x20f   :  { %v1284_v10 = vsel %vm1204_vm12, %v1192_v40, 0.0  ;;  %v1285_v11 = vrot.slane %v1192_v40, 1  ;;  %v1287_v7 = vrot.slane %v1192_v40, 2  ;;  %v1289_v61 = vrot.slane %v1192_v40, 3 }
 0x210   :  { %v1198_v16 = vmax.f32 %v1040_v22, %v1148_v36  ;;  %v1332_v58 = vrot.slane %v1192_v40, 4  ;;  %v14256_v47 = vunpack.i.h.bf16 %v11154_v35  ;;  %v1074_v50 = vsel %vm1035_vm11, %v1068_v21, %v8961_v15  ;;  %v8970_v40 = vpop.permute.xlu1 %8969 }
 0x211   :  { %v1286_v56 = vsel %vm1207_vm13, %v1285_v11, %v1284_v10  ;;  %v1329_v13 = vsel %vm1204_vm12, %v1285_v11, 0.0  ;;  %v14257_v10 = vrot.slane %v11231_v45, 4 }
 0x212   :  { %v1056_v12 = vsel %vm1035_vm11, %v1050_v1, %v14256_v47  ;;  %v1288_v24 = vsel %vm1210_vm14, %v1287_v7, %v1286_v56  ;;  %v1330_v60 = vsel %vm1207_vm13, %v1287_v7, %v1329_v13  ;;  %v1356_v28 = vsel %vm1204_vm12, %v1198_v16, 0.0 }
 0x213   :  { %v1357_v4 = vrot.slane %v1198_v16, 1  ;;  %v1290_v30 = vsel %vm1213_vm15, %v1289_v61, %v1288_v24  ;;  %v1331_v59 = vsel %vm1210_vm14, %v1289_v61, %v1330_v60  ;;  %v1359_v22 = vrot.slane %v1198_v16, 2 }
 0x214   :  { %v1333_v35 = vsel %vm1213_vm15, %v1332_v58, %v1331_v59  ;;  %v1361_v37 = vrot.slane %v1198_v16, 3  ;;  %v11362_v11 = vsel %vm1216_vm0, %v14257_v10, %v1290_v30  ;;  %v1404_v15 = vrot.slane %v1198_v16, 4 }
 0x215   :  { %v1358_v36 = vsel %vm1207_vm13, %v1357_v4, %v1356_v28  ;;  %v1401_v19 = vsel %vm1204_vm12, %v1357_v4, 0.0  ;;  %v1193_v56 = vmax.f32 %v1056_v12, %v11208_v2  ;;  %v1194_v13 = vmax.f32 %v1074_v50, %v1182_v14  ;;  %v8985_v50 = vpop.permute.xlu1 %8984 }
 0x216   :  { %v1360_v7 = vsel %vm1210_vm14, %v1359_v22, %v1358_v36  ;;  %v1402_v61 = vsel %vm1207_vm13, %v1359_v22, %v1401_v19  ;;  %v14258_v58 = vrot.slane %v11231_v45, 5  ;;  %v8967_v28 = vunpack.i.h.bf16 %v11354_v63  ;;  %v8975_v22 = vpop.permute.xlu0 %8974 }
 0x217   :  { %v1362_v1 = vsel %vm1213_vm15, %v1361_v37, %v1360_v7  ;;  %v1403_v21 = vsel %vm1210_vm14, %v1361_v37, %v1402_v61  ;;  %v1299_v16 = vsel %vm1204_vm12, %v1193_v56, 0.0  ;;  %v1300_v4 = vrot.slane %v1193_v56, 1 }
 0x218   :  { %v11372_v47 = vsel %vm1216_vm0, %v14258_v58, %v1333_v35  ;;  %v11375_v24 = vsel %vm1216_vm0, %v1363_v27, %v1362_v1  ;;  %v1405_v60 = vsel %vm1213_vm15, %v1404_v15, %v1403_v21  ;;  %v1302_v30 = vrot.slane %v1193_v56, 2 }
 0x219   :  { %v8966_v59 = vunpack.i.l.bf16 %v11354_v63  ;;  %v11384_v2 = vsel %vm1216_vm0, %v1365_v41, %v1405_v60  ;;  %v1314_v14 = vsel %vm1204_vm12, %v1194_v13, 0.0  ;;  %v1315_v12 = vrot.slane %v1194_v13, 1 }
 0x21a   :  { %v1317_v27 = vrot.slane %v1194_v13, 2  ;;  %v1301_v35 = vsel %vm1207_vm13, %v1300_v4, %v1299_v16  ;;  %v1304_v36 = vrot.slane %v1193_v56, 3  ;;  %v1319_v37 = vrot.slane %v1194_v13, 3 }
 0x21b   :  { %v1338_v19 = vsel %vm1204_vm12, %v1300_v4, 0.0  ;;  %v1316_v10 = vsel %vm1207_vm13, %v1315_v12, %v1314_v14  ;;  %v1341_v7 = vrot.slane %v1193_v56, 4  ;;  %v1347_v61 = vsel %vm1204_vm12, %v1315_v12, 0.0 }
 0x21c   :  { %v1339_v63 = vsel %vm1207_vm13, %v1302_v30, %v1338_v19  ;;  %v1303_v15 = vsel %vm1210_vm14, %v1302_v30, %v1301_v35  ;;  %v1318_v1 = vsel %vm1210_vm14, %v1317_v27, %v1316_v10  ;;  %v1348_v58 = vsel %vm1207_vm13, %v1317_v27, %v1347_v61  ;;  %v11407_v61 = vpop.permute.xlu1 %8989 }
 0x21d   :  { %v1340_v21 = vsel %vm1210_vm14, %v1304_v36, %v1339_v63  ;;  %v1349_v60 = vsel %vm1210_vm14, %v1319_v37, %v1348_v58  ;;  %v1350_v16 = vrot.slane %v1194_v13, 4  ;;  %v1063_v4 = vsel %vm1021_vm9, %v10940_v32, %v8967_v28  ;;  %v11405_v13 = vpop.permute.xlu0 %8979 }
 0x21e   :  { %v1045_v14 = vsel %vm1021_vm9, %v10782_v48, %v8966_v59  ;;  %v8972_v56 = vunpack.i.h.bf16 %v8970_v40  ;;  %v8971_v19 = vunpack.i.l.bf16 %v8970_v40  ;;  %v8977_v12 = vunpack.i.h.bf16 %v8975_v22 }
 0x21f   :  { %v8976_v44 = vunpack.i.l.bf16 %v8975_v22  ;;  %v14259_v30 = vunpack.i.h.bf16 %v11158_v23  ;;  %v8987_v10 = vunpack.i.h.bf16 %v8985_v50  ;;  %v8986_v27 = vunpack.i.l.bf16 %v8985_v50 }
 0x220   :  { %v1305_v63 = vsel %vm1213_vm15, %v1304_v36, %v1303_v15  ;;  %v1029_v48 = vsel %vm1028_vm10, %v11225_v52, %v8972_v56  ;;  %v1069_v40 = vsel %vm1028_vm10, %v1063_v4, %v8977_v12  ;;  %v1320_v23 = vsel %vm1213_vm15, %v1319_v37, %v1318_v1 }
 0x221   :  { %v1153_v35 = vsel %vm1021_vm9, %v8966_v59, %v14259_v30  ;;  %v1051_v32 = vsel %vm1028_vm10, %v1045_v14, %v8976_v44  ;;  %v14260_v59 = vunpack.i.h.bf16 %v11238_v62  ;;  %v1171_v50 = vsel %vm1021_vm9, %v8967_v28, %v8971_v19 }
 0x222   :  { %v1057_v36 = vsel %vm1035_vm11, %v1051_v32, %v8986_v27  ;;  %v1159_v15 = vsel %vm1028_vm10, %v1153_v35, %v8986_v27  ;;  %v1075_v44 = vsel %vm1035_vm11, %v1069_v40, %v8987_v10  ;;  %v14261_v58 = vmax.f32 %v10950_v54, 0.0  ;;  %v11439_v27 = vpop.permute.xlu0 %8994 }
 0x223   :  { %v1036_v22 = vsel %vm1035_vm11, %v1029_v48, %v14260_v59  ;;  %v1177_v62 = vsel %vm1028_vm10, %v1171_v50, %v8987_v10  ;;  %v14262_v1 = vmax.f32 %v10943_v55, 0.0  ;;  %v1342_v14 = vsel %vm1213_vm15, %v1341_v7, %v1340_v21  ;;  %v9000_v48 = vpop.permute.xlu1 %8999 }
 0x224   :  { %v11421_v52 = vmax.f32 %v1036_v22, %v11267_v29  ;;  %v1165_v37 = vsel %vm1035_vm11, %v1159_v15, %v14261_v58  ;;  %v1351_v56 = vsel %vm1213_vm15, %v1350_v16, %v1349_v60  ;;  %v8982_v12 = vunpack.i.h.bf16 %v11405_v13 }
 0x225   :  { %v1183_v28 = vsel %vm1035_vm11, %v1177_v62, %v14262_v1  ;;  %v1196_v4 = vmax.f32 %v1057_v36, %v1165_v37 }
 0x226   :  { %v1205_v29 = vsel %vm1204_vm12, %v11421_v52, 0.0  ;;  %v1206_v19 = vrot.slane %v11421_v52, 1  ;;  %v1209_v54 = vrot.slane %v11421_v52, 2  ;;  %v1212_v30 = vrot.slane %v11421_v52, 3 }
 0x227   :  { %v1197_v35 = vmax.f32 %v1075_v44, %v1183_v28  ;;  %v1306_v55 = vrot.slane %v1196_v4, 4  ;;  %v1308_v10 = vrot.slane %v1196_v4, 5  ;;  %v1260_v60 = vrot.slane %v11421_v52, 4 }
 0x228   :  { %v1208_v7 = vsel %vm1207_vm13, %v1206_v19, %v1205_v29  ;;  %v1257_v21 = vsel %vm1204_vm12, %v1206_v19, 0.0  ;;  %v1310_v16 = vrot.slane %v1196_v4, 6  ;;  %v1312_v59 = vrot.slane %v1196_v4, 7 }
 0x229   :  { %v11445_v32 = vsel %vm1210_vm14, %v1209_v54, %v1208_v7  ;;  %v1307_v40 = vsel %vm1216_vm0, %v1306_v55, %v1305_v63  ;;  %v1321_v22 = vrot.slane %v1197_v35, 4  ;;  %v1258_v50 = vsel %vm1207_vm13, %v1209_v54, %v1257_v21  ;;  %v9005_v21 = vpop.permute.xlu0 %9004 }
 0x22a   :  { %v1309_v36 = vsel %vm1219_vm1, %v1308_v10, %v1307_v40  ;;  %v1323_v15 = vrot.slane %v1197_v35, 5  ;;  %v1325_v44 = vrot.slane %v1197_v35, 6  ;;  %v1327_v62 = vrot.slane %v1197_v35, 7  ;;  %v9010_v40 = vpop.permute.xlu1 %9009 }
 0x22b   :  { %v1311_v58 = vsel %vm1222_vm2, %v1310_v16, %v1309_v36  ;;  %v1322_v37 = vsel %vm1216_vm0, %v1321_v22, %v1320_v23  ;;  %v1343_v1 = vsel %vm1216_vm0, %v1308_v10, %v1342_v14  ;;  %v8981_v23 = vunpack.i.l.bf16 %v11405_v13 }
 0x22c   :  { %v11454_v28 = vsel %vm1225_vm3, %v1312_v59, %v1311_v58  ;;  %v1324_v63 = vsel %vm1219_vm1, %v1323_v15, %v1322_v37  ;;  %v1344_v29 = vsel %vm1219_vm1, %v1310_v16, %v1343_v1  ;;  %v1352_v19 = vsel %vm1216_vm0, %v1323_v15, %v1351_v56 }
 0x22d   :  { %v1326_v54 = vsel %vm1222_vm2, %v1325_v44, %v1324_v63  ;;  %v1345_v55 = vsel %vm1222_vm2, %v1312_v59, %v1344_v29  ;;  %v1353_v7 = vsel %vm1219_vm1, %v1325_v44, %v1352_v19  ;;  %v11466_v14 = vsel %vm1210_vm14, %v1212_v30, %v1258_v50 }
 0x22e   :  { %v11469_v10 = vsel %vm1225_vm3, %v1196_v4, %v1345_v55  ;;  %v1354_v56 = vsel %vm1222_vm2, %v1327_v62, %v1353_v7  ;;  %v1049_v16 = vsel %vm1028_vm10, %v11163_v49, %v8982_v12  ;;  %v1328_v59 = vsel %vm1225_vm3, %v1327_v62, %v1326_v54  ;;  %v9015_v55 = vpop.permute.xlu0 %9014 }
 0x22f   :  { %v1355_v22 = vsel %vm1225_vm3, %v1197_v35, %v1354_v56  ;;  %v1030_v13 = vsel %vm1028_vm10, %v11172_v43, %v8981_v23  ;;  %v8992_v36 = vunpack.i.h.bf16 %v11407_v61  ;;  %v8991_v4 = vunpack.i.l.bf16 %v11407_v61 }
 0x230   :  { %v8997_v15 = vunpack.i.h.bf16 %v11439_v27  ;;  %v8996_v44 = vunpack.i.l.bf16 %v11439_v27  ;;  %v9002_v35 = vunpack.i.h.bf16 %v9000_v48  ;;  %v9001_v58 = vunpack.i.l.bf16 %v9000_v48 }
 0x231   :  { %v1055_v49 = vsel %vm1035_vm11, %v1049_v16, %v8992_v36  ;;  %v1157_v12 = vsel %vm1028_vm10, %v11143_v25, %v8992_v36  ;;  %v11487_v37 = vmax.f32 %v1328_v59, %v1355_v22  ;;  %v1037_v43 = vsel %vm1035_vm11, %v1030_v13, %v8991_v4 }
 0x232   :  { %v1139_v62 = vsel %vm1028_vm10, %v11146_v57, %v8991_v4  ;;  %v14263_v61 = vmax.f32 %v10961_v53, 0.0  ;;  %v14264_v27 = vmax.f32 %v10957_v9, 0.0  ;;  %v14265_v25 = vmax.f32 %v10974_v42, 0.0  ;;  %v9020_v57 = vpop.permute.xlu1 %9019 }
 0x233   :  { %v14266_v19 = vmax.f32 %v10995_v5, 0.0  ;;  %v1168_v53 = vsel %vm1021_vm9, %v8996_v44, %v9001_v58  ;;  %v9007_v23 = vunpack.i.h.bf16 %v9005_v21  ;;  %v9006_v9 = vunpack.i.l.bf16 %v9005_v21 }
 0x234   :  { %v1163_v1 = vsel %vm1035_vm11, %v1157_v12, %v14263_v61  ;;  %v1145_v63 = vsel %vm1035_vm11, %v1139_v62, %v14264_v27  ;;  %v1064_v48 = vsel %vm1021_vm9, %v14265_v25, %v8997_v15  ;;  %v1172_v59 = vsel %vm1021_vm9, %v8997_v15, %v9002_v35  ;;  %v9025_v27 = vpop.permute.xlu0 %9024 }
 0x235   :  { %v11498_v29 = vmax.f32 %v1055_v49, %v1163_v1  ;;  %v1060_v54 = vsel %vm1021_vm9, %v14266_v19, %v8996_v44  ;;  %v11506_v7 = vmax.f32 %v1037_v43, %v1145_v63  ;;  %v1070_v21 = vsel %vm1028_vm10, %v1064_v48, %v9007_v23 }
 0x236   :  { %v1066_v4 = vsel %vm1028_vm10, %v1060_v54, %v9006_v9  ;;  %v9012_v44 = vunpack.i.h.bf16 %v9010_v40  ;;  %v9011_v49 = vunpack.i.l.bf16 %v9010_v40  ;;  %v9017_v12 = vunpack.i.h.bf16 %v9015_v55  ;;  %v9030_v63 = vpop.permute.xlu1 %9029 }
 0x237   :  { %v1234_v56 = vrot.slane %v11498_v29, 4  ;;  %v1236_v16 = vrot.slane %v11498_v29, 5  ;;  %v1238_v42 = vrot.slane %v11498_v29, 6  ;;  %v1215_v5 = vrot.slane %v11506_v7, 4 }
 0x238   :  { %v1218_v22 = vrot.slane %v11506_v7, 5  ;;  %v1221_v13 = vrot.slane %v11506_v7, 6  ;;  %v1240_v36 = vrot.slane %v11498_v29, 7  ;;  %v9016_v58 = vunpack.i.l.bf16 %v9015_v55 }
 0x239   :  { %v9022_v43 = vunpack.i.h.bf16 %v9020_v57  ;;  %v9021_v62 = vunpack.i.l.bf16 %v9020_v57  ;;  %v1072_v15 = vsel %vm1035_vm11, %v1066_v4, %v9011_v49  ;;  %v1076_v35 = vsel %vm1035_vm11, %v1070_v21, %v9012_v44 }
 0x23a   :  { %v1174_v61 = vsel %vm1028_vm10, %v1168_v53, %v9011_v49  ;;  %v1178_v1 = vsel %vm1028_vm10, %v1172_v59, %v9012_v44  ;;  %v1224_v25 = vrot.slane %v11506_v7, 7  ;;  %v14267_v48 = vmax.f32 %v11010_v26, 0.0 }
 0x23b   :  { %v14268_v19 = vmax.f32 %v11000_v18, 0.0  ;;  %v14269_v55 = vmax.f32 %v11027_v17, 0.0  ;;  %v14270_v9 = vmax.f32 %v11037_v6, 0.0  ;;  %v1169_v4 = vsel %vm1021_vm9, %v9016_v58, %v9021_v62 }
 0x23c   :  { %v1180_v40 = vsel %vm1035_vm11, %v1174_v61, %v14267_v48  ;;  %v1173_v26 = vsel %vm1021_vm9, %v9017_v12, %v9022_v43  ;;  %v9027_v21 = vunpack.i.h.bf16 %v9025_v27  ;;  %v9026_v44 = vunpack.i.l.bf16 %v9025_v27 }
 0x23d   :  { %v1184_v54 = vsel %vm1035_vm11, %v1178_v1, %v14268_v19  ;;  %v1065_v57 = vsel %vm1021_vm9, %v14269_v55, %v9017_v12  ;;  %v1188_v23 = vmax.f32 %v1072_v15, %v1180_v40  ;;  %v1061_v59 = vsel %vm1021_vm9, %v14270_v9, %v9016_v58  ;;  %vm11757_vm9 = vmor %vm1204_vm12, %vm1210_vm14 }
 0x23e   :  { %v1200_v53 = vmax.f32 %v1076_v35, %v1184_v54  ;;  %v9032_v49 = vunpack.i.h.bf16 %v9030_v63  ;;  %v9031_v17 = vunpack.i.l.bf16 %v9030_v63 }
 0x23f   :  { %v1242_v18 = vsel %vm1204_vm12, %v1188_v23, 0.0  ;;  %v1243_v61 = vrot.slane %v1188_v23, 1  ;;  %v1245_v1 = vrot.slane %v1188_v23, 2  ;;  %v1247_v48 = vrot.slane %v1188_v23, 3 }
 0x240   :  { %v1386_v15 = vsel %vm1204_vm12, %v1200_v53, 0.0  ;;  %v1387_v35 = vrot.slane %v1200_v53, 1  ;;  %v1389_v40 = vrot.slane %v1200_v53, 2  ;;  %v1278_v58 = vrot.slane %v1188_v23, 4 }
 0x241   :  { %v1244_v6 = vsel %vm1207_vm13, %v1243_v61, %v1242_v18  ;;  %v1275_v19 = vsel %vm1204_vm12, %v1243_v61, 0.0  ;;  %v1391_v62 = vrot.slane %v1200_v53, 3  ;;  %v1422_v50 = vrot.slane %v1200_v53, 4 }
 0x242   :  { %v1246_v12 = vsel %vm1210_vm14, %v1245_v1, %v1244_v6  ;;  %v1276_v43 = vsel %vm1207_vm13, %v1245_v1, %v1275_v19  ;;  %v1388_v27 = vsel %vm1207_vm13, %v1387_v35, %v1386_v15  ;;  %v1419_v54 = vsel %vm1204_vm12, %v1387_v35, 0.0  ;;  %vm11789_vm12 = vmor %vm11757_vm9, %vm1216_vm0 }
 0x243   :  { %v1277_v63 = vsel %vm1210_vm14, %v1247_v48, %v1276_v43  ;;  %v1390_v55 = vsel %vm1210_vm14, %v1389_v40, %v1388_v27  ;;  %v1420_v9 = vsel %vm1207_vm13, %v1389_v40, %v1419_v54  ;;  %v1248_v18 = vsel %vm1213_vm15, %v1247_v48, %v1246_v12 }
 0x244   :  { %v1279_v23 = vsel %vm1213_vm15, %v1278_v58, %v1277_v63  ;;  %v1392_v61 = vsel %vm1213_vm15, %v1391_v62, %v1390_v55  ;;  %v1067_v6 = vsel %vm1028_vm10, %v1061_v59, %v9026_v44  ;;  %v1421_v1 = vsel %vm1210_vm14, %v1391_v62, %v1420_v9  ;;  %vm11821_vm14 = vmor %vm11789_vm12, %vm1222_vm2 }
 0x245   :  { %v1071_v15 = vsel %vm1028_vm10, %v1065_v57, %v9027_v21  ;;  %v1073_v35 = vsel %vm1035_vm11, %v1067_v6, %v9031_v17  ;;  %v1175_v19 = vsel %vm1028_vm10, %v1169_v4, %v9031_v17  ;;  %v1179_v53 = vsel %vm1028_vm10, %v1173_v26, %v9032_v49 }
 0x246   :  { %v1077_v43 = vsel %vm1035_vm11, %v1071_v15, %v9032_v49  ;;  %v14271_v48 = vmax.f32 %v11052_v33, 0.0  ;;  %v1214_v59 = vsel %vm1213_vm15, %v1212_v30, %v11445_v32  ;;  %v14272_v44 = vmax.f32 %v11042_v34, 0.0 }
 0x247   :  { %v1217_v4 = vsel %vm1216_vm0, %v1215_v5, %v1214_v59  ;;  %v1235_v33 = vsel %vm1216_vm0, %v1234_v56, %v11260_v3  ;;  %v1423_v26 = vsel %vm1213_vm15, %v1422_v50, %v1421_v1 }
 0x248   :  { %v1181_v40 = vsel %vm1035_vm11, %v1175_v19, %v14271_v48  ;;  %v1185_v57 = vsel %vm1035_vm11, %v1179_v53, %v14272_v44  ;;  %v1220_v30 = vsel %vm1219_vm1, %v1218_v22, %v1217_v4  ;;  %v1237_v34 = vsel %vm1219_vm1, %v1236_v16, %v1235_v33  ;;  %v14273_v33 = vld [vmem:[#allocation11_spill] sm:$0xff]  ;;  %vm11772_vm11 = vmor %vm1503_vm8, %vm1504_vm6 }
 0x249   :  { %v1191_v21 = vmax.f32 %v1073_v35, %v1181_v40  ;;  %v1203_v49 = vmax.f32 %v1077_v43, %v1185_v57  ;;  %v1223_v56 = vsel %vm1222_vm2, %v1221_v13, %v1220_v30  ;;  %v1239_v63 = vsel %vm1222_vm2, %v1238_v42, %v1237_v34  ;;  %vm11802_vm13 = vmor %vm11772_vm11, %vm1506_vm7 }
 0x24a   :  { %v1261_v44 = vsel %vm1213_vm15, %v1260_v60, %v11466_v14  ;;  %v1226_v4 = vsel %vm1225_vm3, %v1224_v25, %v1223_v56  ;;  %v1241_v52 = vsel %vm1225_vm3, %v1240_v36, %v1239_v63  ;;  %vm1577_vm15 = vsmask.f32 256 }
 0x24b   :  { %v1249_v32 = vrot.slane %v1191_v21, 4  ;;  %v1251_v17 = vrot.slane %v1191_v21, 5  ;;  %v1253_v58 = vrot.slane %v1191_v21, 6  ;;  %v1255_v5 = vrot.slane %v1191_v21, 7 }
 0x24c   :  { %v1393_v62 = vrot.slane %v1203_v49, 4  ;;  %v1395_v12 = vrot.slane %v1203_v49, 5  ;;  %v1397_v27 = vrot.slane %v1203_v49, 6  ;;  %v1399_v54 = vrot.slane %v1203_v49, 7 }
 0x24d   :  { %v1250_v3 = vsel %vm1216_vm0, %v1249_v32, %v1248_v18  ;;  %v1280_v50 = vsel %vm1216_vm0, %v1251_v17, %v1279_v23 }
 0x24e   :  { %v1252_v55 = vsel %vm1219_vm1, %v1251_v17, %v1250_v3  ;;  %v1281_v9 = vsel %vm1219_vm1, %v1253_v58, %v1280_v50  ;;  %v1394_v6 = vsel %vm1216_vm0, %v1393_v62, %v1392_v61  ;;  %v1424_v1 = vsel %vm1216_vm0, %v1395_v12, %v1423_v26 }
 0x24f   :  { %v1254_v18 = vsel %vm1222_vm2, %v1253_v58, %v1252_v55  ;;  %v1282_v23 = vsel %vm1222_vm2, %v1255_v5, %v1281_v9  ;;  %v1396_v15 = vsel %vm1219_vm1, %v1395_v12, %v1394_v6  ;;  %v1425_v35 = vsel %vm1219_vm1, %v1397_v27, %v1424_v1 }
 0x250   :  { %v1256_v19 = vsel %vm1225_vm3, %v1255_v5, %v1254_v18  ;;  %v1283_v43 = vsel %vm1225_vm3, %v1191_v21, %v1282_v23  ;;  %v1398_v53 = vsel %vm1222_vm2, %v1397_v27, %v1396_v15  ;;  %v1426_v48 = vsel %vm1222_vm2, %v1399_v54, %v1425_v35 }
 0x251   :  { %v1400_v61 = vsel %vm1225_vm3, %v1399_v54, %v1398_v53  ;;  %v1427_v40 = vsel %vm1225_vm3, %v1203_v49, %v1426_v48  ;;  %v1430_v59 = vmax.f32 %v1256_v19, %v1283_v43  ;;  %v1262_v21 = vsel %vm1216_vm0, %v1218_v22, %v1261_v44 }
 0x252   :  { %v1436_v57 = vmax.f32 %v1400_v61, %v1427_v40  ;;  %v1271_v26 = vsel %vm1216_vm0, %v1236_v16, %v14273_v33  ;;  %v1263_v60 = vsel %vm1219_vm1, %v1221_v13, %v1262_v21  ;;  %v14274_v22 = vrot.slane %v11231_v45, 5 }
 0x253   :  { %v1272_v14 = vsel %vm1219_vm1, %v1238_v42, %v1271_v26  ;;  %v1439_v30 = vpack.c.bf16 %v11487_v37, %v1430_v59  ;;  %v1264_v16 = vsel %vm1222_vm2, %v1224_v25, %v1263_v60  ;;  %v14275_v13 = vrot.slane %v11231_v45, 6 }
 0x254   :  { %v1294_v49 = vsel %vm1219_vm1, %v14274_v22, %v11362_v11  ;;  %v1273_v34 = vsel %vm1222_vm2, %v1240_v36, %v1272_v14  ;;  %v1442_v42 = vpack.c.bf16 %v1436_v57, %v1436_v57  ;;  %v1265_v17 = vsel %vm1225_vm3, %v11506_v7, %v1264_v16 }
 0x255   :  { %v1296_v32 = vsel %vm1222_vm2, %v14275_v13, %v1294_v49  ;;  %v1274_v11 = vsel %vm1225_vm3, %v11498_v29, %v1273_v34  ;;  %v14276_v58 = vmov %v14275_v13  ;;  %v14277_v5 = vrot.slane %v11231_v45, 7 }
 0x256   :  { %v1335_v25 = vsel %vm1219_vm1, %v14276_v58, %v11372_v47  ;;  %v1366_v7 = vsel %vm1219_vm1, %v1365_v41, %v11375_v24  ;;  %v1381_v29 = vsel %vm1219_vm1, %v1380_v39, %v11320_v20  ;;  %v1407_v41 = vsel %vm1219_vm1, %v1367_v8, %v11384_v2 }
 0x257   :  { %v1298_v36 = vsel %vm1225_vm3, %v14277_v5, %v1296_v32  ;;  %v14278_v62 = vmov %v14277_v5  ;;  %v1368_v27 = vsel %vm1222_vm2, %v1367_v8, %v1366_v7  ;;  %v1383_v54 = vsel %vm1222_vm2, %v1382_v31, %v1381_v29  ;;  %v9224_v7 = vld [vmem:[%s14196_s3 + $0x224] ss:$16 sps:$4 sm:$0xff]  }
 0x258   :  { %v1336_v12 = vsel %vm1222_vm2, %v14278_v62, %v1335_v25  ;;  %v1370_v39 = vsel %vm1225_vm3, %v1369_v51, %v1368_v27  ;;  %v14279_v20 = vrot.slane %v11302_v46, 7  ;;  %v1408_v24 = vsel %vm1222_vm2, %v1369_v51, %v1407_v41 }
 0x259   :  { %v1337_v47 = vsel %vm1225_vm3, %v11231_v45, %v1336_v12  ;;  %v1416_v3 = vsel %vm1219_vm1, %v1382_v31, %v11333_v0  ;;  %v1409_v8 = vsel %vm1225_vm3, %v11304_v38, %v1408_v24  ;;  %v1428_v56 = vmax.f32 %v1226_v4, %v1265_v17  ;;  %v14281_v31 = vld [vmem:[#allocation10_spill] sm:$0xff] }
 0x25a   :  { %v1385_v45 = vsel %vm1225_vm3, %v14279_v20, %v1383_v54  ;;  %v14280_v2 = vmov %v14279_v20  ;;  %v1429_v63 = vmax.f32 %v1241_v52, %v1274_v11  ;;  %v1431_v9 = vmax.f32 %v1298_v36, %v1337_v47  ;;  %v9219_v12 = vld [vmem:[%s14196_s3 + $0x208] ss:$16 sps:$4 sm:$0xff]   ;;  %v9227_v54 = vld [vmem:[%s14196_s3 + $0x22c] ss:$16 sps:$4 sm:$0xff]  }
 0x25b   :  { %v1417_v50 = vsel %vm1222_vm2, %v14280_v2, %v1416_v3  ;;  %v1434_v6 = vmax.f32 %v1370_v39, %v1409_v8  ;;  %v7926_v51 = vpack.c.bf16 %v11487_v37, %v11487_v37  ;;  %v11699_v0 = vrot.slane %v1439_v30, %v14281_v31 }
 0x25c   :  { %v1418_v55 = vsel %vm1225_vm3, %v11302_v46, %v1417_v50  ;;  %v7924_v18 = vpack.c.bf16 %v1429_v63, %v1428_v56  ;;  %v14282_v38 = vmax.f32 %v11454_v28, %v11469_v10  ;;  %v11708_v35 = vrot.slane %v1442_v42, %v14281_v31  ;;  %v9216_v42 = vld [vmem:[%s14196_s3 + $0x200] ss:$16 sps:$4 sm:$0xff]  }
 0x25d   :  { %v1435_v1 = vmax.f32 %v1385_v45, %v1418_v55  ;;  %v11705_v15 = vrot.slane %v7926_v51, %v14281_v31  ;;  %v1623_v40 = vrot.slane %v11699_v0, %v14281_v31  ;;  %v9222_v56 = vld [vmem:[%s14196_s3 + $0x220] ss:$16 sps:$4 sm:$0xff]   ;;  %vm1578_vm0 = vsmask.f32 2312  ;;  %v9230_v51 = vld [vmem:[%s14196_s3 + $0x244] ss:$16 sps:$4 sm:$0xff]  }
 0x25e   :  { %v7925_v23 = vpack.c.bf16 %v14282_v38, %v1431_v9  ;;  %v1458_v46 = vrot.slane %v7924_v18, %v14281_v31  ;;  %vm11862_vm1 = vmor %vm1577_vm15, %vm1578_vm0  ;;  %vm1580_vm2 = vsmask.f32 4368  ;;  %vm1582_vm3 = vsmask.f32 6424  ;;  %v9245_v55 = vld [vmem:[%s14196_s3 + $0x28c] ss:$16 sps:$4 sm:$0xff]  }
 0x25f   :  { %v7927_v19 = vpack.c.bf16 %v1435_v1, %v1434_v6  ;;  %v9225_v6 = vld [vmem:[%s14196_s3 + $0x228] ss:$16 sps:$4 sm:$0xff]   ;;  %vm11893_vm4 = vmor %vm11862_vm1, %vm1580_vm2 }
 0x260   :  { %v11712_v37 = vrot.slane %v7925_v23, %v14281_v31  ;;  %v11715_v43 = vcombine.low %v1458_v46, %v11699_v0  ;;  %v11718_v28 = vcombine.high %v1458_v46, %v11699_v0  ;;  %v1616_v48 = vrot.slane %v1458_v46, %v14281_v31  ;;  %vm11921_vm5 = vmor %vm11893_vm4, %vm1582_vm3 }
 0x261   :  { %v11721_v10 = vrot.slane %v7927_v19, %v14281_v31 }
 0x262   :  { %v11725_v53 = vcombine.high %v11712_v37, %v11705_v15  ;;  %v11730_v61 = vcombine.low %v11712_v37, %v11705_v15  ;;  %v1509_v57 = vshrl.u32 %v11715_v43, 16  ;;  %v1512_v4 = vshll.u32 %v11715_v43, 16 }
 0x263   :  { %v11736_v59 = vcombine.low %v11721_v10, %v11708_v35  ;;  %v11740_v44 = vcombine.high %v11721_v10, %v11708_v35  ;;  %v1518_v33 = vshll.u32 %v11718_v28, 16  ;;  %v1522_v26 = vshrl.u32 %v11718_v28, 16 }
 0x264   :  { %v7932_v21 = vcombine.low %v11725_v53, %v11721_v10  ;;  %v1528_v52 = vshll.u32 %v11730_v61, 16  ;;  %v1511_v60 = vrot.slane %v1509_v57, 6  ;;  %v1514_v14 = vrot.slane %v1512_v4, 7 }
 0x265   :  { %v1533_v22 = vshrl.u32 %v11725_v53, 16  ;;  %v1536_v49 = vshll.u32 %v11725_v53, 16  ;;  %v1520_v34 = vrot.slane %v1518_v33, 7  ;;  %v1524_v13 = vrot.slane %v1522_v26, 6 }
 0x266   :  { %v1630_v16 = vrot.slane %v7932_v21, %v14281_v31  ;;  %v1530_v32 = vrot.slane %v1528_v52, 7  ;;  %v1515_v11 = vor.u32 %v1514_v14, %v1511_v60  ;;  %v1542_v5 = vshll.u32 %v11736_v59, 16 }
 0x267   :  { %v1535_v58 = vrot.slane %v1533_v22, 6  ;;  %v1538_v25 = vrot.slane %v1536_v49, 7  ;;  %v1525_v29 = vor.u32 %v1524_v13, %v1520_v34  ;;  %v1546_v47 = vshrl.u32 %v11736_v59, 16 }
 0x268   :  { %v1638_v36 = vcombine.low %v1616_v48, %v1630_v16  ;;  %v1639_v62 = vcombine.high %v1616_v48, %v1630_v16  ;;  %v1516_v41 = vrot.slane %v1515_v11, 2  ;;  %v1544_v20 = vrot.slane %v1542_v5, 7 }
 0x269   :  { %v1539_v39 = vor.u32 %v1538_v25, %v1535_v58  ;;  %v1552_v45 = vshll.u32 %v11740_v44, 16  ;;  %v1526_v3 = vrot.slane %v1525_v29, 2  ;;  %v1548_v8 = vrot.slane %v1546_v47, 6  ;;  %v9236_v58 = vld [vmem:[%s14196_s3 + $0x264] ss:$16 sps:$4 sm:$0xff]  }
 0x26a   :  { %4730 = vmatprep.mubr.bf16.mxu1 %v1639_v62  ;;  %5074 = vmatprep.mubr.bf16.mxu0 %v1639_v62  ;;  %v7933_v2 = vcombine.high %v11705_v15, %v11736_v59  ;;  %v7928_v50 = vrot.slane %v11715_v43, 9  ;;  %v11816_v63 = vsel %vm11802_vm13, %v1516_v41, %v1520_v34  ;;  %v7934_v9 = vcombine.low %v11718_v28, %v11712_v37  ;;  %v9233_v15 = vld [vmem:[%s14196_s3 + $0x24c] ss:$16 sps:$4 sm:$0xff]   ;;  %v9248_v37 = vld [vmem:[%s14196_s3 + $0x2a4] ss:$16 sps:$4 sm:$0xff]  }
 0x26b   :  { %4731 = vmatmul.mubr.bf16.vlgmr.msra.gmra.mrb[12].mxu1 %v1638_v36  ;;  %5075 = vmatmul.mubr.bf16.vlgmr.msra.gmra.mrb[24].mxu0 %v1638_v36  ;;  %v11835_v1 = vsel %vm11802_vm13, %v1526_v3, %v1530_v32  ;;  %v1549_v18 = vor.u32 %v1548_v8, %v1544_v20  ;;  %v1565_v23 = vrot.slane %v11718_v28, 7  ;;  %v1540_v46 = vrot.slane %v1539_v39, 2  ;;  %v9231_v32 = vld [vmem:[%s14196_s3 + $0x248] ss:$16 sps:$4 sm:$0xff]   ;;  %v9239_v25 = vld [vmem:[%s14196_s3 + $0x26c] ss:$16 sps:$4 sm:$0xff]  }
 0x26c   :  { %4742 = vmatpush1.bf16.msra.mxu1 %v9216_v42  ;;  %5086 = vmatpush1.bf16.msra.mxu0 %v9219_v12  ;;  %v1637_v38 = vrot.slane %v7933_v2, %v14281_v31  ;;  %v1554_v19 = vrot.slane %v1552_v45, 7  ;;  %v1644_v48 = vcombine.low %v11816_v63, %v11835_v1  ;;  %v1568_v4 = vrot.slane %v11730_v61, 7  ;;  %v9234_v3 = vld [vmem:[%s14196_s3 + $0x260] ss:$16 sps:$4 sm:$0xff]   ;;  %v9237_v8 = vld [vmem:[%s14196_s3 + $0x268] ss:$16 sps:$4 sm:$0xff]  }
 0x26d   :  { %4743 = vmatprep.subr.bf16.mxu1 %v9224_v7  ;;  %5087 = vmatprep.subr.bf16.mxu0 %v9227_v54  ;;  %v1550_v21 = vrot.slane %v1549_v18, 2  ;;  %v1566_v14 = vsel %vm11821_vm14, %v7928_v50, %v1565_v23  ;;  %v1567_v49 = vrot.slane %v1565_v23, 2  ;;  %v11856_v30 = vsel %vm11802_vm13, %v1540_v46, %v1544_v20  ;;  %v9251_v28 = vld [vmem:[%s14196_s3 + $0x2ac] ss:$16 sps:$4 sm:$0xff]  }
 0x26e   :  { %v11850_v60 = vcombine.low %v1623_v40, %v1637_v38  ;;  %v7929_v16 = vrot.slane %v11725_v53, 9  ;;  %v1572_v34 = vrot.slane %v11736_v59, 7  ;;  %v9228_v40 = vld [vmem:[%s14196_s3 + $0x240] ss:$16 sps:$4 sm:$0xff]   ;;  %v1654_v17 = vrot.slane %v1644_v48, %v14281_v31  ;;  %v9269_v18 = vld [vmem:[%s14196_s3 + $0x30c] ss:$16 sps:$4 sm:$0xff]  }
 0x26f   :  { %v11874_v42 = vsel %vm11802_vm13, %v1550_v21, %v1554_v19  ;;  %v1569_v11 = vsel %vm11821_vm14, %v1567_v49, %v1568_v4  ;;  %v1575_v7 = vrot.slane %v11740_v44, 7  ;;  %v1586_v41 = vrot.slane %v1522_v26, 7 }
 0x270   :  { %4744 = vmatpush1.bf16.msra.mxu1 %v9222_v56  ;;  %5088 = vmatpush1.bf16.msra.mxu0 %v9225_v6  ;;  %v1646_v36 = vcombine.low %v11856_v30, %v11874_v42  ;;  %v1573_v62 = vsel %vm11821_vm14, %v7929_v16, %v1572_v34  ;;  %v1574_v12 = vrot.slane %v1572_v34, 2  ;;  %v1682_v29 = vcombine.low %v1566_v14, %v1569_v11  ;;  %v9242_v56 = vld [vmem:[%s14196_s3 + $0x284] ss:$16 sps:$4 sm:$0xff]  }
 0x271   :  { %4745 = vmatprep.subr.bf16.mxu1 %v9230_v51  ;;  %5089 = vmatprep.subr.bf16.mxu0 %v9233_v15  ;;  %v1683_v27 = vcombine.high %v1566_v14, %v1569_v11  ;;  %v1590_v39 = vshrl.u32 %v11730_v61, 16  ;;  %v7930_v38 = vrot.slane %v1509_v57, 9  ;;  %v1589_v23 = vrot.slane %v1586_v41, 2  ;;  %v9240_v57 = vld [vmem:[%s14196_s3 + $0x280] ss:$16 sps:$4 sm:$0xff]  }
 0x272   :  { %v1668_v20 = vrot.slane %v1646_v36, %v14281_v31  ;;  %v1576_v24 = vsel %vm11821_vm14, %v1574_v12, %v1575_v7  ;;  %v1692_v26 = vrot.slane %v1682_v29, %v14281_v31  ;;  %v1587_v46 = vor.u32 %v1586_v41, %v1518_v33  ;;  %v9243_v33 = vld [vmem:[%s14196_s3 + $0x288] ss:$16 sps:$4 sm:$0xff]   ;;  %v9252_v41 = vld [vmem:[%s14196_s3 + $0x2c0] ss:$16 sps:$4 sm:$0xff]  }
 0x273   :  { %v1684_v2 = vcombine.low %v1573_v62, %v1576_v24  ;;  %v1685_v50 = vcombine.high %v1573_v62, %v1576_v24  ;;  %v1592_v19 = vrot.slane %v1590_v39, 7  ;;  %v1597_v48 = vrot.slane %v1546_v47, 7  ;;  %v9255_v39 = vld [vmem:[%s14196_s3 + $0x2c8] ss:$16 sps:$4 sm:$0xff]   ;;  %v9263_v24 = vld [vmem:[%s14196_s3 + $0x2ec] ss:$16 sps:$4 sm:$0xff]  }
 0x274   :  { %4746 = vmatpush1.bf16.msra.mxu1 %v9228_v40  ;;  %5090 = vmatpush1.bf16.msra.mxu0 %v9231_v32  ;;  %v1676_v6 = vcombine.low %v1654_v17, %v1668_v20  ;;  %v11916_v51 = vcombine.high %v1654_v17, %v1668_v20  ;;  %v1601_v4 = vshrl.u32 %v11740_v44, 16  ;;  %v1699_v21 = vrot.slane %v1683_v27, %v14281_v31  ;;  %v9260_v20 = vld [vmem:[%s14196_s3 + $0x2e4] ss:$16 sps:$4 sm:$0xff]  }
 0x275   :  { %4747 = vmatprep.subr.bf16.mxu1 %v9236_v58  ;;  %5091 = vmatprep.subr.bf16.mxu0 %v9239_v25  ;;  %v1706_v15 = vrot.slane %v1684_v2, %v14281_v31  ;;  %v1713_v14 = vrot.slane %v1685_v50, %v14281_v31  ;;  %v1768_v43 = vrot.slane %v7934_v9, %v14281_v31  ;;  %v7931_v34 = vrot.slane %v1533_v22, 9 }
 0x276   :  { %4773 = vmatprep.mubr.bf16.mxu1 %v1676_v6  ;;  %5117 = vmatprep.mubr.bf16.mxu0 %v1676_v6  ;;  %v1588_v16 = vsel %vm11921_vm5, %v7930_v38, %v1587_v46  ;;  %v1593_v9 = vor.u32 %v1592_v19, %v1528_v52  ;;  %v1598_v13 = vor.u32 %v1597_v48, %v1542_v5  ;;  %v1600_v32 = vrot.slane %v1597_v48, 2  ;;  %v9246_v52 = vld [vmem:[%s14196_s3 + $0x2a0] ss:$16 sps:$4 sm:$0xff]   ;;  %v9266_v6 = vld [vmem:[%s14196_s3 + $0x304] ss:$16 sps:$4 sm:$0xff]  }
 0x277   :  { %v11945_v47 = vcombine.high %v1692_v26, %v1706_v15  ;;  %v11947_v49 = vcombine.low %v1692_v26, %v1706_v15  ;;  %v11963_v40 = vcombine.low %v1699_v21, %v1713_v14  ;;  %v1603_v17 = vrot.slane %v1601_v4, 7  ;;  %v9264_v38 = vld [vmem:[%s14196_s3 + $0x300] ss:$16 sps:$4 sm:$0xff]   ;;  %v9272_v15 = vld [vmem:[%s14196_s3 + $0x324] ss:$16 sps:$4 sm:$0xff]  }
 0x278   :  { %4748 = vmatpush1.bf16.msra.mxu1 %v9234_v3  ;;  %5092 = vmatpush1.bf16.msra.mxu0 %v9237_v8  ;;  %v7935_v11 = vcombine.high %v11699_v0, %v11730_v61  ;;  %v1594_v58 = vsel %vm11921_vm5, %v1589_v23, %v1593_v9  ;;  %v1599_v25 = vsel %vm11921_vm5, %v7931_v34, %v1598_v13  ;;  %v9249_v0 = vld [vmem:[%s14196_s3 + $0x2a8] ss:$16 sps:$4 sm:$0xff]   ;;  %v9275_v46 = vld [vmem:[%s14196_s3 + $0x32c] ss:$16 sps:$4 sm:$0xff]   ;;  %v9270_v19 = vld [vmem:[%s14196_s3 + $0x320] ss:$16 sps:$4 sm:$0xff]  }
 0x279   :  { %4749 = vmatprep.subr.bf16.mxu1 %v9242_v56  ;;  %5093 = vmatprep.subr.bf16.mxu0 %v9245_v55  ;;  %v1782_v53 = vrot.slane %v11721_v10, %v14281_v31  ;;  %v1789_v59 = vrot.slane %v11708_v35, %v14281_v31  ;;  %v1604_v61 = vor.u32 %v1603_v17, %v1552_v45  ;;  %v9254_v35 = vld [vmem:[%s14196_s3 + $0x2c4] ss:$16 sps:$4 sm:$0xff]   ;;  %v9257_v10 = vld [vmem:[%s14196_s3 + $0x2cc] ss:$16 sps:$4 sm:$0xff]   ;;  %v9258_v56 = vld [vmem:[%s14196_s3 + $0x2e0] ss:$16 sps:$4 sm:$0xff]  }
 0x27a   :  { %v1720_v22 = vcombine.low %v1588_v16, %v1594_v58  ;;  %v1721_v5 = vcombine.high %v1588_v16, %v1594_v58  ;;  %v1775_v12 = vrot.slane %v7935_v11, %v14281_v31  ;;  %v9261_v55 = vld [vmem:[%s14196_s3 + $0x2e8] ss:$16 sps:$4 sm:$0xff]   ;;  %v9278_v4 = vld [vmem:[%s14196_s3 + $0x344] ss:$16 sps:$4 sm:$0xff]   ;;  %v9281_v21 = vld [vmem:[%s14196_s3 + $0x34c] ss:$16 sps:$4 sm:$0xff]  }
 0x27b   :  { %v11989_v36 = vcombine.high %v1768_v43, %v1782_v53  ;;  %v11991_v62 = vcombine.low %v1768_v43, %v1782_v53  ;;  %v1605_v44 = vsel %vm11921_vm5, %v1600_v32, %v1604_v61  ;;  %v9267_v23 = vld [vmem:[%s14196_s3 + $0x308] ss:$16 sps:$4 sm:$0xff]   ;;  %v9276_v14 = vld [vmem:[%s14196_s3 + $0x340] ss:$16 sps:$4 sm:$0xff]   ;;  %v9293_v9 = vld [vmem:[%s14196_s3 + $0x38c] ss:$16 sps:$4 sm:$0xff]  }
 0x27c   :  { %4750 = vmatpush1.bf16.msra.mxu1 %v9240_v57  ;;  %5094 = vmatpush1.bf16.msra.mxu0 %v9243_v33  ;;  %v1730_v45 = vrot.slane %v1720_v22, %v14281_v31  ;;  %v1722_v7 = vcombine.low %v1599_v25, %v1605_v44  ;;  %v1723_v29 = vcombine.high %v1599_v25, %v1605_v44  ;;  %v9273_v48 = vld [vmem:[%s14196_s3 + $0x328] ss:$16 sps:$4 sm:$0xff]   ;;  %v9284_v57 = vld [vmem:[%s14196_s3 + $0x364] ss:$16 sps:$4 sm:$0xff]   ;;  %v9287_v33 = vld [vmem:[%s14196_s3 + $0x36c] ss:$16 sps:$4 sm:$0xff]  }
 0x27d   :  { %4751 = vmatprep.subr.bf16.mxu1 %v9248_v37  ;;  %5095 = vmatprep.subr.bf16.mxu0 %v9251_v28  ;;  %v1737_v27 = vrot.slane %v1721_v5, %v14281_v31  ;;  %v11998_v54 = vcombine.low %v1775_v12, %v1789_v59  ;;  %v9279_v43 = vld [vmem:[%s14196_s3 + $0x348] ss:$16 sps:$4 sm:$0xff]   ;;  %v9282_v16 = vld [vmem:[%s14196_s3 + $0x360] ss:$16 sps:$4 sm:$0xff]   ;;  %v9290_v28 = vld [vmem:[%s14196_s3 + $0x384] ss:$16 sps:$4 sm:$0xff]   ;;  %v1645_v22 = vcombine.high %v11816_v63, %v11835_v1 }
 0x27e   :  { %v1744_v3 = vrot.slane %v1722_v7, %v14281_v31  ;;  %v1751_v8 = vrot.slane %v1723_v29, %v14281_v31  ;;  %v9285_v37 = vld [vmem:[%s14196_s3 + $0x368] ss:$16 sps:$4 sm:$0xff]   ;;  %v9288_v34 = vld [vmem:[%s14196_s3 + $0x380] ss:$16 sps:$4 sm:$0xff]   ;;  %v9296_v32 = vld [vmem:[%s14196_s3 + $0x3a4] ss:$16 sps:$4 sm:$0xff]   ;;  %v1647_v5 = vcombine.high %v11856_v30, %v11874_v42 }
 0x27f   :  { %v9291_v13 = vld [vmem:[%s14196_s3 + $0x388] ss:$16 sps:$4 sm:$0xff]   ;;  %v9299_v17 = vld [vmem:[%s14196_s3 + $0x3ac] ss:$16 sps:$4 sm:$0xff]   ;;  %v9294_v11 = vld [vmem:[%s14196_s3 + $0x3a0] ss:$16 sps:$4 sm:$0xff]   ;;  %v1661_v1 = vrot.slane %v1645_v22, %v14281_v31 }
 0x280   :  { %4752 = vmatpush1.bf16.msra.mxu1 %v9246_v52  ;;  %5096 = vmatpush1.bf16.msra.mxu0 %v9249_v0  ;;  %v12014_v2 = vcombine.low %v1730_v45, %v1744_v3  ;;  %v12016_v50 = vcombine.low %v1737_v27, %v1751_v8  ;;  %v12018_v26 = vcombine.high %v1730_v45, %v1744_v3  ;;  %v9297_v58 = vld [vmem:[%s14196_s3 + $0x3a8] ss:$16 sps:$4 sm:$0xff]   ;;  %v9302_v25 = vld [vmem:[%s14196_s3 + $0x3c4] ss:$16 sps:$4 sm:$0xff]   ;;  %v9305_v53 = vld [vmem:[%s14196_s3 + $0x3cc] ss:$16 sps:$4 sm:$0xff]  }
 0x281   :  { %4753 = vmatprep.subr.bf16.mxu1 %v9254_v35  ;;  %5097 = vmatprep.subr.bf16.mxu0 %v9257_v10  ;;  %v9300_v59 = vld [vmem:[%s14196_s3 + $0x3c0] ss:$16 sps:$4 sm:$0xff]   ;;  %v9303_v52 = vld [vmem:[%s14196_s3 + $0x3c8] ss:$16 sps:$4 sm:$0xff]   ;;  %v9308_v0 = vld [vmem:[%s14196_s3 + $0x3e4] ss:$16 sps:$4 sm:$0xff]   ;;  %v1675_v30 = vrot.slane %v1647_v5, %v14281_v31 }
 0x282   :  { %v9311_v61 = vld [vmem:[%s14196_s3 + $0x3ec] ss:$16 sps:$4 sm:$0xff]   ;;  %v9306_v35 = vld [vmem:[%s14196_s3 + $0x3e0] ss:$16 sps:$4 sm:$0xff]   ;;  %v9309_v10 = vld [vmem:[%s14196_s3 + $0x3e8] ss:$16 sps:$4 sm:$0xff]  }
 0x283   :  { %v9314_v12 = vld [vmem:[%s14196_s3 + $0x404] ss:$16 sps:$4 sm:$0xff]   ;;  %v9317_v63 = vld [vmem:[%s14196_s3 + $0x40c] ss:$16 sps:$4 sm:$0xff]   ;;  %v9312_v42 = vld [vmem:[%s14196_s3 + $0x400] ss:$16 sps:$4 sm:$0xff]   ;;  %v1678_v45 = vcombine.low %v1661_v1, %v1675_v30 }
 0x284   :  { %4754 = vmatpush1.bf16.msra.mxu1 %v9252_v41  ;;  %5098 = vmatpush1.bf16.msra.mxu0 %v9255_v39  ;;  %v9315_v44 = vld [vmem:[%s14196_s3 + $0x408] ss:$16 sps:$4 sm:$0xff]   ;;  %v9320_v7 = vld [vmem:[%s14196_s3 + $0x424] ss:$16 sps:$4 sm:$0xff]   ;;  %v9323_v29 = vld [vmem:[%s14196_s3 + $0x42c] ss:$16 sps:$4 sm:$0xff]  }
 0x285   :  { %4755 = vmatprep.subr.bf16.mxu1 %v9260_v20  ;;  %5099 = vmatprep.subr.bf16.mxu0 %v9263_v24  ;;  %v9318_v27 = vld [vmem:[%s14196_s3 + $0x420] ss:$16 sps:$4 sm:$0xff]   ;;  %v9321_v41 = vld [vmem:[%s14196_s3 + $0x428] ss:$16 sps:$4 sm:$0xff]   ;;  %v9326_v39 = vld [vmem:[%s14196_s3 + $0x444] ss:$16 sps:$4 sm:$0xff]  }
 0x286   :  { %v9324_v20 = vld [vmem:[%s14196_s3 + $0x440] ss:$16 sps:$4 sm:$0xff]   ;;  %v9327_v24 = vld [vmem:[%s14196_s3 + $0x448] ss:$16 sps:$4 sm:$0xff]   ;;  %v9332_v3 = vld [vmem:[%s14196_s3 + $0x464] ss:$16 sps:$4 sm:$0xff]  }
 0x287   :  { %v9335_v8 = vld [vmem:[%s14196_s3 + $0x46c] ss:$16 sps:$4 sm:$0xff]   ;;  %v9378_v22 = vld [vmem:[%s14196_s3 + $0x560] ss:$16 sps:$4 sm:$0xff]   ;;  %v9381_v5 = vld [vmem:[%s14196_s3 + $0x568] ss:$16 sps:$4 sm:$0xff]  }
 0x288   :  { %4756 = vmatpush1.bf16.msra.mxu1 %v9258_v56  ;;  %5100 = vmatpush1.bf16.msra.mxu0 %v9261_v55  ;;  %v9330_v56 = vld [vmem:[%s14196_s3 + $0x460] ss:$16 sps:$4 sm:$0xff]   ;;  %v9333_v55 = vld [vmem:[%s14196_s3 + $0x468] ss:$16 sps:$4 sm:$0xff]   ;;  %v9392_v1 = vld [vmem:[%s14196_s3 + $0x5a4] ss:$16 sps:$4 sm:$0xff]  }
 0x289   :  { %4757 = vmatprep.subr.bf16.mxu1 %v9266_v6  ;;  %5101 = vmatprep.subr.bf16.mxu0 %v9269_v18  ;;  %v9338_v6 = vld [vmem:[%s14196_s3 + $0x484] ss:$16 sps:$4 sm:$0xff]   ;;  %v9341_v18 = vld [vmem:[%s14196_s3 + $0x48c] ss:$16 sps:$4 sm:$0xff]  }
 0x28a   :  { %v9395_v30 = vld [vmem:[%s14196_s3 + $0x5ac] ss:$16 sps:$4 sm:$0xff]  }
 0x28c   :  { %4758 = vmatpush1.bf16.msra.mxu1 %v9264_v38  ;;  %5102 = vmatpush1.bf16.msra.mxu0 %v9267_v23  ;;  %v9336_v38 = vld [vmem:[%s14196_s3 + $0x480] ss:$16 sps:$4 sm:$0xff]   ;;  %v9339_v23 = vld [vmem:[%s14196_s3 + $0x488] ss:$16 sps:$4 sm:$0xff]  }
 0x28d   :  { %4759 = vmatprep.subr.bf16.mxu1 %v9272_v15  ;;  %5103 = vmatprep.subr.bf16.mxu0 %v9275_v46  ;;  %v9344_v15 = vld [vmem:[%s14196_s3 + $0x4a4] ss:$16 sps:$4 sm:$0xff]   ;;  %v9347_v46 = vld [vmem:[%s14196_s3 + $0x4ac] ss:$16 sps:$4 sm:$0xff]  }
 0x290   :  { %4760 = vmatpush1.bf16.msra.mxu1 %v9270_v19  ;;  %5104 = vmatpush1.bf16.msra.mxu0 %v9273_v48  ;;  %v9342_v19 = vld [vmem:[%s14196_s3 + $0x4a0] ss:$16 sps:$4 sm:$0xff]   ;;  %v9345_v48 = vld [vmem:[%s14196_s3 + $0x4a8] ss:$16 sps:$4 sm:$0xff]  }
 0x291   :  { %4761 = vmatprep.subr.bf16.mxu1 %v9278_v4  ;;  %5105 = vmatprep.subr.bf16.mxu0 %v9281_v21  ;;  %v9350_v4 = vld [vmem:[%s14196_s3 + $0x4c4] ss:$16 sps:$4 sm:$0xff]   ;;  %v9353_v21 = vld [vmem:[%s14196_s3 + $0x4cc] ss:$16 sps:$4 sm:$0xff]  }
 0x294   :  { %4762 = vmatpush1.bf16.msra.mxu1 %v9276_v14  ;;  %5106 = vmatpush1.bf16.msra.mxu0 %v9279_v43  ;;  %v9348_v14 = vld [vmem:[%s14196_s3 + $0x4c0] ss:$16 sps:$4 sm:$0xff]   ;;  %v9351_v43 = vld [vmem:[%s14196_s3 + $0x4c8] ss:$16 sps:$4 sm:$0xff]  }
 0x295   :  { %4763 = vmatprep.subr.bf16.mxu1 %v9284_v57  ;;  %5107 = vmatprep.subr.bf16.mxu0 %v9287_v33  ;;  %v9356_v57 = vld [vmem:[%s14196_s3 + $0x4e4] ss:$16 sps:$4 sm:$0xff]   ;;  %v9359_v33 = vld [vmem:[%s14196_s3 + $0x4ec] ss:$16 sps:$4 sm:$0xff]  }
 0x298   :  { %4764 = vmatpush1.bf16.msra.mxu1 %v9282_v16  ;;  %5108 = vmatpush1.bf16.msra.mxu0 %v9285_v37  ;;  %v9354_v16 = vld [vmem:[%s14196_s3 + $0x4e0] ss:$16 sps:$4 sm:$0xff]   ;;  %v9357_v37 = vld [vmem:[%s14196_s3 + $0x4e8] ss:$16 sps:$4 sm:$0xff]  }
 0x299   :  { %4765 = vmatprep.subr.bf16.mxu1 %v9290_v28  ;;  %5109 = vmatprep.subr.bf16.mxu0 %v9293_v9  ;;  %v9362_v28 = vld [vmem:[%s14196_s3 + $0x504] ss:$16 sps:$4 sm:$0xff]   ;;  %v9365_v9 = vld [vmem:[%s14196_s3 + $0x50c] ss:$16 sps:$4 sm:$0xff]  }
 0x29c   :  { %4766 = vmatpush1.bf16.msra.mxu1 %v9288_v34  ;;  %5110 = vmatpush1.bf16.msra.mxu0 %v9291_v13  ;;  %v9360_v34 = vld [vmem:[%s14196_s3 + $0x500] ss:$16 sps:$4 sm:$0xff]   ;;  %v9363_v13 = vld [vmem:[%s14196_s3 + $0x508] ss:$16 sps:$4 sm:$0xff]  }
 0x29d   :  { %4767 = vmatprep.subr.bf16.mxu1 %v9296_v32  ;;  %5111 = vmatprep.subr.bf16.mxu0 %v9299_v17  ;;  %v9368_v32 = vld [vmem:[%s14196_s3 + $0x524] ss:$16 sps:$4 sm:$0xff]   ;;  %v9371_v17 = vld [vmem:[%s14196_s3 + $0x52c] ss:$16 sps:$4 sm:$0xff]  }
 0x2a0   :  { %4768 = vmatpush1.bf16.msra.mxu1 %v9294_v11  ;;  %5112 = vmatpush1.bf16.msra.mxu0 %v9297_v58  ;;  %v9366_v11 = vld [vmem:[%s14196_s3 + $0x520] ss:$16 sps:$4 sm:$0xff]   ;;  %v9369_v58 = vld [vmem:[%s14196_s3 + $0x528] ss:$16 sps:$4 sm:$0xff]  }
 0x2a1   :  { %4769 = vmatprep.subr.bf16.mxu1 %v9302_v25  ;;  %5113 = vmatprep.subr.bf16.mxu0 %v9305_v53  ;;  %v9374_v25 = vld [vmem:[%s14196_s3 + $0x544] ss:$16 sps:$4 sm:$0xff]   ;;  %v9377_v53 = vld [vmem:[%s14196_s3 + $0x54c] ss:$16 sps:$4 sm:$0xff]  }
 0x2a4   :  { %4770 = vmatpush1.bf16.msra.mxu1 %v9300_v59  ;;  %5114 = vmatpush1.bf16.msra.mxu0 %v9303_v52  ;;  %v9372_v59 = vld [vmem:[%s14196_s3 + $0x540] ss:$16 sps:$4 sm:$0xff]   ;;  %v9375_v52 = vld [vmem:[%s14196_s3 + $0x548] ss:$16 sps:$4 sm:$0xff]  }
 0x2a5   :  { %4771 = vmatprep.subr.bf16.mxu1 %v9308_v0  ;;  %5115 = vmatprep.subr.bf16.mxu0 %v9311_v61  ;;  %v9380_v0 = vld [vmem:[%s14196_s3 + $0x564] ss:$16 sps:$4 sm:$0xff]   ;;  %v9383_v61 = vld [vmem:[%s14196_s3 + $0x56c] ss:$16 sps:$4 sm:$0xff]  }
 0x2a8   :  { %4772 = vmatpush1.bf16.msra.mxu1 %v9306_v35  ;;  %5116 = vmatpush1.bf16.msra.mxu0 %v9309_v10  ;;  %v9386_v35 = vld [vmem:[%s14196_s3 + $0x584] ss:$16 sps:$4 sm:$0xff]   ;;  %v9389_v10 = vld [vmem:[%s14196_s3 + $0x58c] ss:$16 sps:$4 sm:$0xff]  }
 0x2a9   :  { %4784 = vmatprep.subr.bf16.mxu1 %v9314_v12  ;;  %5128 = vmatprep.subr.bf16.mxu0 %v9317_v63  ;;  %v9384_v12 = vld [vmem:[%s14196_s3 + $0x580] ss:$16 sps:$4 sm:$0xff]   ;;  %v9387_v63 = vld [vmem:[%s14196_s3 + $0x588] ss:$16 sps:$4 sm:$0xff]  }
 0x2ab   :  { %4774 = vmatmul.mubr.bf16.vlgmr.msra.gmra.mrb[12].mxu1 %v11850_v60  ;;  %5118 = vmatmul.mubr.bf16.vlgmr.msra.gmra.mrb[24].mxu0 %v11850_v60  ;;  %v9329_v60 = vld [vmem:[%s14196_s3 + $0x44c] ss:$16 sps:$4 sm:$0xff]  }
 0x2ac   :  { %4785 = vmatpush1.bf16.msra.mxu1 %v9312_v42  ;;  %4816 = vmatprep.mubr.bf16.mxu1 %v1678_v45  ;;  %v9390_v42 = vld [vmem:[%s14196_s3 + $0x5a0] ss:$16 sps:$4 sm:$0xff]  }
 0x2ad   :  { %5129 = vmatpush1.bf16.msra.mxu0 %v9315_v44  ;;  %5160 = vmatprep.mubr.bf16.mxu0 %v1678_v45  ;;  %v9393_v44 = vld [vmem:[%s14196_s3 + $0x5a8] ss:$16 sps:$4 sm:$0xff]   ;;  %v9398_v45 = vld [vmem:[%s14196_s3 + $0x5c4] ss:$16 sps:$4 sm:$0xff]  }
 0x2ae   :  { %4786 = vmatprep.subr.bf16.mxu1 %v9320_v7  ;;  %5130 = vmatprep.subr.bf16.mxu0 %v9323_v29  ;;  %v9401_v7 = vld [vmem:[%s14196_s3 + $0x5cc] ss:$16 sps:$4 sm:$0xff]   ;;  %v9396_v29 = vld [vmem:[%s14196_s3 + $0x5c0] ss:$16 sps:$4 sm:$0xff]  }
 0x2b0   :  { %4787 = vmatpush1.bf16.msra.mxu1 %v9318_v27  ;;  %v9399_v27 = vld [vmem:[%s14196_s3 + $0x5c8] ss:$16 sps:$4 sm:$0xff]  }
 0x2b1   :  { %5131 = vmatpush1.bf16.msra.mxu0 %v9321_v41  ;;  %4788 = vmatprep.subr.bf16.mxu1 %v9326_v39  ;;  %v9404_v41 = vld [vmem:[%s14196_s3 + $0x5e4] ss:$16 sps:$4 sm:$0xff]   ;;  %v9407_v39 = vld [vmem:[%s14196_s3 + $0x5ec] ss:$16 sps:$4 sm:$0xff]  }
 0x2b2   :  { %5132 = vmatprep.subr.bf16.mxu0 %v9329_v60  ;;  %v9402_v60 = vld [vmem:[%s14196_s3 + $0x5e0] ss:$16 sps:$4 sm:$0xff]  }
 0x2b4   :  { %4789 = vmatpush1.bf16.msra.mxu1 %v9324_v20  ;;  %v9405_v20 = vld [vmem:[%s14196_s3 + $0x5e8] ss:$16 sps:$4 sm:$0xff]  }
 0x2b5   :  { %5133 = vmatpush1.bf16.msra.mxu0 %v9327_v24  ;;  %4790 = vmatprep.subr.bf16.mxu1 %v9332_v3  ;;  %v9410_v24 = vld [vmem:[%s14196_s3 + $0x604] ss:$16 sps:$4 sm:$0xff]   ;;  %v9413_v3 = vld [vmem:[%s14196_s3 + $0x60c] ss:$16 sps:$4 sm:$0xff]  }
 0x2b6   :  { %5134 = vmatprep.subr.bf16.mxu0 %v9335_v8  ;;  %v9408_v8 = vld [vmem:[%s14196_s3 + $0x600] ss:$16 sps:$4 sm:$0xff]  }
 0x2b8   :  { %4791 = vmatpush1.bf16.msra.mxu1 %v9330_v56  ;;  %v9411_v56 = vld [vmem:[%s14196_s3 + $0x608] ss:$16 sps:$4 sm:$0xff]  }
 0x2b9   :  { %5135 = vmatpush1.bf16.msra.mxu0 %v9333_v55  ;;  %4792 = vmatprep.subr.bf16.mxu1 %v9338_v6  ;;  %v9416_v55 = vld [vmem:[%s14196_s3 + $0x624] ss:$16 sps:$4 sm:$0xff]   ;;  %v9419_v6 = vld [vmem:[%s14196_s3 + $0x62c] ss:$16 sps:$4 sm:$0xff]  }
 0x2ba   :  { %5136 = vmatprep.subr.bf16.mxu0 %v9341_v18  ;;  %v9414_v18 = vld [vmem:[%s14196_s3 + $0x620] ss:$16 sps:$4 sm:$0xff]  }
 0x2bc   :  { %4793 = vmatpush1.bf16.msra.mxu1 %v9336_v38  ;;  %v9417_v38 = vld [vmem:[%s14196_s3 + $0x628] ss:$16 sps:$4 sm:$0xff]  }
 0x2bd   :  { %5137 = vmatpush1.bf16.msra.mxu0 %v9339_v23  ;;  %4794 = vmatprep.subr.bf16.mxu1 %v9344_v15  ;;  %v9422_v23 = vld [vmem:[%s14196_s3 + $0x644] ss:$16 sps:$4 sm:$0xff]   ;;  %v9420_v15 = vld [vmem:[%s14196_s3 + $0x640] ss:$16 sps:$4 sm:$0xff]  }
 0x2be   :  { %5138 = vmatprep.subr.bf16.mxu0 %v9347_v46  ;;  %v9423_v46 = vld [vmem:[%s14196_s3 + $0x648] ss:$16 sps:$4 sm:$0xff]  }
 0x2c0   :  { %4795 = vmatpush1.bf16.msra.mxu1 %v9342_v19  ;;  %v9431_v19 = vld [vmem:[%s14196_s3 + $0x66c] ss:$16 sps:$4 sm:$0xff]  }
 0x2c1   :  { %5139 = vmatpush1.bf16.msra.mxu0 %v9345_v48  ;;  %4796 = vmatprep.subr.bf16.mxu1 %v9350_v4  ;;  %v9426_v48 = vld [vmem:[%s14196_s3 + $0x660] ss:$16 sps:$4 sm:$0xff]   ;;  %v9429_v4 = vld [vmem:[%s14196_s3 + $0x668] ss:$16 sps:$4 sm:$0xff]  }
 0x2c2   :  { %5140 = vmatprep.subr.bf16.mxu0 %v9353_v21  ;;  %v9434_v21 = vld [vmem:[%s14196_s3 + $0x684] ss:$16 sps:$4 sm:$0xff]  }
 0x2c4   :  { %4797 = vmatpush1.bf16.msra.mxu1 %v9348_v14  ;;  %v9437_v14 = vld [vmem:[%s14196_s3 + $0x68c] ss:$16 sps:$4 sm:$0xff]  }
 0x2c5   :  { %5141 = vmatpush1.bf16.msra.mxu0 %v9351_v43  ;;  %4798 = vmatprep.subr.bf16.mxu1 %v9356_v57  ;;  %v9432_v43 = vld [vmem:[%s14196_s3 + $0x680] ss:$16 sps:$4 sm:$0xff]   ;;  %v9435_v57 = vld [vmem:[%s14196_s3 + $0x688] ss:$16 sps:$4 sm:$0xff]  }
 0x2c6   :  { %5142 = vmatprep.subr.bf16.mxu0 %v9359_v33  ;;  %v9440_v33 = vld [vmem:[%s14196_s3 + $0x6a4] ss:$16 sps:$4 sm:$0xff]  }
 0x2c8   :  { %4799 = vmatpush1.bf16.msra.mxu1 %v9354_v16  ;;  %v9443_v16 = vld [vmem:[%s14196_s3 + $0x6ac] ss:$16 sps:$4 sm:$0xff]  }
 0x2c9   :  { %5143 = vmatpush1.bf16.msra.mxu0 %v9357_v37  ;;  %4800 = vmatprep.subr.bf16.mxu1 %v9362_v28  ;;  %v9438_v37 = vld [vmem:[%s14196_s3 + $0x6a0] ss:$16 sps:$4 sm:$0xff]   ;;  %v9441_v28 = vld [vmem:[%s14196_s3 + $0x6a8] ss:$16 sps:$4 sm:$0xff]  }
 0x2ca   :  { %5144 = vmatprep.subr.bf16.mxu0 %v9365_v9  ;;  %v9446_v9 = vld [vmem:[%s14196_s3 + $0x6c4] ss:$16 sps:$4 sm:$0xff]  }
 0x2cc   :  { %4801 = vmatpush1.bf16.msra.mxu1 %v9360_v34  ;;  %v9449_v34 = vld [vmem:[%s14196_s3 + $0x6cc] ss:$16 sps:$4 sm:$0xff]  }
 0x2cd   :  { %5145 = vmatpush1.bf16.msra.mxu0 %v9363_v13  ;;  %4802 = vmatprep.subr.bf16.mxu1 %v9368_v32  ;;  %v9444_v13 = vld [vmem:[%s14196_s3 + $0x6c0] ss:$16 sps:$4 sm:$0xff]   ;;  %v9447_v32 = vld [vmem:[%s14196_s3 + $0x6c8] ss:$16 sps:$4 sm:$0xff]  }
 0x2ce   :  { %5146 = vmatprep.subr.bf16.mxu0 %v9371_v17  ;;  %v9452_v17 = vld [vmem:[%s14196_s3 + $0x6e4] ss:$16 sps:$4 sm:$0xff]  }
 0x2d0   :  { %4803 = vmatpush1.bf16.msra.mxu1 %v9366_v11  ;;  %v9455_v11 = vld [vmem:[%s14196_s3 + $0x6ec] ss:$16 sps:$4 sm:$0xff]  }
 0x2d1   :  { %5147 = vmatpush1.bf16.msra.mxu0 %v9369_v58  ;;  %4804 = vmatprep.subr.bf16.mxu1 %v9374_v25  ;;  %v9450_v58 = vld [vmem:[%s14196_s3 + $0x6e0] ss:$16 sps:$4 sm:$0xff]   ;;  %v9453_v25 = vld [vmem:[%s14196_s3 + $0x6e8] ss:$16 sps:$4 sm:$0xff]  }
 0x2d2   :  { %5148 = vmatprep.subr.bf16.mxu0 %v9377_v53  ;;  %v9458_v53 = vld [vmem:[%s14196_s3 + $0x704] ss:$16 sps:$4 sm:$0xff]  }
 0x2d4   :  { %4805 = vmatpush1.bf16.msra.mxu1 %v9372_v59  ;;  %v9461_v59 = vld [vmem:[%s14196_s3 + $0x70c] ss:$16 sps:$4 sm:$0xff]  }
 0x2d5   :  { %5149 = vmatpush1.bf16.msra.mxu0 %v9375_v52  ;;  %4806 = vmatprep.subr.bf16.mxu1 %v9380_v0  ;;  %v9456_v52 = vld [vmem:[%s14196_s3 + $0x700] ss:$16 sps:$4 sm:$0xff]   ;;  %v9459_v0 = vld [vmem:[%s14196_s3 + $0x708] ss:$16 sps:$4 sm:$0xff]  }
 0x2d6   :  { %5150 = vmatprep.subr.bf16.mxu0 %v9383_v61  ;;  %v9464_v61 = vld [vmem:[%s14196_s3 + $0x724] ss:$16 sps:$4 sm:$0xff]  }
 0x2d8   :  { %4807 = vmatpush1.bf16.msra.mxu1 %v9378_v22  ;;  %v9467_v22 = vld [vmem:[%s14196_s3 + $0x72c] ss:$16 sps:$4 sm:$0xff]  }
 0x2d9   :  { %5151 = vmatpush1.bf16.msra.mxu0 %v9381_v5  ;;  %4808 = vmatprep.subr.bf16.mxu1 %v9386_v35  ;;  %v9462_v5 = vld [vmem:[%s14196_s3 + $0x720] ss:$16 sps:$4 sm:$0xff]   ;;  %v9465_v35 = vld [vmem:[%s14196_s3 + $0x728] ss:$16 sps:$4 sm:$0xff]  }
 0x2da   :  { %5152 = vmatprep.subr.bf16.mxu0 %v9389_v10  ;;  %v9470_v10 = vld [vmem:[%s14196_s3 + $0x744] ss:$16 sps:$4 sm:$0xff]  }
 0x2dc   :  { %4809 = vmatpush1.bf16.msra.mxu1 %v9384_v12  ;;  %v9473_v12 = vld [vmem:[%s14196_s3 + $0x74c] ss:$16 sps:$4 sm:$0xff]  }
 0x2dd   :  { %5153 = vmatpush1.bf16.msra.mxu0 %v9387_v63  ;;  %4810 = vmatprep.subr.bf16.mxu1 %v9392_v1  ;;  %v9468_v63 = vld [vmem:[%s14196_s3 + $0x740] ss:$16 sps:$4 sm:$0xff]   ;;  %v9471_v1 = vld [vmem:[%s14196_s3 + $0x748] ss:$16 sps:$4 sm:$0xff]  }
 0x2de   :  { %5154 = vmatprep.subr.bf16.mxu0 %v9395_v30  ;;  %v9476_v30 = vld [vmem:[%s14196_s3 + $0x764] ss:$16 sps:$4 sm:$0xff]  }
 0x2e0   :  { %4811 = vmatpush1.bf16.msra.mxu1 %v9390_v42  ;;  %v9479_v42 = vld [vmem:[%s14196_s3 + $0x76c] ss:$16 sps:$4 sm:$0xff]  }
 0x2e1   :  { %5155 = vmatpush1.bf16.msra.mxu0 %v9393_v44  ;;  %4812 = vmatprep.subr.bf16.mxu1 %v9398_v45  ;;  %v9474_v44 = vld [vmem:[%s14196_s3 + $0x760] ss:$16 sps:$4 sm:$0xff]   ;;  %v9477_v45 = vld [vmem:[%s14196_s3 + $0x768] ss:$16 sps:$4 sm:$0xff]  }
 0x2e2   :  { %5156 = vmatprep.subr.bf16.mxu0 %v9401_v7  ;;  %v9482_v7 = vld [vmem:[%s14196_s3 + $0x784] ss:$16 sps:$4 sm:$0xff]  }
 0x2e4   :  { %4813 = vmatpush1.bf16.msra.mxu1 %v9396_v29  ;;  %v9485_v29 = vld [vmem:[%s14196_s3 + $0x78c] ss:$16 sps:$4 sm:$0xff]  }
 0x2e5   :  { %5157 = vmatpush1.bf16.msra.mxu0 %v9399_v27  ;;  %4814 = vmatprep.subr.bf16.mxu1 %v9404_v41  ;;  %v9480_v27 = vld [vmem:[%s14196_s3 + $0x780] ss:$16 sps:$4 sm:$0xff]   ;;  %v9483_v41 = vld [vmem:[%s14196_s3 + $0x788] ss:$16 sps:$4 sm:$0xff]  }
 0x2e6   :  { %5158 = vmatprep.subr.bf16.mxu0 %v9407_v39  ;;  %v9488_v39 = vld [vmem:[%s14196_s3 + $0x7a4] ss:$16 sps:$4 sm:$0xff]  }
 0x2e8   :  { %4815 = vmatpush1.bf16.msra.mxu1 %v9402_v60  ;;  %v9491_v60 = vld [vmem:[%s14196_s3 + $0x7ac] ss:$16 sps:$4 sm:$0xff]  }
 0x2e9   :  { %5159 = vmatpush1.bf16.msra.mxu0 %v9405_v20  ;;  %4827 = vmatprep.subr.bf16.mxu1 %v9410_v24  ;;  %v9486_v20 = vld [vmem:[%s14196_s3 + $0x7a0] ss:$16 sps:$4 sm:$0xff]   ;;  %v9489_v24 = vld [vmem:[%s14196_s3 + $0x7a8] ss:$16 sps:$4 sm:$0xff]  }
 0x2ea   :  { %5171 = vmatprep.subr.bf16.mxu0 %v9413_v3  ;;  %v9494_v3 = vld [vmem:[%s14196_s3 + $0x7c4] ss:$16 sps:$4 sm:$0xff]  }
 0x2eb   :  { %4817 = vmatmul.mubr.bf16.vlgmr.msra.gmra.mrb[12].mxu1 %v11916_v51 }
 0x2ec   :  { %5161 = vmatmul.mubr.bf16.vlgmr.msra.gmra.mrb[24].mxu0 %v11916_v51  ;;  %4828 = vmatpush1.bf16.msra.mxu1 %v9408_v8  ;;  %v9425_v51 = vld [vmem:[%s14196_s3 + $0x64c] ss:$16 sps:$4 sm:$0xff]  }
 0x2ed   :  { %4859 = vmatprep.mubr.bf16.mxu1 %v11945_v47  ;;  %5172 = vmatpush1.bf16.msra.mxu0 %v9411_v56  ;;  %v9497_v8 = vld [vmem:[%s14196_s3 + $0x7cc] ss:$16 sps:$4 sm:$0xff]   ;;  %v9492_v56 = vld [vmem:[%s14196_s3 + $0x7c0] ss:$16 sps:$4 sm:$0xff]  }
 0x2ee   :  { %5203 = vmatprep.mubr.bf16.mxu0 %v11945_v47  ;;  %4829 = vmatprep.subr.bf16.mxu1 %v9416_v55  ;;  %v9428_v47 = vld [vmem:[%s14196_s3 + $0x664] ss:$16 sps:$4 sm:$0xff]   ;;  %v9495_v55 = vld [vmem:[%s14196_s3 + $0x7c8] ss:$16 sps:$4 sm:$0xff]  }
 0x2ef   :  { %5173 = vmatprep.subr.bf16.mxu0 %v9419_v6  ;;  %v9500_v6 = vld [vmem:[%s14196_s3 + $0x7e4] ss:$16 sps:$4 sm:$0xff]  }
 0x2f0   :  { %4830 = vmatpush1.bf16.msra.mxu1 %v9414_v18  ;;  %v9503_v18 = vld [vmem:[%s14196_s3 + $0x7ec] ss:$16 sps:$4 sm:$0xff]  }
 0x2f1   :  { %5174 = vmatpush1.bf16.msra.mxu0 %v9417_v38  ;;  %4831 = vmatprep.subr.bf16.mxu1 %v9422_v23  ;;  %v9498_v38 = vld [vmem:[%s14196_s3 + $0x7e0] ss:$16 sps:$4 sm:$0xff]   ;;  %v9501_v23 = vld [vmem:[%s14196_s3 + $0x7e8] ss:$16 sps:$4 sm:$0xff]  }
 0x2f2   :  { %5175 = vmatprep.subr.bf16.mxu0 %v9425_v51  ;;  %v9506_v51 = vld [vmem:[%s14196_s3 + $0x804] ss:$16 sps:$4 sm:$0xff]  }
 0x2f4   :  { %4832 = vmatpush1.bf16.msra.mxu1 %v9420_v15  ;;  %v9509_v15 = vld [vmem:[%s14196_s3 + $0x80c] ss:$16 sps:$4 sm:$0xff]  }
 0x2f5   :  { %5176 = vmatpush1.bf16.msra.mxu0 %v9423_v46  ;;  %4833 = vmatprep.subr.bf16.mxu1 %v9428_v47  ;;  %v9504_v46 = vld [vmem:[%s14196_s3 + $0x800] ss:$16 sps:$4 sm:$0xff]   ;;  %v9507_v47 = vld [vmem:[%s14196_s3 + $0x808] ss:$16 sps:$4 sm:$0xff]  }
 0x2f6   :  { %5177 = vmatprep.subr.bf16.mxu0 %v9431_v19  ;;  %v9512_v19 = vld [vmem:[%s14196_s3 + $0x824] ss:$16 sps:$4 sm:$0xff]  }
 0x2f8   :  { %4834 = vmatpush1.bf16.msra.mxu1 %v9426_v48  ;;  %v9515_v48 = vld [vmem:[%s14196_s3 + $0x82c] ss:$16 sps:$4 sm:$0xff]  }
 0x2f9   :  { %5178 = vmatpush1.bf16.msra.mxu0 %v9429_v4  ;;  %4835 = vmatprep.subr.bf16.mxu1 %v9434_v21  ;;  %v9510_v4 = vld [vmem:[%s14196_s3 + $0x820] ss:$16 sps:$4 sm:$0xff]   ;;  %v9513_v21 = vld [vmem:[%s14196_s3 + $0x828] ss:$16 sps:$4 sm:$0xff]  }
 0x2fa   :  { %5179 = vmatprep.subr.bf16.mxu0 %v9437_v14  ;;  %v9518_v14 = vld [vmem:[%s14196_s3 + $0x844] ss:$16 sps:$4 sm:$0xff]  }
 0x2fc   :  { %4836 = vmatpush1.bf16.msra.mxu1 %v9432_v43  ;;  %v9516_v43 = vld [vmem:[%s14196_s3 + $0x840] ss:$16 sps:$4 sm:$0xff]  }
 0x2fd   :  { %5180 = vmatpush1.bf16.msra.mxu0 %v9435_v57  ;;  %4837 = vmatprep.subr.bf16.mxu1 %v9440_v33  ;;  %v9519_v57 = vld [vmem:[%s14196_s3 + $0x848] ss:$16 sps:$4 sm:$0xff]   ;;  %v9527_v33 = vld [vmem:[%s14196_s3 + $0x86c] ss:$16 sps:$4 sm:$0xff]  }
 0x2fe   :  { %5181 = vmatprep.subr.bf16.mxu0 %v9443_v16  ;;  %v9522_v16 = vld [vmem:[%s14196_s3 + $0x860] ss:$16 sps:$4 sm:$0xff]  }
 0x300   :  { %4838 = vmatpush1.bf16.msra.mxu1 %v9438_v37  ;;  %v9525_v37 = vld [vmem:[%s14196_s3 + $0x868] ss:$16 sps:$4 sm:$0xff]  }
 0x301   :  { %5182 = vmatpush1.bf16.msra.mxu0 %v9441_v28  ;;  %4839 = vmatprep.subr.bf16.mxu1 %v9446_v9  ;;  %v9530_v28 = vld [vmem:[%s14196_s3 + $0x884] ss:$16 sps:$4 sm:$0xff]   ;;  %v9533_v9 = vld [vmem:[%s14196_s3 + $0x88c] ss:$16 sps:$4 sm:$0xff]  }
 0x302   :  { %5183 = vmatprep.subr.bf16.mxu0 %v9449_v34  ;;  %v9528_v34 = vld [vmem:[%s14196_s3 + $0x880] ss:$16 sps:$4 sm:$0xff]  }
 0x304   :  { %4840 = vmatpush1.bf16.msra.mxu1 %v9444_v13  ;;  %v9531_v13 = vld [vmem:[%s14196_s3 + $0x888] ss:$16 sps:$4 sm:$0xff]  }
 0x305   :  { %5184 = vmatpush1.bf16.msra.mxu0 %v9447_v32  ;;  %4841 = vmatprep.subr.bf16.mxu1 %v9452_v17  ;;  %v9536_v32 = vld [vmem:[%s14196_s3 + $0x8a4] ss:$16 sps:$4 sm:$0xff]   ;;  %v9539_v17 = vld [vmem:[%s14196_s3 + $0x8ac] ss:$16 sps:$4 sm:$0xff]  }
 0x306   :  { %5185 = vmatprep.subr.bf16.mxu0 %v9455_v11  ;;  %v9534_v11 = vld [vmem:[%s14196_s3 + $0x8a0] ss:$16 sps:$4 sm:$0xff]  }
 0x308   :  { %4842 = vmatpush1.bf16.msra.mxu1 %v9450_v58  ;;  %v9537_v58 = vld [vmem:[%s14196_s3 + $0x8a8] ss:$16 sps:$4 sm:$0xff]  }
 0x309   :  { %5186 = vmatpush1.bf16.msra.mxu0 %v9453_v25  ;;  %4843 = vmatprep.subr.bf16.mxu1 %v9458_v53  ;;  %v9542_v25 = vld [vmem:[%s14196_s3 + $0x8c4] ss:$16 sps:$4 sm:$0xff]   ;;  %v9545_v53 = vld [vmem:[%s14196_s3 + $0x8cc] ss:$16 sps:$4 sm:$0xff]  }
 0x30a   :  { %5187 = vmatprep.subr.bf16.mxu0 %v9461_v59  ;;  %v9540_v59 = vld [vmem:[%s14196_s3 + $0x8c0] ss:$16 sps:$4 sm:$0xff]  }
 0x30c   :  { %4844 = vmatpush1.bf16.msra.mxu1 %v9456_v52  ;;  %v9543_v52 = vld [vmem:[%s14196_s3 + $0x8c8] ss:$16 sps:$4 sm:$0xff]  }
 0x30d   :  { %5188 = vmatpush1.bf16.msra.mxu0 %v9459_v0  ;;  %4845 = vmatprep.subr.bf16.mxu1 %v9464_v61  ;;  %v9548_v0 = vld [vmem:[%s14196_s3 + $0x8e4] ss:$16 sps:$4 sm:$0xff]   ;;  %v9551_v61 = vld [vmem:[%s14196_s3 + $0x8ec] ss:$16 sps:$4 sm:$0xff]  }
 0x30e   :  { %5189 = vmatprep.subr.bf16.mxu0 %v9467_v22  ;;  %v9546_v22 = vld [vmem:[%s14196_s3 + $0x8e0] ss:$16 sps:$4 sm:$0xff]  }
 0x310   :  { %4846 = vmatpush1.bf16.msra.mxu1 %v9462_v5  ;;  %v9549_v5 = vld [vmem:[%s14196_s3 + $0x8e8] ss:$16 sps:$4 sm:$0xff]  }
 0x311   :  { %5190 = vmatpush1.bf16.msra.mxu0 %v9465_v35  ;;  %4847 = vmatprep.subr.bf16.mxu1 %v9470_v10  ;;  %v9554_v35 = vld [vmem:[%s14196_s3 + $0x904] ss:$16 sps:$4 sm:$0xff]   ;;  %v9557_v10 = vld [vmem:[%s14196_s3 + $0x90c] ss:$16 sps:$4 sm:$0xff]  }
 0x312   :  { %5191 = vmatprep.subr.bf16.mxu0 %v9473_v12  ;;  %v9552_v12 = vld [vmem:[%s14196_s3 + $0x900] ss:$16 sps:$4 sm:$0xff]  }
 0x314   :  { %4848 = vmatpush1.bf16.msra.mxu1 %v9468_v63  ;;  %v9555_v63 = vld [vmem:[%s14196_s3 + $0x908] ss:$16 sps:$4 sm:$0xff]  }
 0x315   :  { %5192 = vmatpush1.bf16.msra.mxu0 %v9471_v1  ;;  %4849 = vmatprep.subr.bf16.mxu1 %v9476_v30  ;;  %v9560_v1 = vld [vmem:[%s14196_s3 + $0x924] ss:$16 sps:$4 sm:$0xff]   ;;  %v9563_v30 = vld [vmem:[%s14196_s3 + $0x92c] ss:$16 sps:$4 sm:$0xff]  }
 0x316   :  { %5193 = vmatprep.subr.bf16.mxu0 %v9479_v42  ;;  %v9558_v42 = vld [vmem:[%s14196_s3 + $0x920] ss:$16 sps:$4 sm:$0xff]  }
 0x318   :  { %4850 = vmatpush1.bf16.msra.mxu1 %v9474_v44  ;;  %v9561_v44 = vld [vmem:[%s14196_s3 + $0x928] ss:$16 sps:$4 sm:$0xff]  }
 0x319   :  { %5194 = vmatpush1.bf16.msra.mxu0 %v9477_v45  ;;  %4851 = vmatprep.subr.bf16.mxu1 %v9482_v7  ;;  %v9566_v45 = vld [vmem:[%s14196_s3 + $0x944] ss:$16 sps:$4 sm:$0xff]   ;;  %v9569_v7 = vld [vmem:[%s14196_s3 + $0x94c] ss:$16 sps:$4 sm:$0xff]  }
 0x31a   :  { %5195 = vmatprep.subr.bf16.mxu0 %v9485_v29  ;;  %v9564_v29 = vld [vmem:[%s14196_s3 + $0x940] ss:$16 sps:$4 sm:$0xff]  }
 0x31c   :  { %4852 = vmatpush1.bf16.msra.mxu1 %v9480_v27  ;;  %v9567_v27 = vld [vmem:[%s14196_s3 + $0x948] ss:$16 sps:$4 sm:$0xff]  }
 0x31d   :  { %5196 = vmatpush1.bf16.msra.mxu0 %v9483_v41  ;;  %4853 = vmatprep.subr.bf16.mxu1 %v9488_v39  ;;  %v9572_v41 = vld [vmem:[%s14196_s3 + $0x964] ss:$16 sps:$4 sm:$0xff]   ;;  %v9575_v39 = vld [vmem:[%s14196_s3 + $0x96c] ss:$16 sps:$4 sm:$0xff]  }
 0x31e   :  { %5197 = vmatprep.subr.bf16.mxu0 %v9491_v60  ;;  %v9570_v60 = vld [vmem:[%s14196_s3 + $0x960] ss:$16 sps:$4 sm:$0xff]  }
 0x320   :  { %4854 = vmatpush1.bf16.msra.mxu1 %v9486_v20  ;;  %v9573_v20 = vld [vmem:[%s14196_s3 + $0x968] ss:$16 sps:$4 sm:$0xff]  }
 0x321   :  { %5198 = vmatpush1.bf16.msra.mxu0 %v9489_v24  ;;  %4855 = vmatprep.subr.bf16.mxu1 %v9494_v3  ;;  %v9578_v24 = vld [vmem:[%s14196_s3 + $0x984] ss:$16 sps:$4 sm:$0xff]   ;;  %v9581_v3 = vld [vmem:[%s14196_s3 + $0x98c] ss:$16 sps:$4 sm:$0xff]  }
 0x322   :  { %5199 = vmatprep.subr.bf16.mxu0 %v9497_v8  ;;  %v9576_v8 = vld [vmem:[%s14196_s3 + $0x980] ss:$16 sps:$4 sm:$0xff]  }
 0x324   :  { %4856 = vmatpush1.bf16.msra.mxu1 %v9492_v56  ;;  %v9579_v56 = vld [vmem:[%s14196_s3 + $0x988] ss:$16 sps:$4 sm:$0xff]  }
 0x325   :  { %5200 = vmatpush1.bf16.msra.mxu0 %v9495_v55  ;;  %4857 = vmatprep.subr.bf16.mxu1 %v9500_v6  ;;  %v9584_v55 = vld [vmem:[%s14196_s3 + $0x9a4] ss:$16 sps:$4 sm:$0xff]   ;;  %v9587_v6 = vld [vmem:[%s14196_s3 + $0x9ac] ss:$16 sps:$4 sm:$0xff]  }
 0x326   :  { %5201 = vmatprep.subr.bf16.mxu0 %v9503_v18  ;;  %v9582_v18 = vld [vmem:[%s14196_s3 + $0x9a0] ss:$16 sps:$4 sm:$0xff]  }
 0x328   :  { %4858 = vmatpush1.bf16.msra.mxu1 %v9498_v38  ;;  %v9585_v38 = vld [vmem:[%s14196_s3 + $0x9a8] ss:$16 sps:$4 sm:$0xff]  }
 0x329   :  { %5202 = vmatpush1.bf16.msra.mxu0 %v9501_v23  ;;  %4870 = vmatprep.subr.bf16.mxu1 %v9506_v51  ;;  %v9590_v23 = vld [vmem:[%s14196_s3 + $0x9c4] ss:$16 sps:$4 sm:$0xff]   ;;  %v9593_v51 = vld [vmem:[%s14196_s3 + $0x9cc] ss:$16 sps:$4 sm:$0xff]  }
 0x32a   :  { %5214 = vmatprep.subr.bf16.mxu0 %v9509_v15  ;;  %v9588_v15 = vld [vmem:[%s14196_s3 + $0x9c0] ss:$16 sps:$4 sm:$0xff]  }
 0x32b   :  { %4860 = vmatmul.mubr.bf16.vlgmr.msra.gmra.mrb[12].mxu1 %v11947_v49 }
 0x32c   :  { %5204 = vmatmul.mubr.bf16.vlgmr.msra.gmra.mrb[24].mxu0 %v11947_v49  ;;  %4871 = vmatpush1.bf16.msra.mxu1 %v9504_v46  ;;  %v9521_v49 = vld [vmem:[%s14196_s3 + $0x84c] ss:$16 sps:$4 sm:$0xff]   ;;  %v9591_v46 = vld [vmem:[%s14196_s3 + $0x9c8] ss:$16 sps:$4 sm:$0xff]  }
 0x32d   :  { %4902 = vmatprep.mubr.bf16.mxu1 %v12014_v2  ;;  %5215 = vmatpush1.bf16.msra.mxu0 %v9507_v47  ;;  %v9596_v47 = vld [vmem:[%s14196_s3 + $0x9e4] ss:$16 sps:$4 sm:$0xff]  }
 0x32e   :  { %5246 = vmatprep.mubr.bf16.mxu0 %v12014_v2  ;;  %4872 = vmatprep.subr.bf16.mxu1 %v9512_v19  ;;  %v9524_v2 = vld [vmem:[%s14196_s3 + $0x864] ss:$16 sps:$4 sm:$0xff]   ;;  %v9599_v19 = vld [vmem:[%s14196_s3 + $0x9ec] ss:$16 sps:$4 sm:$0xff]  }
 0x32f   :  { %5216 = vmatprep.subr.bf16.mxu0 %v9515_v48  ;;  %v9594_v48 = vld [vmem:[%s14196_s3 + $0x9e0] ss:$16 sps:$4 sm:$0xff]  }
 0x330   :  { %4873 = vmatpush1.bf16.msra.mxu1 %v9510_v4  ;;  %v9597_v4 = vld [vmem:[%s14196_s3 + $0x9e8] ss:$16 sps:$4 sm:$0xff]  }
 0x331   :  { %5217 = vmatpush1.bf16.msra.mxu0 %v9513_v21  ;;  %4874 = vmatprep.subr.bf16.mxu1 %v9518_v14  ;;  %v9602_v21 = vld [vmem:[%s14196_s3 + $0xa04] ss:$16 sps:$4 sm:$0xff]   ;;  %v9605_v14 = vld [vmem:[%s14196_s3 + $0xa0c] ss:$16 sps:$4 sm:$0xff]  }
 0x332   :  { %5218 = vmatprep.subr.bf16.mxu0 %v9521_v49  ;;  %v9600_v49 = vld [vmem:[%s14196_s3 + $0xa00] ss:$16 sps:$4 sm:$0xff]  }
 0x334   :  { %4875 = vmatpush1.bf16.msra.mxu1 %v9516_v43  ;;  %v9603_v43 = vld [vmem:[%s14196_s3 + $0xa08] ss:$16 sps:$4 sm:$0xff]  }
 0x335   :  { %5219 = vmatpush1.bf16.msra.mxu0 %v9519_v57  ;;  %4876 = vmatprep.subr.bf16.mxu1 %v9524_v2  ;;  %v9608_v57 = vld [vmem:[%s14196_s3 + $0xa24] ss:$16 sps:$4 sm:$0xff]   ;;  %v9611_v2 = vld [vmem:[%s14196_s3 + $0xa2c] ss:$16 sps:$4 sm:$0xff]  }
 0x336   :  { %5220 = vmatprep.subr.bf16.mxu0 %v9527_v33  ;;  %v9606_v33 = vld [vmem:[%s14196_s3 + $0xa20] ss:$16 sps:$4 sm:$0xff]  }
 0x338   :  { %4877 = vmatpush1.bf16.msra.mxu1 %v9522_v16  ;;  %v9609_v16 = vld [vmem:[%s14196_s3 + $0xa28] ss:$16 sps:$4 sm:$0xff]  }
 0x339   :  { %5221 = vmatpush1.bf16.msra.mxu0 %v9525_v37  ;;  %4878 = vmatprep.subr.bf16.mxu1 %v9530_v28  ;;  %v9614_v37 = vld [vmem:[%s14196_s3 + $0xa44] ss:$16 sps:$4 sm:$0xff]   ;;  %v9612_v28 = vld [vmem:[%s14196_s3 + $0xa40] ss:$16 sps:$4 sm:$0xff]  }
 0x33a   :  { %5222 = vmatprep.subr.bf16.mxu0 %v9533_v9  ;;  %v9615_v9 = vld [vmem:[%s14196_s3 + $0xa48] ss:$16 sps:$4 sm:$0xff]  }
 0x33c   :  { %4879 = vmatpush1.bf16.msra.mxu1 %v9528_v34  ;;  %v9623_v34 = vld [vmem:[%s14196_s3 + $0xa6c] ss:$16 sps:$4 sm:$0xff]  }
 0x33d   :  { %5223 = vmatpush1.bf16.msra.mxu0 %v9531_v13  ;;  %4880 = vmatprep.subr.bf16.mxu1 %v9536_v32  ;;  %v9618_v13 = vld [vmem:[%s14196_s3 + $0xa60] ss:$16 sps:$4 sm:$0xff]   ;;  %v9621_v32 = vld [vmem:[%s14196_s3 + $0xa68] ss:$16 sps:$4 sm:$0xff]  }
 0x33e   :  { %5224 = vmatprep.subr.bf16.mxu0 %v9539_v17  ;;  %v9626_v17 = vld [vmem:[%s14196_s3 + $0xa84] ss:$16 sps:$4 sm:$0xff]  }
 0x340   :  { %4881 = vmatpush1.bf16.msra.mxu1 %v9534_v11  ;;  %v9629_v11 = vld [vmem:[%s14196_s3 + $0xa8c] ss:$16 sps:$4 sm:$0xff]  }
 0x341   :  { %5225 = vmatpush1.bf16.msra.mxu0 %v9537_v58  ;;  %4882 = vmatprep.subr.bf16.mxu1 %v9542_v25  ;;  %v9624_v58 = vld [vmem:[%s14196_s3 + $0xa80] ss:$16 sps:$4 sm:$0xff]   ;;  %v9627_v25 = vld [vmem:[%s14196_s3 + $0xa88] ss:$16 sps:$4 sm:$0xff]  }
 0x342   :  { %5226 = vmatprep.subr.bf16.mxu0 %v9545_v53  ;;  %v9632_v53 = vld [vmem:[%s14196_s3 + $0xaa4] ss:$16 sps:$4 sm:$0xff]  }
 0x344   :  { %4883 = vmatpush1.bf16.msra.mxu1 %v9540_v59  ;;  %v9635_v59 = vld [vmem:[%s14196_s3 + $0xaac] ss:$16 sps:$4 sm:$0xff]  }
 0x345   :  { %5227 = vmatpush1.bf16.msra.mxu0 %v9543_v52  ;;  %4884 = vmatprep.subr.bf16.mxu1 %v9548_v0  ;;  %v9630_v52 = vld [vmem:[%s14196_s3 + $0xaa0] ss:$16 sps:$4 sm:$0xff]   ;;  %v9633_v0 = vld [vmem:[%s14196_s3 + $0xaa8] ss:$16 sps:$4 sm:$0xff]  }
 0x346   :  { %5228 = vmatprep.subr.bf16.mxu0 %v9551_v61  ;;  %v9638_v61 = vld [vmem:[%s14196_s3 + $0xac4] ss:$16 sps:$4 sm:$0xff]  }
 0x348   :  { %4885 = vmatpush1.bf16.msra.mxu1 %v9546_v22  ;;  %v9641_v22 = vld [vmem:[%s14196_s3 + $0xacc] ss:$16 sps:$4 sm:$0xff]  }
 0x349   :  { %5229 = vmatpush1.bf16.msra.mxu0 %v9549_v5  ;;  %4886 = vmatprep.subr.bf16.mxu1 %v9554_v35  ;;  %v9636_v5 = vld [vmem:[%s14196_s3 + $0xac0] ss:$16 sps:$4 sm:$0xff]   ;;  %v9639_v35 = vld [vmem:[%s14196_s3 + $0xac8] ss:$16 sps:$4 sm:$0xff]  }
 0x34a   :  { %5230 = vmatprep.subr.bf16.mxu0 %v9557_v10  ;;  %v9644_v10 = vld [vmem:[%s14196_s3 + $0xae4] ss:$16 sps:$4 sm:$0xff]  }
 0x34c   :  { %4887 = vmatpush1.bf16.msra.mxu1 %v9552_v12  ;;  %v9647_v12 = vld [vmem:[%s14196_s3 + $0xaec] ss:$16 sps:$4 sm:$0xff]  }
 0x34d   :  { %5231 = vmatpush1.bf16.msra.mxu0 %v9555_v63  ;;  %4888 = vmatprep.subr.bf16.mxu1 %v9560_v1  ;;  %v9642_v63 = vld [vmem:[%s14196_s3 + $0xae0] ss:$16 sps:$4 sm:$0xff]   ;;  %v9645_v1 = vld [vmem:[%s14196_s3 + $0xae8] ss:$16 sps:$4 sm:$0xff]  }
 0x34e   :  { %5232 = vmatprep.subr.bf16.mxu0 %v9563_v30  ;;  %v9650_v30 = vld [vmem:[%s14196_s3 + $0xb04] ss:$16 sps:$4 sm:$0xff]  }
 0x350   :  { %4889 = vmatpush1.bf16.msra.mxu1 %v9558_v42  ;;  %v9653_v42 = vld [vmem:[%s14196_s3 + $0xb0c] ss:$16 sps:$4 sm:$0xff]  }
 0x351   :  { %5233 = vmatpush1.bf16.msra.mxu0 %v9561_v44  ;;  %4890 = vmatprep.subr.bf16.mxu1 %v9566_v45  ;;  %v9648_v44 = vld [vmem:[%s14196_s3 + $0xb00] ss:$16 sps:$4 sm:$0xff]   ;;  %v9651_v45 = vld [vmem:[%s14196_s3 + $0xb08] ss:$16 sps:$4 sm:$0xff]  }
 0x352   :  { %5234 = vmatprep.subr.bf16.mxu0 %v9569_v7  ;;  %v9656_v7 = vld [vmem:[%s14196_s3 + $0xb24] ss:$16 sps:$4 sm:$0xff]  }
 0x354   :  { %4891 = vmatpush1.bf16.msra.mxu1 %v9564_v29  ;;  %v9659_v29 = vld [vmem:[%s14196_s3 + $0xb2c] ss:$16 sps:$4 sm:$0xff]  }
 0x355   :  { %5235 = vmatpush1.bf16.msra.mxu0 %v9567_v27  ;;  %4892 = vmatprep.subr.bf16.mxu1 %v9572_v41  ;;  %v9654_v27 = vld [vmem:[%s14196_s3 + $0xb20] ss:$16 sps:$4 sm:$0xff]   ;;  %v9657_v41 = vld [vmem:[%s14196_s3 + $0xb28] ss:$16 sps:$4 sm:$0xff]  }
 0x356   :  { %5236 = vmatprep.subr.bf16.mxu0 %v9575_v39  ;;  %v9662_v39 = vld [vmem:[%s14196_s3 + $0xb44] ss:$16 sps:$4 sm:$0xff]  }
 0x358   :  { %4893 = vmatpush1.bf16.msra.mxu1 %v9570_v60  ;;  %v9665_v60 = vld [vmem:[%s14196_s3 + $0xb4c] ss:$16 sps:$4 sm:$0xff]  }
 0x359   :  { %5237 = vmatpush1.bf16.msra.mxu0 %v9573_v20  ;;  %4894 = vmatprep.subr.bf16.mxu1 %v9578_v24  ;;  %v9660_v20 = vld [vmem:[%s14196_s3 + $0xb40] ss:$16 sps:$4 sm:$0xff]   ;;  %v9663_v24 = vld [vmem:[%s14196_s3 + $0xb48] ss:$16 sps:$4 sm:$0xff]  }
 0x35a   :  { %5238 = vmatprep.subr.bf16.mxu0 %v9581_v3  ;;  %v9668_v3 = vld [vmem:[%s14196_s3 + $0xb64] ss:$16 sps:$4 sm:$0xff]  }
 0x35c   :  { %4895 = vmatpush1.bf16.msra.mxu1 %v9576_v8  ;;  %v9671_v8 = vld [vmem:[%s14196_s3 + $0xb6c] ss:$16 sps:$4 sm:$0xff]  }
 0x35d   :  { %5239 = vmatpush1.bf16.msra.mxu0 %v9579_v56  ;;  %4896 = vmatprep.subr.bf16.mxu1 %v9584_v55  ;;  %v9666_v56 = vld [vmem:[%s14196_s3 + $0xb60] ss:$16 sps:$4 sm:$0xff]   ;;  %v9669_v55 = vld [vmem:[%s14196_s3 + $0xb68] ss:$16 sps:$4 sm:$0xff]  }
 0x35e   :  { %5240 = vmatprep.subr.bf16.mxu0 %v9587_v6  ;;  %v9674_v6 = vld [vmem:[%s14196_s3 + $0xb84] ss:$16 sps:$4 sm:$0xff]  }
 0x360   :  { %4897 = vmatpush1.bf16.msra.mxu1 %v9582_v18  ;;  %v9677_v18 = vld [vmem:[%s14196_s3 + $0xb8c] ss:$16 sps:$4 sm:$0xff]  }
 0x361   :  { %5241 = vmatpush1.bf16.msra.mxu0 %v9585_v38  ;;  %4898 = vmatprep.subr.bf16.mxu1 %v9590_v23  ;;  %v9672_v38 = vld [vmem:[%s14196_s3 + $0xb80] ss:$16 sps:$4 sm:$0xff]   ;;  %v9675_v23 = vld [vmem:[%s14196_s3 + $0xb88] ss:$16 sps:$4 sm:$0xff]  }
 0x362   :  { %5242 = vmatprep.subr.bf16.mxu0 %v9593_v51  ;;  %v9680_v51 = vld [vmem:[%s14196_s3 + $0xba4] ss:$16 sps:$4 sm:$0xff]  }
 0x364   :  { %4899 = vmatpush1.bf16.msra.mxu1 %v9588_v15  ;;  %v9683_v15 = vld [vmem:[%s14196_s3 + $0xbac] ss:$16 sps:$4 sm:$0xff]  }
 0x365   :  { %5243 = vmatpush1.bf16.msra.mxu0 %v9591_v46  ;;  %4900 = vmatprep.subr.bf16.mxu1 %v9596_v47  ;;  %v9678_v46 = vld [vmem:[%s14196_s3 + $0xba0] ss:$16 sps:$4 sm:$0xff]   ;;  %v9681_v47 = vld [vmem:[%s14196_s3 + $0xba8] ss:$16 sps:$4 sm:$0xff]  }
 0x366   :  { %5244 = vmatprep.subr.bf16.mxu0 %v9599_v19  ;;  %v9686_v19 = vld [vmem:[%s14196_s3 + $0xbc4] ss:$16 sps:$4 sm:$0xff]  }
 0x368   :  { %4901 = vmatpush1.bf16.msra.mxu1 %v9594_v48  ;;  %v9689_v48 = vld [vmem:[%s14196_s3 + $0xbcc] ss:$16 sps:$4 sm:$0xff]  }
 0x369   :  { %5245 = vmatpush1.bf16.msra.mxu0 %v9597_v4  ;;  %4913 = vmatprep.subr.bf16.mxu1 %v9602_v21  ;;  %v9684_v4 = vld [vmem:[%s14196_s3 + $0xbc0] ss:$16 sps:$4 sm:$0xff]   ;;  %v9687_v21 = vld [vmem:[%s14196_s3 + $0xbc8] ss:$16 sps:$4 sm:$0xff]  }
 0x36a   :  { %5257 = vmatprep.subr.bf16.mxu0 %v9605_v14  ;;  %v9692_v14 = vld [vmem:[%s14196_s3 + $0xbe4] ss:$16 sps:$4 sm:$0xff]  }
 0x36b   :  { %4903 = vmatmul.mubr.bf16.vlgmr.msra.gmra.mrb[12].mxu1 %v11963_v40 }
 0x36c   :  { %5247 = vmatmul.mubr.bf16.vlgmr.msra.gmra.mrb[24].mxu0 %v11963_v40  ;;  %4914 = vmatpush1.bf16.msra.mxu1 %v9600_v49  ;;  %v9617_v40 = vld [vmem:[%s14196_s3 + $0xa4c] ss:$16 sps:$4 sm:$0xff]  }
 0x36d   :  { %4945 = vmatprep.mubr.bf16.mxu1 %v12016_v50  ;;  %5258 = vmatpush1.bf16.msra.mxu0 %v9603_v43  ;;  %v9695_v49 = vld [vmem:[%s14196_s3 + $0xbec] ss:$16 sps:$4 sm:$0xff]   ;;  %v9690_v43 = vld [vmem:[%s14196_s3 + $0xbe0] ss:$16 sps:$4 sm:$0xff]  }
 0x36e   :  { %5289 = vmatprep.mubr.bf16.mxu0 %v12016_v50  ;;  %4915 = vmatprep.subr.bf16.mxu1 %v9608_v57  ;;  %v9620_v50 = vld [vmem:[%s14196_s3 + $0xa64] ss:$16 sps:$4 sm:$0xff]   ;;  %v9693_v57 = vld [vmem:[%s14196_s3 + $0xbe8] ss:$16 sps:$4 sm:$0xff]  }
 0x36f   :  { %5259 = vmatprep.subr.bf16.mxu0 %v9611_v2  ;;  %v9698_v2 = vld [vmem:[%s14196_s3 + $0xc04] ss:$16 sps:$4 sm:$0xff]  }
 0x370   :  { %4916 = vmatpush1.bf16.msra.mxu1 %v9606_v33  ;;  %v9701_v33 = vld [vmem:[%s14196_s3 + $0xc0c] ss:$16 sps:$4 sm:$0xff]  }
 0x371   :  { %5260 = vmatpush1.bf16.msra.mxu0 %v9609_v16  ;;  %4917 = vmatprep.subr.bf16.mxu1 %v9614_v37  ;;  %v9696_v16 = vld [vmem:[%s14196_s3 + $0xc00] ss:$16 sps:$4 sm:$0xff]   ;;  %v9699_v37 = vld [vmem:[%s14196_s3 + $0xc08] ss:$16 sps:$4 sm:$0xff]  }
 0x372   :  { %5261 = vmatprep.subr.bf16.mxu0 %v9617_v40  ;;  %v9704_v40 = vld [vmem:[%s14196_s3 + $0xc24] ss:$16 sps:$4 sm:$0xff]  }
 0x374   :  { %4918 = vmatpush1.bf16.msra.mxu1 %v9612_v28  ;;  %v9707_v28 = vld [vmem:[%s14196_s3 + $0xc2c] ss:$16 sps:$4 sm:$0xff]  }
 0x375   :  { %5262 = vmatpush1.bf16.msra.mxu0 %v9615_v9  ;;  %4919 = vmatprep.subr.bf16.mxu1 %v9620_v50  ;;  %v9702_v9 = vld [vmem:[%s14196_s3 + $0xc20] ss:$16 sps:$4 sm:$0xff]   ;;  %v9705_v50 = vld [vmem:[%s14196_s3 + $0xc28] ss:$16 sps:$4 sm:$0xff]  }
 0x376   :  { %5263 = vmatprep.subr.bf16.mxu0 %v9623_v34  ;;  %v9710_v34 = vld [vmem:[%s14196_s3 + $0xc44] ss:$16 sps:$4 sm:$0xff]  }
 0x378   :  { %4920 = vmatpush1.bf16.msra.mxu1 %v9618_v13  ;;  %v9708_v13 = vld [vmem:[%s14196_s3 + $0xc40] ss:$16 sps:$4 sm:$0xff]  }
 0x379   :  { %5264 = vmatpush1.bf16.msra.mxu0 %v9621_v32  ;;  %4921 = vmatprep.subr.bf16.mxu1 %v9626_v17  ;;  %v9711_v32 = vld [vmem:[%s14196_s3 + $0xc48] ss:$16 sps:$4 sm:$0xff]   ;;  %v9719_v17 = vld [vmem:[%s14196_s3 + $0xc6c] ss:$16 sps:$4 sm:$0xff]  }
 0x37a   :  { %5265 = vmatprep.subr.bf16.mxu0 %v9629_v11  ;;  %v9714_v11 = vld [vmem:[%s14196_s3 + $0xc60] ss:$16 sps:$4 sm:$0xff]  }
 0x37c   :  { %4922 = vmatpush1.bf16.msra.mxu1 %v9624_v58  ;;  %v9717_v58 = vld [vmem:[%s14196_s3 + $0xc68] ss:$16 sps:$4 sm:$0xff]  }
 0x37d   :  { %5266 = vmatpush1.bf16.msra.mxu0 %v9627_v25  ;;  %4923 = vmatprep.subr.bf16.mxu1 %v9632_v53  ;;  %v9722_v25 = vld [vmem:[%s14196_s3 + $0xc84] ss:$16 sps:$4 sm:$0xff]   ;;  %v9725_v53 = vld [vmem:[%s14196_s3 + $0xc8c] ss:$16 sps:$4 sm:$0xff]  }
 0x37e   :  { %5267 = vmatprep.subr.bf16.mxu0 %v9635_v59  ;;  %v9720_v59 = vld [vmem:[%s14196_s3 + $0xc80] ss:$16 sps:$4 sm:$0xff]  }
 0x380   :  { %4924 = vmatpush1.bf16.msra.mxu1 %v9630_v52  ;;  %v9723_v52 = vld [vmem:[%s14196_s3 + $0xc88] ss:$16 sps:$4 sm:$0xff]  }
 0x381   :  { %5268 = vmatpush1.bf16.msra.mxu0 %v9633_v0  ;;  %4925 = vmatprep.subr.bf16.mxu1 %v9638_v61  ;;  %v9728_v0 = vld [vmem:[%s14196_s3 + $0xca4] ss:$16 sps:$4 sm:$0xff]   ;;  %v9731_v61 = vld [vmem:[%s14196_s3 + $0xcac] ss:$16 sps:$4 sm:$0xff]  }
 0x382   :  { %5269 = vmatprep.subr.bf16.mxu0 %v9641_v22  ;;  %v9726_v22 = vld [vmem:[%s14196_s3 + $0xca0] ss:$16 sps:$4 sm:$0xff]  }
 0x384   :  { %4926 = vmatpush1.bf16.msra.mxu1 %v9636_v5  ;;  %v9729_v5 = vld [vmem:[%s14196_s3 + $0xca8] ss:$16 sps:$4 sm:$0xff]  }
 0x385   :  { %5270 = vmatpush1.bf16.msra.mxu0 %v9639_v35  ;;  %4927 = vmatprep.subr.bf16.mxu1 %v9644_v10  ;;  %v9734_v35 = vld [vmem:[%s14196_s3 + $0xcc4] ss:$16 sps:$4 sm:$0xff]   ;;  %v9737_v10 = vld [vmem:[%s14196_s3 + $0xccc] ss:$16 sps:$4 sm:$0xff]  }
 0x386   :  { %5271 = vmatprep.subr.bf16.mxu0 %v9647_v12  ;;  %v9732_v12 = vld [vmem:[%s14196_s3 + $0xcc0] ss:$16 sps:$4 sm:$0xff]  }
 0x388   :  { %4928 = vmatpush1.bf16.msra.mxu1 %v9642_v63  ;;  %v9735_v63 = vld [vmem:[%s14196_s3 + $0xcc8] ss:$16 sps:$4 sm:$0xff]  }
 0x389   :  { %5272 = vmatpush1.bf16.msra.mxu0 %v9645_v1  ;;  %4929 = vmatprep.subr.bf16.mxu1 %v9650_v30  ;;  %v9740_v1 = vld [vmem:[%s14196_s3 + $0xce4] ss:$16 sps:$4 sm:$0xff]   ;;  %v9743_v30 = vld [vmem:[%s14196_s3 + $0xcec] ss:$16 sps:$4 sm:$0xff]  }
 0x38a   :  { %5273 = vmatprep.subr.bf16.mxu0 %v9653_v42  ;;  %v9738_v42 = vld [vmem:[%s14196_s3 + $0xce0] ss:$16 sps:$4 sm:$0xff]  }
 0x38c   :  { %4930 = vmatpush1.bf16.msra.mxu1 %v9648_v44  ;;  %v9741_v44 = vld [vmem:[%s14196_s3 + $0xce8] ss:$16 sps:$4 sm:$0xff]  }
 0x38d   :  { %5274 = vmatpush1.bf16.msra.mxu0 %v9651_v45  ;;  %4931 = vmatprep.subr.bf16.mxu1 %v9656_v7  ;;  %v9746_v45 = vld [vmem:[%s14196_s3 + $0xd04] ss:$16 sps:$4 sm:$0xff]   ;;  %v9749_v7 = vld [vmem:[%s14196_s3 + $0xd0c] ss:$16 sps:$4 sm:$0xff]  }
 0x38e   :  { %5275 = vmatprep.subr.bf16.mxu0 %v9659_v29  ;;  %v9744_v29 = vld [vmem:[%s14196_s3 + $0xd00] ss:$16 sps:$4 sm:$0xff]  }
 0x390   :  { %4932 = vmatpush1.bf16.msra.mxu1 %v9654_v27  ;;  %v9747_v27 = vld [vmem:[%s14196_s3 + $0xd08] ss:$16 sps:$4 sm:$0xff]  }
 0x391   :  { %5276 = vmatpush1.bf16.msra.mxu0 %v9657_v41  ;;  %4933 = vmatprep.subr.bf16.mxu1 %v9662_v39  ;;  %v9752_v41 = vld [vmem:[%s14196_s3 + $0xd24] ss:$16 sps:$4 sm:$0xff]   ;;  %v9755_v39 = vld [vmem:[%s14196_s3 + $0xd2c] ss:$16 sps:$4 sm:$0xff]  }
 0x392   :  { %5277 = vmatprep.subr.bf16.mxu0 %v9665_v60  ;;  %v9750_v60 = vld [vmem:[%s14196_s3 + $0xd20] ss:$16 sps:$4 sm:$0xff]  }
 0x394   :  { %4934 = vmatpush1.bf16.msra.mxu1 %v9660_v20  ;;  %v9753_v20 = vld [vmem:[%s14196_s3 + $0xd28] ss:$16 sps:$4 sm:$0xff]  }
 0x395   :  { %5278 = vmatpush1.bf16.msra.mxu0 %v9663_v24  ;;  %4935 = vmatprep.subr.bf16.mxu1 %v9668_v3  ;;  %v9758_v24 = vld [vmem:[%s14196_s3 + $0xd44] ss:$16 sps:$4 sm:$0xff]   ;;  %v9761_v3 = vld [vmem:[%s14196_s3 + $0xd4c] ss:$16 sps:$4 sm:$0xff]  }
 0x396   :  { %5279 = vmatprep.subr.bf16.mxu0 %v9671_v8  ;;  %v9756_v8 = vld [vmem:[%s14196_s3 + $0xd40] ss:$16 sps:$4 sm:$0xff]  }
 0x398   :  { %4936 = vmatpush1.bf16.msra.mxu1 %v9666_v56  ;;  %v9759_v56 = vld [vmem:[%s14196_s3 + $0xd48] ss:$16 sps:$4 sm:$0xff]  }
 0x399   :  { %5280 = vmatpush1.bf16.msra.mxu0 %v9669_v55  ;;  %4937 = vmatprep.subr.bf16.mxu1 %v9674_v6  ;;  %v9764_v55 = vld [vmem:[%s14196_s3 + $0xd64] ss:$16 sps:$4 sm:$0xff]   ;;  %v9767_v6 = vld [vmem:[%s14196_s3 + $0xd6c] ss:$16 sps:$4 sm:$0xff]  }
 0x39a   :  { %5281 = vmatprep.subr.bf16.mxu0 %v9677_v18  ;;  %v9762_v18 = vld [vmem:[%s14196_s3 + $0xd60] ss:$16 sps:$4 sm:$0xff]  }
 0x39c   :  { %4938 = vmatpush1.bf16.msra.mxu1 %v9672_v38  ;;  %v9765_v38 = vld [vmem:[%s14196_s3 + $0xd68] ss:$16 sps:$4 sm:$0xff]  }
 0x39d   :  { %5282 = vmatpush1.bf16.msra.mxu0 %v9675_v23  ;;  %4939 = vmatprep.subr.bf16.mxu1 %v9680_v51  ;;  %v9770_v23 = vld [vmem:[%s14196_s3 + $0xd84] ss:$16 sps:$4 sm:$0xff]   ;;  %v9773_v51 = vld [vmem:[%s14196_s3 + $0xd8c] ss:$16 sps:$4 sm:$0xff]  }
 0x39e   :  { %5283 = vmatprep.subr.bf16.mxu0 %v9683_v15  ;;  %v9768_v15 = vld [vmem:[%s14196_s3 + $0xd80] ss:$16 sps:$4 sm:$0xff]  }
 0x3a0   :  { %4940 = vmatpush1.bf16.msra.mxu1 %v9678_v46  ;;  %v9771_v46 = vld [vmem:[%s14196_s3 + $0xd88] ss:$16 sps:$4 sm:$0xff]  }
 0x3a1   :  { %5284 = vmatpush1.bf16.msra.mxu0 %v9681_v47  ;;  %4941 = vmatprep.subr.bf16.mxu1 %v9686_v19  ;;  %v9776_v47 = vld [vmem:[%s14196_s3 + $0xda4] ss:$16 sps:$4 sm:$0xff]   ;;  %v9779_v19 = vld [vmem:[%s14196_s3 + $0xdac] ss:$16 sps:$4 sm:$0xff]  }
 0x3a2   :  { %5285 = vmatprep.subr.bf16.mxu0 %v9689_v48  ;;  %v9774_v48 = vld [vmem:[%s14196_s3 + $0xda0] ss:$16 sps:$4 sm:$0xff]  }
 0x3a4   :  { %4942 = vmatpush1.bf16.msra.mxu1 %v9684_v4  ;;  %v9777_v4 = vld [vmem:[%s14196_s3 + $0xda8] ss:$16 sps:$4 sm:$0xff]  }
 0x3a5   :  { %5286 = vmatpush1.bf16.msra.mxu0 %v9687_v21  ;;  %4943 = vmatprep.subr.bf16.mxu1 %v9692_v14  ;;  %v9782_v21 = vld [vmem:[%s14196_s3 + $0xdc4] ss:$16 sps:$4 sm:$0xff]   ;;  %v9785_v14 = vld [vmem:[%s14196_s3 + $0xdcc] ss:$16 sps:$4 sm:$0xff]  }
 0x3a6   :  { %5287 = vmatprep.subr.bf16.mxu0 %v9695_v49  ;;  %v9780_v49 = vld [vmem:[%s14196_s3 + $0xdc0] ss:$16 sps:$4 sm:$0xff]  }
 0x3a8   :  { %4944 = vmatpush1.bf16.msra.mxu1 %v9690_v43  ;;  %v9783_v43 = vld [vmem:[%s14196_s3 + $0xdc8] ss:$16 sps:$4 sm:$0xff]  }
 0x3a9   :  { %5288 = vmatpush1.bf16.msra.mxu0 %v9693_v57  ;;  %4956 = vmatprep.subr.bf16.mxu1 %v9698_v2  ;;  %v9788_v57 = vld [vmem:[%s14196_s3 + $0xde4] ss:$16 sps:$4 sm:$0xff]   ;;  %v9791_v2 = vld [vmem:[%s14196_s3 + $0xdec] ss:$16 sps:$4 sm:$0xff]  }
 0x3aa   :  { %5300 = vmatprep.subr.bf16.mxu0 %v9701_v33  ;;  %v9786_v33 = vld [vmem:[%s14196_s3 + $0xde0] ss:$16 sps:$4 sm:$0xff]  }
 0x3ab   :  { %4946 = vmatmul.mubr.bf16.vlgmr.msra.gmra.mrb[12].mxu1 %v12018_v26 }
 0x3ac   :  { %5290 = vmatmul.mubr.bf16.vlgmr.msra.gmra.mrb[24].mxu0 %v12018_v26  ;;  %4957 = vmatpush1.bf16.msra.mxu1 %v9696_v16  ;;  %v9713_v26 = vld [vmem:[%s14196_s3 + $0xc4c] ss:$16 sps:$4 sm:$0xff]   ;;  %v9789_v16 = vld [vmem:[%s14196_s3 + $0xde8] ss:$16 sps:$4 sm:$0xff]  }
 0x3ad   :  { %4988 = vmatprep.mubr.bf16.mxu1 %v11989_v36  ;;  %5301 = vmatpush1.bf16.msra.mxu0 %v9699_v37  ;;  %v9794_v37 = vld [vmem:[%s14196_s3 + $0xe04] ss:$16 sps:$4 sm:$0xff]  }
 0x3ae   :  { %5332 = vmatprep.mubr.bf16.mxu0 %v11989_v36  ;;  %4958 = vmatprep.subr.bf16.mxu1 %v9704_v40  ;;  %v9716_v36 = vld [vmem:[%s14196_s3 + $0xc64] ss:$16 sps:$4 sm:$0xff]   ;;  %v9797_v40 = vld [vmem:[%s14196_s3 + $0xe0c] ss:$16 sps:$4 sm:$0xff]  }
 0x3af   :  { %5302 = vmatprep.subr.bf16.mxu0 %v9707_v28  ;;  %v9792_v28 = vld [vmem:[%s14196_s3 + $0xe00] ss:$16 sps:$4 sm:$0xff]  }
 0x3b0   :  { %4959 = vmatpush1.bf16.msra.mxu1 %v9702_v9  ;;  %v9795_v9 = vld [vmem:[%s14196_s3 + $0xe08] ss:$16 sps:$4 sm:$0xff]  }
 0x3b1   :  { %5303 = vmatpush1.bf16.msra.mxu0 %v9705_v50  ;;  %4960 = vmatprep.subr.bf16.mxu1 %v9710_v34  ;;  %v9800_v50 = vld [vmem:[%s14196_s3 + $0xe24] ss:$16 sps:$4 sm:$0xff]   ;;  %v9803_v34 = vld [vmem:[%s14196_s3 + $0xe2c] ss:$16 sps:$4 sm:$0xff]  }
 0x3b2   :  { %5304 = vmatprep.subr.bf16.mxu0 %v9713_v26  ;;  %v9798_v26 = vld [vmem:[%s14196_s3 + $0xe20] ss:$16 sps:$4 sm:$0xff]  }
 0x3b4   :  { %4961 = vmatpush1.bf16.msra.mxu1 %v9708_v13  ;;  %v9801_v13 = vld [vmem:[%s14196_s3 + $0xe28] ss:$16 sps:$4 sm:$0xff]  }
 0x3b5   :  { %5305 = vmatpush1.bf16.msra.mxu0 %v9711_v32  ;;  %4962 = vmatprep.subr.bf16.mxu1 %v9716_v36  ;;  %v9806_v32 = vld [vmem:[%s14196_s3 + $0xe44] ss:$16 sps:$4 sm:$0xff]   ;;  %v10291_v36 = vmov 0  }
 0x3b6   :  { %5306 = vmatprep.subr.bf16.mxu0 %v9719_v17  ;;  %v9804_v17 = vld [vmem:[%s14196_s3 + $0xe40] ss:$16 sps:$4 sm:$0xff]  }
 0x3b8   :  { %4963 = vmatpush1.bf16.msra.mxu1 %v9714_v11  ;;  %v9807_v11 = vld [vmem:[%s14196_s3 + $0xe48] ss:$16 sps:$4 sm:$0xff]  }
 0x3b9   :  { %5307 = vmatpush1.bf16.msra.mxu0 %v9717_v58  ;;  %4964 = vmatprep.subr.bf16.mxu1 %v9722_v25  ;;  %v9812_v58 = vld [vmem:[%s14196_s3 + $0xe64] ss:$16 sps:$4 sm:$0xff]   ;;  %v9815_v25 = vld [vmem:[%s14196_s3 + $0xe6c] ss:$16 sps:$4 sm:$0xff]  }
 0x3ba   :  { %5308 = vmatprep.subr.bf16.mxu0 %v9725_v53  ;;  %v9810_v53 = vld [vmem:[%s14196_s3 + $0xe60] ss:$16 sps:$4 sm:$0xff]  }
 0x3bc   :  { %4965 = vmatpush1.bf16.msra.mxu1 %v9720_v59  ;;  %v9813_v59 = vld [vmem:[%s14196_s3 + $0xe68] ss:$16 sps:$4 sm:$0xff]  }
 0x3bd   :  { %5309 = vmatpush1.bf16.msra.mxu0 %v9723_v52  ;;  %4966 = vmatprep.subr.bf16.mxu1 %v9728_v0  ;;  %v9818_v52 = vld [vmem:[%s14196_s3 + $0xe84] ss:$16 sps:$4 sm:$0xff]   ;;  %v9821_v0 = vld [vmem:[%s14196_s3 + $0xe8c] ss:$16 sps:$4 sm:$0xff]  }
 0x3be   :  { %5310 = vmatprep.subr.bf16.mxu0 %v9731_v61  ;;  %v9816_v61 = vld [vmem:[%s14196_s3 + $0xe80] ss:$16 sps:$4 sm:$0xff]  }
 0x3c0   :  { %4967 = vmatpush1.bf16.msra.mxu1 %v9726_v22  ;;  %v9819_v22 = vld [vmem:[%s14196_s3 + $0xe88] ss:$16 sps:$4 sm:$0xff]  }
 0x3c1   :  { %5311 = vmatpush1.bf16.msra.mxu0 %v9729_v5  ;;  %4968 = vmatprep.subr.bf16.mxu1 %v9734_v35  ;;  %v9824_v5 = vld [vmem:[%s14196_s3 + $0xea4] ss:$16 sps:$4 sm:$0xff]   ;;  %v9827_v35 = vld [vmem:[%s14196_s3 + $0xeac] ss:$16 sps:$4 sm:$0xff]  }
 0x3c2   :  { %5312 = vmatprep.subr.bf16.mxu0 %v9737_v10  ;;  %v9822_v10 = vld [vmem:[%s14196_s3 + $0xea0] ss:$16 sps:$4 sm:$0xff]  }
 0x3c4   :  { %4969 = vmatpush1.bf16.msra.mxu1 %v9732_v12  ;;  %v9825_v12 = vld [vmem:[%s14196_s3 + $0xea8] ss:$16 sps:$4 sm:$0xff]  }
 0x3c5   :  { %5313 = vmatpush1.bf16.msra.mxu0 %v9735_v63  ;;  %4970 = vmatprep.subr.bf16.mxu1 %v9740_v1  ;;  %v9830_v63 = vld [vmem:[%s14196_s3 + $0xec4] ss:$16 sps:$4 sm:$0xff]   ;;  %v9833_v1 = vld [vmem:[%s14196_s3 + $0xecc] ss:$16 sps:$4 sm:$0xff]  }
 0x3c6   :  { %5314 = vmatprep.subr.bf16.mxu0 %v9743_v30  ;;  %v9828_v30 = vld [vmem:[%s14196_s3 + $0xec0] ss:$16 sps:$4 sm:$0xff]  }
 0x3c8   :  { %4971 = vmatpush1.bf16.msra.mxu1 %v9738_v42  ;;  %v9831_v42 = vld [vmem:[%s14196_s3 + $0xec8] ss:$16 sps:$4 sm:$0xff]  }
 0x3c9   :  { %5315 = vmatpush1.bf16.msra.mxu0 %v9741_v44  ;;  %4972 = vmatprep.subr.bf16.mxu1 %v9746_v45  ;;  %v9836_v44 = vld [vmem:[%s14196_s3 + $0xee4] ss:$16 sps:$4 sm:$0xff]   ;;  %v9839_v45 = vld [vmem:[%s14196_s3 + $0xeec] ss:$16 sps:$4 sm:$0xff]  }
 0x3ca   :  { %5316 = vmatprep.subr.bf16.mxu0 %v9749_v7  ;;  %v9834_v7 = vld [vmem:[%s14196_s3 + $0xee0] ss:$16 sps:$4 sm:$0xff]  }
 0x3cc   :  { %4973 = vmatpush1.bf16.msra.mxu1 %v9744_v29  ;;  %v9837_v29 = vld [vmem:[%s14196_s3 + $0xee8] ss:$16 sps:$4 sm:$0xff]  }
 0x3cd   :  { %5317 = vmatpush1.bf16.msra.mxu0 %v9747_v27  ;;  %4974 = vmatprep.subr.bf16.mxu1 %v9752_v41  ;;  %v9840_v27 = vld [vmem:[%s14198_s5] ss:$16 sps:$4 sm:$0xff]   ;;  %v9842_v41 = vld [vmem:[%s14198_s5 + $0x4] ss:$16 sps:$4 sm:$0xff]  }
 0x3ce   :  { %5318 = vmatprep.subr.bf16.mxu0 %v9755_v39  ;;  %v9843_v39 = vld [vmem:[%s14198_s5 + $0x8] ss:$16 sps:$4 sm:$0xff]  }
 0x3d0   :  { %4975 = vmatpush1.bf16.msra.mxu1 %v9750_v60  ;;  %v9845_v60 = vld [vmem:[%s14198_s5 + $0xc] ss:$16 sps:$4 sm:$0xff]  }
 0x3d1   :  { %5319 = vmatpush1.bf16.msra.mxu0 %v9753_v20  ;;  %4976 = vmatprep.subr.bf16.mxu1 %v9758_v24  ;;  %v9851_v20 = vld [vmem:[%s14198_s5 + $0x2c] ss:$16 sps:$4 sm:$0xff]   ;;  %v9846_v24 = vld [vmem:[%s14198_s5 + $0x20] ss:$16 sps:$4 sm:$0xff]  }
 0x3d2   :  { %5320 = vmatprep.subr.bf16.mxu0 %v9761_v3  ;;  %v9849_v3 = vld [vmem:[%s14198_s5 + $0x28] ss:$16 sps:$4 sm:$0xff]  }
 0x3d4   :  { %4977 = vmatpush1.bf16.msra.mxu1 %v9756_v8  ;;  %v9854_v8 = vld [vmem:[%s14198_s5 + $0x44] ss:$16 sps:$4 sm:$0xff]  }
 0x3d5   :  { %5321 = vmatpush1.bf16.msra.mxu0 %v9759_v56  ;;  %4978 = vmatprep.subr.bf16.mxu1 %v9764_v55  ;;  %v9857_v56 = vld [vmem:[%s14198_s5 + $0x4c] ss:$16 sps:$4 sm:$0xff]   ;;  %v9852_v55 = vld [vmem:[%s14198_s5 + $0x40] ss:$16 sps:$4 sm:$0xff]  }
 0x3d6   :  { %5322 = vmatprep.subr.bf16.mxu0 %v9767_v6  ;;  %v9855_v6 = vld [vmem:[%s14198_s5 + $0x48] ss:$16 sps:$4 sm:$0xff]  }
 0x3d8   :  { %4979 = vmatpush1.bf16.msra.mxu1 %v9762_v18  ;;  %v9860_v18 = vld [vmem:[%s14198_s5 + $0x64] ss:$16 sps:$4 sm:$0xff]  }
 0x3d9   :  { %5323 = vmatpush1.bf16.msra.mxu0 %v9765_v38  ;;  %4980 = vmatprep.subr.bf16.mxu1 %v9770_v23  ;;  %v9863_v38 = vld [vmem:[%s14198_s5 + $0x6c] ss:$16 sps:$4 sm:$0xff]   ;;  %v9858_v23 = vld [vmem:[%s14198_s5 + $0x60] ss:$16 sps:$4 sm:$0xff]  }
 0x3da   :  { %5324 = vmatprep.subr.bf16.mxu0 %v9773_v51  ;;  %v9861_v51 = vld [vmem:[%s14198_s5 + $0x68] ss:$16 sps:$4 sm:$0xff]  }
 0x3dc   :  { %4981 = vmatpush1.bf16.msra.mxu1 %v9768_v15  ;;  %v9866_v15 = vld [vmem:[%s14198_s5 + $0x84] ss:$16 sps:$4 sm:$0xff]  }
 0x3dd   :  { %5325 = vmatpush1.bf16.msra.mxu0 %v9771_v46  ;;  %4982 = vmatprep.subr.bf16.mxu1 %v9776_v47  ;;  %v9869_v46 = vld [vmem:[%s14198_s5 + $0x8c] ss:$16 sps:$4 sm:$0xff]   ;;  %v9864_v47 = vld [vmem:[%s14198_s5 + $0x80] ss:$16 sps:$4 sm:$0xff]  }
 0x3de   :  { %5326 = vmatprep.subr.bf16.mxu0 %v9779_v19  ;;  %v9867_v19 = vld [vmem:[%s14198_s5 + $0x88] ss:$16 sps:$4 sm:$0xff]  }
 0x3e0   :  { %4983 = vmatpush1.bf16.msra.mxu1 %v9774_v48  ;;  %v9872_v48 = vld [vmem:[%s14198_s5 + $0xa4] ss:$16 sps:$4 sm:$0xff]  }
 0x3e1   :  { %5327 = vmatpush1.bf16.msra.mxu0 %v9777_v4  ;;  %4984 = vmatprep.subr.bf16.mxu1 %v9782_v21  ;;  %v9875_v4 = vld [vmem:[%s14198_s5 + $0xac] ss:$16 sps:$4 sm:$0xff]   ;;  %v9870_v21 = vld [vmem:[%s14198_s5 + $0xa0] ss:$16 sps:$4 sm:$0xff]  }
 0x3e2   :  { %5328 = vmatprep.subr.bf16.mxu0 %v9785_v14  ;;  %v9873_v14 = vld [vmem:[%s14198_s5 + $0xa8] ss:$16 sps:$4 sm:$0xff]  }
 0x3e4   :  { %4985 = vmatpush1.bf16.msra.mxu1 %v9780_v49  ;;  %v9876_v49 = vld [vmem:[%s14198_s5 + $0xc0] ss:$16 sps:$4 sm:$0xff]  }
 0x3e5   :  { %5329 = vmatpush1.bf16.msra.mxu0 %v9783_v43  ;;  %4986 = vmatprep.subr.bf16.mxu1 %v9788_v57  ;;  %v9878_v43 = vld [vmem:[%s14198_s5 + $0xc4] ss:$16 sps:$4 sm:$0xff]   ;;  %v9879_v57 = vld [vmem:[%s14198_s5 + $0xc8] ss:$16 sps:$4 sm:$0xff]  }
 0x3e6   :  { %5330 = vmatprep.subr.bf16.mxu0 %v9791_v2  ;;  %v9881_v2 = vld [vmem:[%s14198_s5 + $0xcc] ss:$16 sps:$4 sm:$0xff]  }
 0x3e8   :  { %4987 = vmatpush1.bf16.msra.mxu1 %v9786_v33  ;;  %v2276_v33 = vld [vmem:[%s14197_s4] sm:$0xf] }
 0x3e9   :  { %5331 = vmatpush1.bf16.msra.mxu0 %v9789_v16  ;;  %4999 = vmatprep.subr.bf16.mxu1 %v9794_v37  ;;  %v14299_v16 = vld [vmem:[#allocation6_spill] sm:$0xff] }
 0x3ea   :  { %5343 = vmatprep.subr.bf16.mxu0 %v9797_v40  ;;  %v2281_v37 = vrot.slane %v2276_v33, %v14299_v16  ;;  %v9882_v40 = vld [vmem:[%s14198_s5 + $0xe0] ss:$16 sps:$4 sm:$0xff]  }
 0x3eb   :  { %4989 = vmatmul.mubr.bf16.vlgmr.msra.gmra.mrb[12].mxu1 %v11991_v62 }
 0x3ec   :  { %5333 = vmatmul.mubr.bf16.vlgmr.msra.gmra.mrb[24].mxu0 %v11991_v62  ;;  %5000 = vmatpush1.bf16.msra.mxu1 %v9792_v28  ;;  %v9809_v62 = vld [vmem:[%s14196_s3 + $0xe4c] ss:$16 sps:$4 sm:$0xff]   ;;  %v9884_v28 = vld [vmem:[%s14198_s5 + $0xe4] ss:$16 sps:$4 sm:$0xff]  }
 0x3ed   :  { %5344 = vmatpush1.bf16.msra.mxu0 %v9795_v9  ;;  %5001 = vmatprep.subr.bf16.mxu1 %v9800_v50  ;;  %v9885_v9 = vld [vmem:[%s14198_s5 + $0xe8] ss:$16 sps:$4 sm:$0xff]   ;;  %v9887_v50 = vld [vmem:[%s14198_s5 + $0xec] ss:$16 sps:$4 sm:$0xff]  }
 0x3ee   :  { %5345 = vmatprep.subr.bf16.mxu0 %v9803_v34  ;;  %5031 = vmatprep.mubr.bf16.mxu1 %v10291_v36  ;;  %v14300_v34 = vld [vmem:[#allocation8_spill] sm:$0xff] }
 0x3ef   :  { %5375 = vmatprep.mubr.bf16.mxu0 %v10291_v36 }
 0x3f0   :  { %5002 = vmatpush1.bf16.msra.mxu1 %v9798_v26  ;;  %v2285_v26 = vrot.slane %v2276_v33, %v14300_v34 }
 0x3f1   :  { %5346 = vmatpush1.bf16.msra.mxu0 %v9801_v13  ;;  %5003 = vmatprep.subr.bf16.mxu1 %v9806_v32  ;;  %v9888_v32 = vld [vmem:[%s14198_s5 + $0x100] ss:$16 sps:$4 sm:$0xff]  }
 0x3f2   :  { %5347 = vmatprep.subr.bf16.mxu0 %v9809_v62  ;;  %v9890_v62 = vld [vmem:[%s14198_s5 + $0x104] ss:$16 sps:$4 sm:$0xff]  }
 0x3f4   :  { %5004 = vmatpush1.bf16.msra.mxu1 %v9804_v17 }
 0x3f5   :  { %5348 = vmatpush1.bf16.msra.mxu0 %v9807_v11  ;;  %5005 = vmatprep.subr.bf16.mxu1 %v9812_v58  ;;  %v9891_v58 = vld [vmem:[%s14198_s5 + $0x108] ss:$16 sps:$4 sm:$0xff]  }
 0x3f6   :  { %5349 = vmatprep.subr.bf16.mxu0 %v9815_v25  ;;  %v9893_v25 = vld [vmem:[%s14198_s5 + $0x10c] ss:$16 sps:$4 sm:$0xff]  }
 0x3f8   :  { %5006 = vmatpush1.bf16.msra.mxu1 %v9810_v53 }
 0x3f9   :  { %5350 = vmatpush1.bf16.msra.mxu0 %v9813_v59  ;;  %5007 = vmatprep.subr.bf16.mxu1 %v9818_v52 }
 0x3fa   :  { %5351 = vmatprep.subr.bf16.mxu0 %v9821_v0 }
 0x3fc   :  { %5008 = vmatpush1.bf16.msra.mxu1 %v9816_v61  ;;  %v14301_v61 = vld [vmem:[#allocation9_spill] sm:$0xff] }
 0x3fd   :  { %5352 = vmatpush1.bf16.msra.mxu0 %v9819_v22  ;;  %5009 = vmatprep.subr.bf16.mxu1 %v9824_v5  ;;  %v2293_v22 = vrot.slane %v2276_v33, %v14301_v61 }
 0x3fe   :  { %5353 = vmatprep.subr.bf16.mxu0 %v9827_v35 }
 0x400   :  { %5010 = vmatpush1.bf16.msra.mxu1 %v9822_v10 }
 0x401   :  { %5354 = vmatpush1.bf16.msra.mxu0 %v9825_v12  ;;  %5011 = vmatprep.subr.bf16.mxu1 %v9830_v63 }
 0x402   :  { %5355 = vmatprep.subr.bf16.mxu0 %v9833_v1 }
 0x404   :  { %5012 = vmatpush1.bf16.msra.mxu1 %v9828_v30  ;;  %v14302_v30 = vld [vmem:[#allocation7_spill] sm:$0xff] }
 0x405   :  { %5356 = vmatpush1.bf16.msra.mxu0 %v9831_v42  ;;  %5013 = vmatprep.subr.bf16.mxu1 %v9836_v44  ;;  %v2289_v42 = vrot.slane %v2276_v33, %v14302_v30  ;;  %v9924_v33 = vld [vmem:[%s14198_s5 + $0x1c0] ss:$16 sps:$4 sm:$0xff]  }
 0x406   :  { %5357 = vmatprep.subr.bf16.mxu0 %v9839_v45 }
 0x408   :  { %5014 = vmatpush1.bf16.msra.mxu1 %v9834_v7 }
 0x409   :  { %5358 = vmatpush1.bf16.msra.mxu0 %v9837_v29  ;;  %7156 = vmatprep.subr.bf16.mxu1 %v9842_v41 }
 0x40a   :  { %7320 = vmatprep.subr.bf16.mxu0 %v9845_v60 }
 0x40b   :  { %5032 = vmatmul.mubr.bf16.vlgmr.msra.gmra.mrb[12].mxu1 %v11998_v54 }
 0x40c   :  { %5376 = vmatmul.mubr.bf16.vlgmr.msra.gmra.mrb[24].mxu0 %v11998_v54  ;;  %v9848_v54 = vld [vmem:[%s14198_s5 + $0x24] ss:$16 sps:$4 sm:$0xff]   ;;  %7157 = vmatpush1.bf16.msra.mxu1 %v9840_v27 }
 0x40d   :  { %7321 = vmatpush1.bf16.msra.mxu0 %v9843_v39  ;;  %7158 = vmatprep.subr.bf16.mxu1 %v9848_v54 }
 0x40e   :  { %7322 = vmatprep.subr.bf16.mxu0 %v9851_v20 }
 0x410   :  { %7159 = vmatpush1.bf16.msra.mxu1 %v9846_v24  ;;  %v9894_v24 = vld [vmem:[%s14198_s5 + $0x120] ss:$16 sps:$4 sm:$0xff]  }
 0x411   :  { %7323 = vmatpush1.bf16.msra.mxu0 %v9849_v3  ;;  %7160 = vmatprep.subr.bf16.mxu1 %v9854_v8  ;;  %v9896_v3 = vld [vmem:[%s14198_s5 + $0x124] ss:$16 sps:$4 sm:$0xff]   ;;  %v9897_v8 = vld [vmem:[%s14198_s5 + $0x128] ss:$16 sps:$4 sm:$0xff]  }
 0x412   :  { %7324 = vmatprep.subr.bf16.mxu0 %v9857_v56  ;;  %v9899_v56 = vld [vmem:[%s14198_s5 + $0x12c] ss:$16 sps:$4 sm:$0xff]  }
 0x414   :  { %7161 = vmatpush1.bf16.msra.mxu1 %v9852_v55  ;;  %v9902_v55 = vld [vmem:[%s14198_s5 + $0x144] ss:$16 sps:$4 sm:$0xff]  }
 0x415   :  { %7325 = vmatpush1.bf16.msra.mxu0 %v9855_v6  ;;  %7162 = vmatprep.subr.bf16.mxu1 %v9860_v18  ;;  %v9900_v6 = vld [vmem:[%s14198_s5 + $0x140] ss:$16 sps:$4 sm:$0xff]   ;;  %v9905_v18 = vld [vmem:[%s14198_s5 + $0x14c] ss:$16 sps:$4 sm:$0xff]  }
 0x416   :  { %7326 = vmatprep.subr.bf16.mxu0 %v9863_v38  ;;  %v9903_v38 = vld [vmem:[%s14198_s5 + $0x148] ss:$16 sps:$4 sm:$0xff]  }
 0x418   :  { %7163 = vmatpush1.bf16.msra.mxu1 %v9858_v23  ;;  %v9908_v23 = vld [vmem:[%s14198_s5 + $0x164] ss:$16 sps:$4 sm:$0xff]  }
 0x419   :  { %7327 = vmatpush1.bf16.msra.mxu0 %v9861_v51  ;;  %7164 = vmatprep.subr.bf16.mxu1 %v9866_v15  ;;  %v9911_v51 = vld [vmem:[%s14198_s5 + $0x16c] ss:$16 sps:$4 sm:$0xff]   ;;  %v9906_v15 = vld [vmem:[%s14198_s5 + $0x160] ss:$16 sps:$4 sm:$0xff]  }
 0x41a   :  { %7328 = vmatprep.subr.bf16.mxu0 %v9869_v46  ;;  %v9909_v46 = vld [vmem:[%s14198_s5 + $0x168] ss:$16 sps:$4 sm:$0xff]  }
 0x41c   :  { %7165 = vmatpush1.bf16.msra.mxu1 %v9864_v47  ;;  %v9914_v47 = vld [vmem:[%s14198_s5 + $0x184] ss:$16 sps:$4 sm:$0xff]  }
 0x41d   :  { %7329 = vmatpush1.bf16.msra.mxu0 %v9867_v19  ;;  %7166 = vmatprep.subr.bf16.mxu1 %v9872_v48  ;;  %v9917_v19 = vld [vmem:[%s14198_s5 + $0x18c] ss:$16 sps:$4 sm:$0xff]   ;;  %v9912_v48 = vld [vmem:[%s14198_s5 + $0x180] ss:$16 sps:$4 sm:$0xff]  }
 0x41e   :  { %7330 = vmatprep.subr.bf16.mxu0 %v9875_v4  ;;  %v9915_v4 = vld [vmem:[%s14198_s5 + $0x188] ss:$16 sps:$4 sm:$0xff]  }
 0x420   :  { %7167 = vmatpush1.bf16.msra.mxu1 %v9870_v21  ;;  %v9920_v21 = vld [vmem:[%s14198_s5 + $0x1a4] ss:$16 sps:$4 sm:$0xff]  }
 0x421   :  { %7331 = vmatpush1.bf16.msra.mxu0 %v9873_v14  ;;  %7168 = vmatprep.subr.bf16.mxu1 %v9878_v43  ;;  %v9923_v14 = vld [vmem:[%s14198_s5 + $0x1ac] ss:$16 sps:$4 sm:$0xff]   ;;  %v9921_v43 = vld [vmem:[%s14198_s5 + $0x1a8] ss:$16 sps:$4 sm:$0xff]  }
 0x422   :  { %7332 = vmatprep.subr.bf16.mxu0 %v9881_v2  ;;  %v9929_v2 = vld [vmem:[%s14198_s5 + $0x1cc] ss:$16 sps:$4 sm:$0xff]  }
 0x424   :  { %7169 = vmatpush1.bf16.msra.mxu1 %v9876_v49  ;;  %v9918_v49 = vld [vmem:[%s14198_s5 + $0x1a0] ss:$16 sps:$4 sm:$0xff]  }
 0x425   :  { %7333 = vmatpush1.bf16.msra.mxu0 %v9879_v57  ;;  %7170 = vmatprep.subr.bf16.mxu1 %v9884_v28  ;;  %v9926_v57 = vld [vmem:[%s14198_s5 + $0x1c4] ss:$16 sps:$4 sm:$0xff]   ;;  %v9935_v28 = vld [vmem:[%s14198_s5 + $0x1ec] ss:$16 sps:$4 sm:$0xff]  }
 0x426   :  { %7334 = vmatprep.subr.bf16.mxu0 %v9887_v50  ;;  %v9933_v50 = vld [vmem:[%s14198_s5 + $0x1e8] ss:$16 sps:$4 sm:$0xff]  }
 0x428   :  { %7171 = vmatpush1.bf16.msra.mxu1 %v9882_v40  ;;  %v9932_v40 = vld [vmem:[%s14198_s5 + $0x1e4] ss:$16 sps:$4 sm:$0xff]  }
 0x429   :  { %7335 = vmatpush1.bf16.msra.mxu0 %v9885_v9  ;;  %7172 = vmatprep.subr.bf16.mxu1 %v9890_v62  ;;  %v9930_v9 = vld [vmem:[%s14198_s5 + $0x1e0] ss:$16 sps:$4 sm:$0xff]  }
 0x42a   :  { %7336 = vmatprep.subr.bf16.mxu0 %v9893_v25 }
 0x42c   :  { %7173 = vmatpush1.bf16.msra.mxu1 %v9888_v32 }
 0x42d   :  { %7337 = vmatpush1.bf16.msra.mxu0 %v9891_v58  ;;  %7174 = vmatprep.subr.bf16.mxu1 %v9896_v3  ;;  %v10292_v58 = vmov 1966171168  }
 0x42e   :  { %7338 = vmatprep.subr.bf16.mxu0 %v9899_v56  ;;  %v5451_v25 = vunpack.c.l.s4 %v10292_v58 }
 0x430   :  { %7175 = vmatpush1.bf16.msra.mxu1 %v9894_v24 }
 0x431   :  { %7339 = vmatpush1.bf16.msra.mxu0 %v9897_v8  ;;  %7176 = vmatprep.subr.bf16.mxu1 %v9902_v55  ;;  %v14303_v8 = vld [vmem:[#allocation5_spill] sm:$0xff] }
 0x432   :  { %7340 = vmatprep.subr.bf16.mxu0 %v9905_v18 }
 0x434   :  { %7177 = vmatpush1.bf16.msra.mxu1 %v9900_v6 }
 0x435   :  { %7341 = vmatpush1.bf16.msra.mxu0 %v9903_v38  ;;  %7178 = vmatprep.subr.bf16.mxu1 %v9908_v23 }
 0x436   :  { %7342 = vmatprep.subr.bf16.mxu0 %v9911_v51 }
 0x438   :  { %7179 = vmatpush1.bf16.msra.mxu1 %v9906_v15 }
 0x439   :  { %7343 = vmatpush1.bf16.msra.mxu0 %v9909_v46  ;;  %7180 = vmatprep.subr.bf16.mxu1 %v9914_v47 }
 0x43a   :  { %7344 = vmatprep.subr.bf16.mxu0 %v9917_v19 }
 0x43c   :  { %7181 = vmatpush1.bf16.msra.mxu1 %v9912_v48 }
 0x43d   :  { %7345 = vmatpush1.bf16.msra.mxu0 %v9915_v4  ;;  %7182 = vmatprep.subr.bf16.mxu1 %v9920_v21 }
 0x43e   :  { %7346 = vmatprep.subr.bf16.mxu0 %v9923_v14 }
 0x440   :  { %7183 = vmatpush1.bf16.msra.mxu1 %v9918_v49 }
 0x441   :  { %7347 = vmatpush1.bf16.msra.mxu0 %v9921_v43  ;;  %7184 = vmatprep.subr.bf16.mxu1 %v9926_v57 }
 0x442   :  { %7348 = vmatprep.subr.bf16.mxu0 %v9929_v2 }
 0x444   :  { %7185 = vmatpush1.bf16.msra.mxu1 %v9924_v33 }
 0x445   :  { %7186 = vmatprep.subr.bf16.mxu1 %v9932_v40 }
 0x448   :  { %7187 = vmatpush1.bf16.msra.mxu1 %v9930_v9 }
 0x4de   :  { %v5033_v13 = vpop.f32.mrb[12].mxu1 }
 0x4df   :  { %v13313_v36 = vadd.f32 %v5033_v13, %v2281_v37  ;;  %v5377_v17 = vpop.f32.mrb[24].mxu0  ;;  %v5035_v11 = vpop.f32.mrb[13].mxu1  ;;  %v9941_v13 = vld [vmem:[%s14198_s5 + $0x20c] ss:$16 sps:$4 sm:$0xff]  }
 0x4e0   :  { %v5379_v53 = vpop.f32.mrb[25].mxu0  ;;  %v5037_v59 = vpop.f32.mrb[14].mxu1  ;;  %v13322_v0 = vadd.f32 %v5035_v11, %v2285_v26  ;;  %v13346_v27 = vadd.f32 %v5377_v17, %v2289_v42 }
 0x4e1   :  { %v5386_v52 = vmax.f32 %v13313_v36, 0.0  ;;  %v13325_v5 = vadd.f32 %v5037_v59, %v2281_v37  ;;  %v5381_v35 = vpop.f32.mrb[26].mxu0  ;;  %v5039_v10 = vpop.f32.mrb[15].mxu1  ;;  %v13335_v45 = vadd.f32 %v5379_v53, %v2293_v22  ;;  %v9927_v37 = vld [vmem:[%s14198_s5 + $0x1c8] ss:$16 sps:$4 sm:$0xff]  }
 0x4e2   :  { %v5383_v12 = vpop.f32.mrb[27].mxu0  ;;  %v13328_v1 = vadd.f32 %v5039_v10, %v2285_v26  ;;  %v5387_v44 = vmax.f32 %v13322_v0, 0.0  ;;  %v13352_v39 = vadd.f32 %v5381_v35, %v2289_v42  ;;  %v5388_v54 = vmax.f32 %v13346_v27, 0.0  ;;  %7349 = vmatpush1.bf16.msra.mxu0 %v9927_v37  ;;  %v9938_v26 = vld [vmem:[%s14198_s5 + $0x204] ss:$16 sps:$4 sm:$0xff]  }
 0x4e3   :  { %v5390_v63 = vmax.f32 %v13325_v5, 0.0  ;;  %5416 = vrot.lane.b32.xlu0 %v5386_v52, %s10287_s2  ;;  %v13341_v29 = vadd.f32 %v5383_v12, %v2293_v22  ;;  %v5389_v41 = vmax.f32 %v13335_v45, 0.0  ;;  %7350 = vmatprep.subr.bf16.mxu0 %v9935_v28  ;;  %v5452_v22 = vunpack.c.0.s8 %v5451_v25 }
 0x4e4   :  { %v5391_v7 = vmax.f32 %v13328_v1, 0.0  ;;  %v5392_v20 = vmax.f32 %v13352_v39, 0.0  ;;  %7197 = vmatprep.subr.bf16.mxu1 %v9938_v26 }
 0x4e5   :  { %5418 = vrot.lane.b32.xlu1 %v5390_v63, %s10287_s2  ;;  %v5393_v60 = vmax.f32 %v13341_v29, 0.0 }
 0x4e6   :  { %7351 = vmatpush1.bf16.msra.mxu0 %v9933_v50 }
 0x4e7   :  { %5396 = vrot.lane.b32.xlu0 %v5387_v44, %s10287_s2  ;;  %7361 = vmatprep.subr.bf16.mxu0 %v9941_v13 }
 0x4e9   :  { %5398 = vrot.lane.b32.xlu1 %v5391_v7, %s10287_s2 }
 0x4eb   :  { %5404 = vrot.lane.b32.xlu0 %v5389_v41, %s10287_s2 }
 0x4ed   :  { %5406 = vrot.lane.b32.xlu1 %v5393_v60, %s10287_s2 }
 0x4ef   :  { %5424 = vrot.lane.b32.xlu0 %v5388_v54, %s10287_s2 }
 0x4f1   :  { %5426 = vrot.lane.b32.xlu1 %v5392_v20, %s10287_s2 }
 0x555   :  { %v5417_v32 = vpop.permute.xlu0 %5416 }
 0x556   :  { %v5430_v12 = vsel %vm1028_vm10, %v5417_v32, %v5387_v44 }
 0x557   :  { %v5419_v62 = vpop.permute.xlu1 %5418 }
 0x558   :  { %v5431_v0 = vsel %vm1028_vm10, %v5419_v62, %v5391_v7 }
 0x559   :  { %v5397_v17 = vpop.permute.xlu0 %5396 }
 0x55a   :  { %v5410_v35 = vsel %vm1028_vm10, %v5386_v52, %v5397_v17  ;;  %v5455_v52 = vsub.s32 %v5452_v22, %v14303_v8  ;;  %v9947_v22 = vld [vmem:[%s14198_s5 + $0x22c] ss:$16 sps:$4 sm:$0xff]  }
 0x55b   :  { %v5399_v11 = vpop.permute.xlu1 %5398  ;;  %v5434_v36 = vmax.f32 %v5410_v35, %v5430_v12  ;;  %v9942_v35 = vld [vmem:[%s14198_s5 + $0x220] ss:$16 sps:$4 sm:$0xff]   ;;  %v9950_v12 = vld [vmem:[%s14198_s5 + $0x244] ss:$16 sps:$4 sm:$0xff]  }
 0x55c   :  { %v5411_v42 = vsel %vm1028_vm10, %v5390_v63, %v5399_v11  ;;  %v9939_v11 = vld [vmem:[%s14198_s5 + $0x208] ss:$16 sps:$4 sm:$0xff]  }
 0x55d   :  { %v5405_v53 = vpop.permute.xlu0 %5404  ;;  %v5436_v44 = vmax.f32 %v5411_v42, %v5431_v0  ;;  %v9953_v42 = vld [vmem:[%s14198_s5 + $0x24c] ss:$16 sps:$4 sm:$0xff]  }
 0x55e   :  { %v5412_v24 = vsel %vm1028_vm10, %v5388_v54, %v5405_v53  ;;  %v10293_v54 = vmov 1935823168   ;;  %v9965_v0 = vld [vmem:[%s14198_s5 + $0x28c] ss:$16 sps:$4 sm:$0xff]  }
 0x55f   :  { %v5407_v59 = vpop.permute.xlu1 %5406  ;;  %v5517_v6 = vunpack.c.l.s4 %v10293_v54  ;;  %v9974_v54 = vld [vmem:[%s14198_s5 + $0x2c4] ss:$16 sps:$4 sm:$0xff]  }
 0x560   :  { %v5413_v5 = vsel %vm1028_vm10, %v5392_v20, %v5407_v59  ;;  %v9944_v59 = vld [vmem:[%s14198_s5 + $0x224] ss:$16 sps:$4 sm:$0xff]  }
 0x561   :  { %v5425_v10 = vpop.permute.xlu0 %5424  ;;  %v5518_v46 = vunpack.c.0.s8 %v5517_v6  ;;  %v9977_v6 = vld [vmem:[%s14198_s5 + $0x2cc] ss:$16 sps:$4 sm:$0xff]  }
 0x562   :  { %v5432_v3 = vsel %vm1028_vm10, %v5425_v10, %v5389_v41  ;;  %v9945_v10 = vld [vmem:[%s14198_s5 + $0x228] ss:$16 sps:$4 sm:$0xff]  }
 0x563   :  { %v5435_v56 = vmax.f32 %v5412_v24, %v5432_v3  ;;  %v5427_v55 = vpop.permute.xlu1 %5426  ;;  %v5521_v49 = vsub.s32 %v5518_v46, %v14303_v8  ;;  %v9948_v24 = vld [vmem:[%s14198_s5 + $0x240] ss:$16 sps:$4 sm:$0xff]   ;;  %v9951_v3 = vld [vmem:[%s14198_s5 + $0x248] ss:$16 sps:$4 sm:$0xff]   ;;  %v9959_v8 = vld [vmem:[%s14198_s5 + $0x26c] ss:$16 sps:$4 sm:$0xff]  }
 0x564   :  { %v5433_v63 = vsel %vm1028_vm10, %v5427_v55, %v5393_v60  ;;  %v9962_v55 = vld [vmem:[%s14198_s5 + $0x284] ss:$16 sps:$4 sm:$0xff]   ;;  %v9984_v46 = vld [vmem:[%s14198_s5 + $0x300] ss:$16 sps:$4 sm:$0xff]  }
 0x565   :  { %v5442_v45 = vcombine.low %v5434_v36, %v5435_v56  ;;  %v5443_v27 = vcombine.high %v5434_v36, %v5435_v56  ;;  %v5437_v41 = vmax.f32 %v5413_v5, %v5433_v63  ;;  %v9956_v36 = vld [vmem:[%s14198_s5 + $0x264] ss:$16 sps:$4 sm:$0xff]   ;;  %v9957_v56 = vld [vmem:[%s14198_s5 + $0x268] ss:$16 sps:$4 sm:$0xff]   ;;  %v9960_v5 = vld [vmem:[%s14198_s5 + $0x280] ss:$16 sps:$4 sm:$0xff]  }
 0x566   :  { %v9963_v63 = vld [vmem:[%s14198_s5 + $0x288] ss:$16 sps:$4 sm:$0xff]  }
 0x567   :  { %v5456_v18 = vrot.slane %v5442_v45, %v5455_v52  ;;  %v5463_v38 = vrot.slane %v5443_v27, %v5455_v52  ;;  %v5444_v23 = vcombine.low %v5436_v44, %v5437_v41  ;;  %v5445_v1 = vcombine.high %v5436_v44, %v5437_v41  ;;  %v9968_v44 = vld [vmem:[%s14198_s5 + $0x2a4] ss:$16 sps:$4 sm:$0xff]   ;;  %v9971_v45 = vld [vmem:[%s14198_s5 + $0x2ac] ss:$16 sps:$4 sm:$0xff]   ;;  %v9966_v27 = vld [vmem:[%s14198_s5 + $0x2a0] ss:$16 sps:$4 sm:$0xff]  }
 0x568   :  { %v9969_v41 = vld [vmem:[%s14198_s5 + $0x2a8] ss:$16 sps:$4 sm:$0xff]  }
 0x569   :  { %v5482_v51 = vrot.slane %v5456_v18, 4  ;;  %v5483_v7 = vrot.slane %v5463_v38, 4  ;;  %v5470_v15 = vrot.slane %v5444_v23, %v5455_v52  ;;  %v5477_v39 = vrot.slane %v5445_v1, %v5455_v52  ;;  %v9980_v23 = vld [vmem:[%s14198_s5 + $0x2e4] ss:$16 sps:$4 sm:$0xff]   ;;  %v9983_v1 = vld [vmem:[%s14198_s5 + $0x2ec] ss:$16 sps:$4 sm:$0xff]  }
 0x56b   :  { %v5490_v20 = vmax.f32 %v5456_v18, %v5482_v51  ;;  %v5491_v47 = vmax.f32 %v5463_v38, %v5483_v7  ;;  %v5484_v29 = vrot.slane %v5470_v15, 4  ;;  %v5485_v19 = vrot.slane %v5477_v39, 4  ;;  %v9972_v18 = vld [vmem:[%s14198_s5 + $0x2c0] ss:$16 sps:$4 sm:$0xff]   ;;  %v9975_v38 = vld [vmem:[%s14198_s5 + $0x2c8] ss:$16 sps:$4 sm:$0xff]  }
 0x56c   :  { %v9978_v51 = vld [vmem:[%s14198_s5 + $0x2e0] ss:$16 sps:$4 sm:$0xff]   ;;  %v9981_v7 = vld [vmem:[%s14198_s5 + $0x2e8] ss:$16 sps:$4 sm:$0xff]  }
 0x56d   :  { %v5498_v60 = vcombine.low %v5490_v20, %v5491_v47  ;;  %v5492_v48 = vmax.f32 %v5470_v15, %v5484_v29  ;;  %v5493_v4 = vmax.f32 %v5477_v39, %v5485_v19  ;;  %v9986_v15 = vld [vmem:[%s14198_s5 + $0x304] ss:$16 sps:$4 sm:$0xff]   ;;  %v9989_v39 = vld [vmem:[%s14198_s5 + $0x30c] ss:$16 sps:$4 sm:$0xff]   ;;  %v9987_v20 = vld [vmem:[%s14198_s5 + $0x308] ss:$16 sps:$4 sm:$0xff]  }
 0x56e   :  { %v9992_v47 = vld [vmem:[%s14198_s5 + $0x324] ss:$16 sps:$4 sm:$0xff]   ;;  %v9995_v29 = vld [vmem:[%s14198_s5 + $0x32c] ss:$16 sps:$4 sm:$0xff]   ;;  %v9990_v19 = vld [vmem:[%s14198_s5 + $0x320] ss:$16 sps:$4 sm:$0xff]  }
 0x56f   :  { %v5505_v21 = vrot.slane %v5498_v60, %v14281_v31  ;;  %v5506_v14 = vcombine.low %v5492_v48, %v5493_v4  ;;  %v9993_v60 = vld [vmem:[%s14198_s5 + $0x328] ss:$16 sps:$4 sm:$0xff]   ;;  %v9998_v48 = vld [vmem:[%s14198_s5 + $0x344] ss:$16 sps:$4 sm:$0xff]   ;;  %v10001_v4 = vld [vmem:[%s14198_s5 + $0x34c] ss:$16 sps:$4 sm:$0xff]  }
 0x571   :  { %v5513_v43 = vrot.slane %v5506_v14, %v14281_v31  ;;  %v5522_v57 = vrot.slane %v5505_v21, %v5521_v49  ;;  %v9936_v31 = vld [vmem:[%s14198_s5 + $0x200] ss:$16 sps:$4 sm:$0xff]   ;;  %v9999_v14 = vld [vmem:[%s14198_s5 + $0x348] ss:$16 sps:$4 sm:$0xff]  }
 0x572   :  { %v9996_v21 = vld [vmem:[%s14198_s5 + $0x340] ss:$16 sps:$4 sm:$0xff]  }
 0x573   :  { %v5529_v2 = vrot.slane %v5513_v43, %v5521_v49  ;;  %v10004_v49 = vld [vmem:[%s14198_s5 + $0x364] ss:$16 sps:$4 sm:$0xff]   ;;  %v10007_v43 = vld [vmem:[%s14198_s5 + $0x36c] ss:$16 sps:$4 sm:$0xff]  }
 0x575   :  { %v5532_v33 = vcombine.low %v5522_v57, %v5529_v2  ;;  %v5533_v37 = vcombine.high %v5522_v57, %v5529_v2  ;;  %v10002_v57 = vld [vmem:[%s14198_s5 + $0x360] ss:$16 sps:$4 sm:$0xff]   ;;  %v10005_v2 = vld [vmem:[%s14198_s5 + $0x368] ss:$16 sps:$4 sm:$0xff]  }
 0x577   :  { %v5540_v40 = vrot.slane %v5532_v33, %v5455_v52  ;;  %v5547_v28 = vrot.slane %v5533_v37, %v5455_v52  ;;  %v10010_v33 = vld [vmem:[%s14198_s5 + $0x384] ss:$16 sps:$4 sm:$0xff]   ;;  %v10013_v37 = vld [vmem:[%s14198_s5 + $0x38c] ss:$16 sps:$4 sm:$0xff]  }
 0x579   :  { %v5548_v9 = vcombine.high %v5540_v40, %v5540_v40  ;;  %v5549_v50 = vcombine.high %v5547_v28, %v5547_v28  ;;  %v13487_v26 = vrot.slane %v5547_v28, %v5455_v52  ;;  %v13489_v13 = vrot.slane %v5540_v40, %v5455_v52  ;;  %v10008_v40 = vld [vmem:[%s14198_s5 + $0x380] ss:$16 sps:$4 sm:$0xff]   ;;  %v10011_v28 = vld [vmem:[%s14198_s5 + $0x388] ss:$16 sps:$4 sm:$0xff]  }
 0x57b   :  { %v5570_v32 = vrot.slane %v5548_v9, %v5455_v52  ;;  %v13491_v62 = vrot.slane %v5549_v50, %v5455_v52  ;;  %v5590_v25 = vpack.c.bf16 %v13489_v13, %v13489_v13  ;;  %v9954_v52 = vld [vmem:[%s14198_s5 + $0x260] ss:$16 sps:$4 sm:$0xff]   ;;  %v10016_v9 = vld [vmem:[%s14198_s5 + $0x3a4] ss:$16 sps:$4 sm:$0xff]   ;;  %v10019_v50 = vld [vmem:[%s14198_s5 + $0x3ac] ss:$16 sps:$4 sm:$0xff]  }
 0x57d   :  { %v5591_v17 = vpack.c.bf16 %v5570_v32, %v5570_v32  ;;  %v5580_v58 = vcombine.high %v5570_v32, %v5570_v32  ;;  %v10014_v32 = vld [vmem:[%s14198_s5 + $0x3a0] ss:$16 sps:$4 sm:$0xff]  }
 0x57f   :  { %7188 = vmatprep.mubr.bf16.mxu1 %v5591_v17  ;;  %7352 = vmatprep.mubr.bf16.mxu0 %v5591_v17  ;;  %v5593_v53 = vpack.c.bf16 %v5580_v58, %v5580_v58  ;;  %v10017_v17 = vld [vmem:[%s14198_s5 + $0x3a8] ss:$16 sps:$4 sm:$0xff]   ;;  %v10020_v58 = vld [vmem:[%s14198_s5 + $0x3c0] ss:$16 sps:$4 sm:$0xff]  }
 0x580   :  { %7189 = vmatmul.mubr.bf16.vlgmr.msra.gmra.mrb[16].mxu1 %v5590_v25  ;;  %7353 = vmatmul.mubr.bf16.vlgmr.msra.gmra.mrb[28].mxu0 %v5590_v25  ;;  %v10023_v25 = vld [vmem:[%s14198_s5 + $0x3c8] ss:$16 sps:$4 sm:$0xff]  }
 0x581   :  { %7198 = vmatpush1.bf16.msra.mxu1 %v9936_v31  ;;  %7362 = vmatpush1.bf16.msra.mxu0 %v9939_v11  ;;  %v10022_v31 = vld [vmem:[%s14198_s5 + $0x3c4] ss:$16 sps:$4 sm:$0xff]   ;;  %v10025_v11 = vld [vmem:[%s14198_s5 + $0x3cc] ss:$16 sps:$4 sm:$0xff]  }
 0x582   :  { %7229 = vmatprep.mubr.bf16.mxu1 %v5593_v53  ;;  %7393 = vmatprep.mubr.bf16.mxu0 %v5593_v53  ;;  %v10028_v53 = vld [vmem:[%s14198_s5 + $0x3e4] ss:$16 sps:$4 sm:$0xff]  }
 0x583   :  { %7199 = vmatprep.subr.bf16.mxu1 %v9944_v59  ;;  %7363 = vmatprep.subr.bf16.mxu0 %v9947_v22  ;;  %v10031_v59 = vld [vmem:[%s14198_s5 + $0x3ec] ss:$16 sps:$4 sm:$0xff]   ;;  %v10026_v22 = vld [vmem:[%s14198_s5 + $0x3e0] ss:$16 sps:$4 sm:$0xff]  }
 0x585   :  { %7200 = vmatpush1.bf16.msra.mxu1 %v9942_v35  ;;  %7364 = vmatpush1.bf16.msra.mxu0 %v9945_v10  ;;  %v10029_v35 = vld [vmem:[%s14198_s5 + $0x3e8] ss:$16 sps:$4 sm:$0xff]   ;;  %v5578_v10 = vcombine.high %v13489_v13, %v13489_v13 }
 0x586   :  { %7201 = vmatprep.subr.bf16.mxu1 %v9950_v12  ;;  %7365 = vmatprep.subr.bf16.mxu0 %v9953_v42  ;;  %v10034_v12 = vld [vmem:[%s14198_s5 + $0x404] ss:$16 sps:$4 sm:$0xff]   ;;  %v10037_v42 = vld [vmem:[%s14198_s5 + $0x40c] ss:$16 sps:$4 sm:$0xff]   ;;  %v10035_v13 = vld [vmem:[%s14198_s5 + $0x408] ss:$16 sps:$4 sm:$0xff]  }
 0x589   :  { %7202 = vmatpush1.bf16.msra.mxu1 %v9948_v24  ;;  %7366 = vmatpush1.bf16.msra.mxu0 %v9951_v3  ;;  %v10032_v24 = vld [vmem:[%s14198_s5 + $0x400] ss:$16 sps:$4 sm:$0xff]   ;;  %v5592_v3 = vpack.c.bf16 %v5578_v10, %v5578_v10  ;;  %v10113_v10 = vld [vmem:[%s14198_s5 + $0x5a8] ss:$16 sps:$4 sm:$0xff]  }
 0x58a   :  { %7203 = vmatprep.subr.bf16.mxu1 %v9956_v36  ;;  %7367 = vmatprep.subr.bf16.mxu0 %v9959_v8  ;;  %v5595_v36 = vpack.c.bf16 %v13491_v62, %v13491_v62  ;;  %v10040_v8 = vld [vmem:[%s14198_s5 + $0x424] ss:$16 sps:$4 sm:$0xff]  }
 0x58d   :  { %7204 = vmatpush1.bf16.msra.mxu1 %v9954_v52  ;;  %7368 = vmatpush1.bf16.msra.mxu0 %v9957_v56  ;;  %v10043_v52 = vld [vmem:[%s14198_s5 + $0x42c] ss:$16 sps:$4 sm:$0xff]   ;;  %v10038_v56 = vld [vmem:[%s14198_s5 + $0x420] ss:$16 sps:$4 sm:$0xff]  }
 0x58e   :  { %7205 = vmatprep.subr.bf16.mxu1 %v9962_v55  ;;  %7369 = vmatprep.subr.bf16.mxu0 %v9965_v0  ;;  %v10041_v55 = vld [vmem:[%s14198_s5 + $0x428] ss:$16 sps:$4 sm:$0xff]   ;;  %v10046_v0 = vld [vmem:[%s14198_s5 + $0x444] ss:$16 sps:$4 sm:$0xff]  }
 0x591   :  { %7206 = vmatpush1.bf16.msra.mxu1 %v9960_v5  ;;  %7370 = vmatpush1.bf16.msra.mxu0 %v9963_v63  ;;  %v10049_v5 = vld [vmem:[%s14198_s5 + $0x44c] ss:$16 sps:$4 sm:$0xff]   ;;  %v10044_v63 = vld [vmem:[%s14198_s5 + $0x440] ss:$16 sps:$4 sm:$0xff]  }
 0x592   :  { %7207 = vmatprep.subr.bf16.mxu1 %v9968_v44  ;;  %7371 = vmatprep.subr.bf16.mxu0 %v9971_v45  ;;  %v10047_v44 = vld [vmem:[%s14198_s5 + $0x448] ss:$16 sps:$4 sm:$0xff]   ;;  %v10052_v45 = vld [vmem:[%s14198_s5 + $0x464] ss:$16 sps:$4 sm:$0xff]  }
 0x595   :  { %7208 = vmatpush1.bf16.msra.mxu1 %v9966_v27  ;;  %7372 = vmatpush1.bf16.msra.mxu0 %v9969_v41  ;;  %v10055_v27 = vld [vmem:[%s14198_s5 + $0x46c] ss:$16 sps:$4 sm:$0xff]   ;;  %v10050_v41 = vld [vmem:[%s14198_s5 + $0x460] ss:$16 sps:$4 sm:$0xff]  }
 0x596   :  { %7209 = vmatprep.subr.bf16.mxu1 %v9974_v54  ;;  %7373 = vmatprep.subr.bf16.mxu0 %v9977_v6  ;;  %v10053_v54 = vld [vmem:[%s14198_s5 + $0x468] ss:$16 sps:$4 sm:$0xff]   ;;  %v10058_v6 = vld [vmem:[%s14198_s5 + $0x484] ss:$16 sps:$4 sm:$0xff]  }
 0x599   :  { %7210 = vmatpush1.bf16.msra.mxu1 %v9972_v18  ;;  %7374 = vmatpush1.bf16.msra.mxu0 %v9975_v38  ;;  %v10061_v18 = vld [vmem:[%s14198_s5 + $0x48c] ss:$16 sps:$4 sm:$0xff]   ;;  %v10056_v38 = vld [vmem:[%s14198_s5 + $0x480] ss:$16 sps:$4 sm:$0xff]  }
 0x59a   :  { %7211 = vmatprep.subr.bf16.mxu1 %v9980_v23  ;;  %7375 = vmatprep.subr.bf16.mxu0 %v9983_v1  ;;  %v10059_v23 = vld [vmem:[%s14198_s5 + $0x488] ss:$16 sps:$4 sm:$0xff]   ;;  %v10064_v1 = vld [vmem:[%s14198_s5 + $0x4a4] ss:$16 sps:$4 sm:$0xff]  }
 0x59d   :  { %7212 = vmatpush1.bf16.msra.mxu1 %v9978_v51  ;;  %7376 = vmatpush1.bf16.msra.mxu0 %v9981_v7  ;;  %v10067_v51 = vld [vmem:[%s14198_s5 + $0x4ac] ss:$16 sps:$4 sm:$0xff]   ;;  %v10062_v7 = vld [vmem:[%s14198_s5 + $0x4a0] ss:$16 sps:$4 sm:$0xff]  }
 0x59e   :  { %7213 = vmatprep.subr.bf16.mxu1 %v9986_v15  ;;  %7377 = vmatprep.subr.bf16.mxu0 %v9989_v39  ;;  %v10065_v15 = vld [vmem:[%s14198_s5 + $0x4a8] ss:$16 sps:$4 sm:$0xff]   ;;  %v10070_v39 = vld [vmem:[%s14198_s5 + $0x4c4] ss:$16 sps:$4 sm:$0xff]  }
 0x5a1   :  { %7214 = vmatpush1.bf16.msra.mxu1 %v9984_v46  ;;  %7378 = vmatpush1.bf16.msra.mxu0 %v9987_v20  ;;  %v10073_v46 = vld [vmem:[%s14198_s5 + $0x4cc] ss:$16 sps:$4 sm:$0xff]   ;;  %v10068_v20 = vld [vmem:[%s14198_s5 + $0x4c0] ss:$16 sps:$4 sm:$0xff]  }
 0x5a2   :  { %7215 = vmatprep.subr.bf16.mxu1 %v9992_v47  ;;  %7379 = vmatprep.subr.bf16.mxu0 %v9995_v29  ;;  %v10071_v47 = vld [vmem:[%s14198_s5 + $0x4c8] ss:$16 sps:$4 sm:$0xff]   ;;  %v10076_v29 = vld [vmem:[%s14198_s5 + $0x4e4] ss:$16 sps:$4 sm:$0xff]  }
 0x5a5   :  { %7216 = vmatpush1.bf16.msra.mxu1 %v9990_v19  ;;  %7380 = vmatpush1.bf16.msra.mxu0 %v9993_v60  ;;  %v10079_v19 = vld [vmem:[%s14198_s5 + $0x4ec] ss:$16 sps:$4 sm:$0xff]   ;;  %v10074_v60 = vld [vmem:[%s14198_s5 + $0x4e0] ss:$16 sps:$4 sm:$0xff]  }
 0x5a6   :  { %7217 = vmatprep.subr.bf16.mxu1 %v9998_v48  ;;  %7381 = vmatprep.subr.bf16.mxu0 %v10001_v4  ;;  %v10077_v48 = vld [vmem:[%s14198_s5 + $0x4e8] ss:$16 sps:$4 sm:$0xff]   ;;  %v10082_v4 = vld [vmem:[%s14198_s5 + $0x504] ss:$16 sps:$4 sm:$0xff]  }
 0x5a9   :  { %7218 = vmatpush1.bf16.msra.mxu1 %v9996_v21  ;;  %7382 = vmatpush1.bf16.msra.mxu0 %v9999_v14  ;;  %v10085_v21 = vld [vmem:[%s14198_s5 + $0x50c] ss:$16 sps:$4 sm:$0xff]   ;;  %v10080_v14 = vld [vmem:[%s14198_s5 + $0x500] ss:$16 sps:$4 sm:$0xff]  }
 0x5aa   :  { %7219 = vmatprep.subr.bf16.mxu1 %v10004_v49  ;;  %7383 = vmatprep.subr.bf16.mxu0 %v10007_v43  ;;  %v10083_v49 = vld [vmem:[%s14198_s5 + $0x508] ss:$16 sps:$4 sm:$0xff]   ;;  %v10088_v43 = vld [vmem:[%s14198_s5 + $0x524] ss:$16 sps:$4 sm:$0xff]  }
 0x5ad   :  { %7220 = vmatpush1.bf16.msra.mxu1 %v10002_v57  ;;  %7384 = vmatpush1.bf16.msra.mxu0 %v10005_v2  ;;  %v10091_v57 = vld [vmem:[%s14198_s5 + $0x52c] ss:$16 sps:$4 sm:$0xff]   ;;  %v10086_v2 = vld [vmem:[%s14198_s5 + $0x520] ss:$16 sps:$4 sm:$0xff]  }
 0x5ae   :  { %7221 = vmatprep.subr.bf16.mxu1 %v10010_v33  ;;  %7385 = vmatprep.subr.bf16.mxu0 %v10013_v37  ;;  %v10089_v33 = vld [vmem:[%s14198_s5 + $0x528] ss:$16 sps:$4 sm:$0xff]   ;;  %v10094_v37 = vld [vmem:[%s14198_s5 + $0x544] ss:$16 sps:$4 sm:$0xff]  }
 0x5b1   :  { %7222 = vmatpush1.bf16.msra.mxu1 %v10008_v40  ;;  %7386 = vmatpush1.bf16.msra.mxu0 %v10011_v28  ;;  %v10097_v40 = vld [vmem:[%s14198_s5 + $0x54c] ss:$16 sps:$4 sm:$0xff]   ;;  %v10092_v28 = vld [vmem:[%s14198_s5 + $0x540] ss:$16 sps:$4 sm:$0xff]  }
 0x5b2   :  { %7223 = vmatprep.subr.bf16.mxu1 %v10016_v9  ;;  %7387 = vmatprep.subr.bf16.mxu0 %v10019_v50  ;;  %v10095_v9 = vld [vmem:[%s14198_s5 + $0x548] ss:$16 sps:$4 sm:$0xff]   ;;  %v10100_v50 = vld [vmem:[%s14198_s5 + $0x564] ss:$16 sps:$4 sm:$0xff]  }
 0x5b5   :  { %7224 = vmatpush1.bf16.msra.mxu1 %v10014_v32  ;;  %7388 = vmatpush1.bf16.msra.mxu0 %v10017_v17  ;;  %v10103_v32 = vld [vmem:[%s14198_s5 + $0x56c] ss:$16 sps:$4 sm:$0xff]   ;;  %v10098_v17 = vld [vmem:[%s14198_s5 + $0x560] ss:$16 sps:$4 sm:$0xff]  }
 0x5b6   :  { %7225 = vmatprep.subr.bf16.mxu1 %v10022_v31  ;;  %7389 = vmatprep.subr.bf16.mxu0 %v10025_v11  ;;  %v10101_v31 = vld [vmem:[%s14198_s5 + $0x568] ss:$16 sps:$4 sm:$0xff]   ;;  %v10106_v11 = vld [vmem:[%s14198_s5 + $0x584] ss:$16 sps:$4 sm:$0xff]  }
 0x5b9   :  { %7226 = vmatpush1.bf16.msra.mxu1 %v10020_v58  ;;  %7390 = vmatpush1.bf16.msra.mxu0 %v10023_v25  ;;  %v10109_v58 = vld [vmem:[%s14198_s5 + $0x58c] ss:$16 sps:$4 sm:$0xff]   ;;  %v10104_v25 = vld [vmem:[%s14198_s5 + $0x580] ss:$16 sps:$4 sm:$0xff]  }
 0x5ba   :  { %7227 = vmatprep.subr.bf16.mxu1 %v10028_v53  ;;  %7391 = vmatprep.subr.bf16.mxu0 %v10031_v59  ;;  %v10107_v53 = vld [vmem:[%s14198_s5 + $0x588] ss:$16 sps:$4 sm:$0xff]   ;;  %v10112_v59 = vld [vmem:[%s14198_s5 + $0x5a4] ss:$16 sps:$4 sm:$0xff]  }
 0x5bd   :  { %7228 = vmatpush1.bf16.msra.mxu1 %v10026_v22  ;;  %7392 = vmatpush1.bf16.msra.mxu0 %v10029_v35  ;;  %v10115_v22 = vld [vmem:[%s14198_s5 + $0x5ac] ss:$16 sps:$4 sm:$0xff]   ;;  %v10110_v35 = vld [vmem:[%s14198_s5 + $0x5a0] ss:$16 sps:$4 sm:$0xff]  }
 0x5be   :  { %7238 = vmatprep.subr.bf16.mxu1 %v10034_v12  ;;  %7402 = vmatprep.subr.bf16.mxu0 %v10037_v42  ;;  %v10118_v12 = vld [vmem:[%s14198_s5 + $0x5c4] ss:$16 sps:$4 sm:$0xff]   ;;  %v10121_v42 = vld [vmem:[%s14198_s5 + $0x5cc] ss:$16 sps:$4 sm:$0xff]  }
 0x5c0   :  { %7230 = vmatmul.mubr.bf16.vlgmr.msra.gmra.mrb[16].mxu1 %v5592_v3  ;;  %7394 = vmatmul.mubr.bf16.vlgmr.msra.gmra.mrb[28].mxu0 %v5592_v3  ;;  %v10119_v3 = vld [vmem:[%s14198_s5 + $0x5c8] ss:$16 sps:$4 sm:$0xff]  }
 0x5c1   :  { %7239 = vmatpush1.bf16.msra.mxu1 %v10032_v24  ;;  %7270 = vmatprep.mubr.bf16.mxu1 %v5595_v36  ;;  %v10116_v24 = vld [vmem:[%s14198_s5 + $0x5c0] ss:$16 sps:$4 sm:$0xff]  }
 0x5c2   :  { %7403 = vmatpush1.bf16.msra.mxu0 %v10035_v13  ;;  %7434 = vmatprep.mubr.bf16.mxu0 %v5595_v36  ;;  %v10124_v13 = vld [vmem:[%s14198_s5 + $0x5e4] ss:$16 sps:$4 sm:$0xff]   ;;  %v10127_v36 = vld [vmem:[%s14198_s5 + $0x5ec] ss:$16 sps:$4 sm:$0xff]  }
 0x5c3   :  { %7240 = vmatprep.subr.bf16.mxu1 %v10040_v8  ;;  %7404 = vmatprep.subr.bf16.mxu0 %v10043_v52  ;;  %v10122_v8 = vld [vmem:[%s14198_s5 + $0x5e0] ss:$16 sps:$4 sm:$0xff]   ;;  %v10125_v52 = vld [vmem:[%s14198_s5 + $0x5e8] ss:$16 sps:$4 sm:$0xff]  }
 0x5c5   :  { %7241 = vmatpush1.bf16.msra.mxu1 %v10038_v56  ;;  %v10130_v56 = vld [vmem:[%s14198_s5 + $0x604] ss:$16 sps:$4 sm:$0xff]  }
 0x5c6   :  { %7405 = vmatpush1.bf16.msra.mxu0 %v10041_v55  ;;  %7242 = vmatprep.subr.bf16.mxu1 %v10046_v0  ;;  %v10133_v55 = vld [vmem:[%s14198_s5 + $0x60c] ss:$16 sps:$4 sm:$0xff]   ;;  %v5581_v0 = vcombine.high %v13491_v62, %v13491_v62 }
 0x5c7   :  { %7406 = vmatprep.subr.bf16.mxu0 %v10049_v5  ;;  %v10128_v5 = vld [vmem:[%s14198_s5 + $0x600] ss:$16 sps:$4 sm:$0xff]  }
 0x5c8   :  { %v5597_v62 = vpack.c.bf16 %v5581_v0, %v5581_v0  ;;  %v10212_v0 = vld [vmem:[%s14198_s5 + $0x7c0] ss:$16 sps:$4 sm:$0xff]  }
 0x5c9   :  { %7243 = vmatpush1.bf16.msra.mxu1 %v10044_v63  ;;  %v5594_v63 = vpack.c.bf16 %v13487_v26, %v13487_v26 }
 0x5ca   :  { %7407 = vmatpush1.bf16.msra.mxu0 %v10047_v44  ;;  %7244 = vmatprep.subr.bf16.mxu1 %v10052_v45  ;;  %v10131_v44 = vld [vmem:[%s14198_s5 + $0x608] ss:$16 sps:$4 sm:$0xff]   ;;  %v10136_v45 = vld [vmem:[%s14198_s5 + $0x624] ss:$16 sps:$4 sm:$0xff]  }
 0x5cb   :  { %7408 = vmatprep.subr.bf16.mxu0 %v10055_v27  ;;  %v10139_v27 = vld [vmem:[%s14198_s5 + $0x62c] ss:$16 sps:$4 sm:$0xff]  }
 0x5cd   :  { %7245 = vmatpush1.bf16.msra.mxu1 %v10050_v41  ;;  %v10134_v41 = vld [vmem:[%s14198_s5 + $0x620] ss:$16 sps:$4 sm:$0xff]  }
 0x5ce   :  { %7409 = vmatpush1.bf16.msra.mxu0 %v10053_v54  ;;  %7246 = vmatprep.subr.bf16.mxu1 %v10058_v6  ;;  %v10137_v54 = vld [vmem:[%s14198_s5 + $0x628] ss:$16 sps:$4 sm:$0xff]   ;;  %v10142_v6 = vld [vmem:[%s14198_s5 + $0x644] ss:$16 sps:$4 sm:$0xff]  }
 0x5cf   :  { %7410 = vmatprep.subr.bf16.mxu0 %v10061_v18  ;;  %v10145_v18 = vld [vmem:[%s14198_s5 + $0x64c] ss:$16 sps:$4 sm:$0xff]  }
 0x5d1   :  { %7247 = vmatpush1.bf16.msra.mxu1 %v10056_v38  ;;  %v10140_v38 = vld [vmem:[%s14198_s5 + $0x640] ss:$16 sps:$4 sm:$0xff]  }
 0x5d2   :  { %7411 = vmatpush1.bf16.msra.mxu0 %v10059_v23  ;;  %7248 = vmatprep.subr.bf16.mxu1 %v10064_v1  ;;  %v10143_v23 = vld [vmem:[%s14198_s5 + $0x648] ss:$16 sps:$4 sm:$0xff]   ;;  %v10148_v1 = vld [vmem:[%s14198_s5 + $0x664] ss:$16 sps:$4 sm:$0xff]  }
 0x5d3   :  { %7412 = vmatprep.subr.bf16.mxu0 %v10067_v51  ;;  %v10151_v51 = vld [vmem:[%s14198_s5 + $0x66c] ss:$16 sps:$4 sm:$0xff]  }
 0x5d5   :  { %7249 = vmatpush1.bf16.msra.mxu1 %v10062_v7  ;;  %v10146_v7 = vld [vmem:[%s14198_s5 + $0x660] ss:$16 sps:$4 sm:$0xff]  }
 0x5d6   :  { %7413 = vmatpush1.bf16.msra.mxu0 %v10065_v15  ;;  %7250 = vmatprep.subr.bf16.mxu1 %v10070_v39  ;;  %v10149_v15 = vld [vmem:[%s14198_s5 + $0x668] ss:$16 sps:$4 sm:$0xff]   ;;  %v10154_v39 = vld [vmem:[%s14198_s5 + $0x684] ss:$16 sps:$4 sm:$0xff]  }
 0x5d7   :  { %7414 = vmatprep.subr.bf16.mxu0 %v10073_v46  ;;  %v10157_v46 = vld [vmem:[%s14198_s5 + $0x68c] ss:$16 sps:$4 sm:$0xff]  }
 0x5d9   :  { %7251 = vmatpush1.bf16.msra.mxu1 %v10068_v20  ;;  %v10152_v20 = vld [vmem:[%s14198_s5 + $0x680] ss:$16 sps:$4 sm:$0xff]  }
 0x5da   :  { %7415 = vmatpush1.bf16.msra.mxu0 %v10071_v47  ;;  %7252 = vmatprep.subr.bf16.mxu1 %v10076_v29  ;;  %v10155_v47 = vld [vmem:[%s14198_s5 + $0x688] ss:$16 sps:$4 sm:$0xff]   ;;  %v10160_v29 = vld [vmem:[%s14198_s5 + $0x6a4] ss:$16 sps:$4 sm:$0xff]  }
 0x5db   :  { %7416 = vmatprep.subr.bf16.mxu0 %v10079_v19  ;;  %v10163_v19 = vld [vmem:[%s14198_s5 + $0x6ac] ss:$16 sps:$4 sm:$0xff]  }
 0x5dd   :  { %7253 = vmatpush1.bf16.msra.mxu1 %v10074_v60  ;;  %v10158_v60 = vld [vmem:[%s14198_s5 + $0x6a0] ss:$16 sps:$4 sm:$0xff]  }
 0x5de   :  { %7417 = vmatpush1.bf16.msra.mxu0 %v10077_v48  ;;  %7254 = vmatprep.subr.bf16.mxu1 %v10082_v4  ;;  %v10161_v48 = vld [vmem:[%s14198_s5 + $0x6a8] ss:$16 sps:$4 sm:$0xff]   ;;  %v10166_v4 = vld [vmem:[%s14198_s5 + $0x6c4] ss:$16 sps:$4 sm:$0xff]  }
 0x5df   :  { %7418 = vmatprep.subr.bf16.mxu0 %v10085_v21  ;;  %v10169_v21 = vld [vmem:[%s14198_s5 + $0x6cc] ss:$16 sps:$4 sm:$0xff]  }
 0x5e1   :  { %7255 = vmatpush1.bf16.msra.mxu1 %v10080_v14  ;;  %v10164_v14 = vld [vmem:[%s14198_s5 + $0x6c0] ss:$16 sps:$4 sm:$0xff]  }
 0x5e2   :  { %7419 = vmatpush1.bf16.msra.mxu0 %v10083_v49  ;;  %7256 = vmatprep.subr.bf16.mxu1 %v10088_v43  ;;  %v10167_v49 = vld [vmem:[%s14198_s5 + $0x6c8] ss:$16 sps:$4 sm:$0xff]   ;;  %v10172_v43 = vld [vmem:[%s14198_s5 + $0x6e4] ss:$16 sps:$4 sm:$0xff]  }
 0x5e3   :  { %7420 = vmatprep.subr.bf16.mxu0 %v10091_v57  ;;  %v10175_v57 = vld [vmem:[%s14198_s5 + $0x6ec] ss:$16 sps:$4 sm:$0xff]  }
 0x5e5   :  { %7257 = vmatpush1.bf16.msra.mxu1 %v10086_v2  ;;  %v10170_v2 = vld [vmem:[%s14198_s5 + $0x6e0] ss:$16 sps:$4 sm:$0xff]  }
 0x5e6   :  { %7421 = vmatpush1.bf16.msra.mxu0 %v10089_v33  ;;  %7258 = vmatprep.subr.bf16.mxu1 %v10094_v37  ;;  %v10173_v33 = vld [vmem:[%s14198_s5 + $0x6e8] ss:$16 sps:$4 sm:$0xff]   ;;  %v10178_v37 = vld [vmem:[%s14198_s5 + $0x704] ss:$16 sps:$4 sm:$0xff]  }
 0x5e7   :  { %7422 = vmatprep.subr.bf16.mxu0 %v10097_v40  ;;  %v10181_v40 = vld [vmem:[%s14198_s5 + $0x70c] ss:$16 sps:$4 sm:$0xff]  }
 0x5e9   :  { %7259 = vmatpush1.bf16.msra.mxu1 %v10092_v28  ;;  %v10176_v28 = vld [vmem:[%s14198_s5 + $0x700] ss:$16 sps:$4 sm:$0xff]  }
 0x5ea   :  { %7423 = vmatpush1.bf16.msra.mxu0 %v10095_v9  ;;  %7260 = vmatprep.subr.bf16.mxu1 %v10100_v50  ;;  %v10179_v9 = vld [vmem:[%s14198_s5 + $0x708] ss:$16 sps:$4 sm:$0xff]   ;;  %v10184_v50 = vld [vmem:[%s14198_s5 + $0x724] ss:$16 sps:$4 sm:$0xff]  }
 0x5eb   :  { %7424 = vmatprep.subr.bf16.mxu0 %v10103_v32  ;;  %v10187_v32 = vld [vmem:[%s14198_s5 + $0x72c] ss:$16 sps:$4 sm:$0xff]  }
 0x5ed   :  { %7261 = vmatpush1.bf16.msra.mxu1 %v10098_v17  ;;  %v10182_v17 = vld [vmem:[%s14198_s5 + $0x720] ss:$16 sps:$4 sm:$0xff]  }
 0x5ee   :  { %7425 = vmatpush1.bf16.msra.mxu0 %v10101_v31  ;;  %7262 = vmatprep.subr.bf16.mxu1 %v10106_v11  ;;  %v10185_v31 = vld [vmem:[%s14198_s5 + $0x728] ss:$16 sps:$4 sm:$0xff]   ;;  %v10190_v11 = vld [vmem:[%s14198_s5 + $0x744] ss:$16 sps:$4 sm:$0xff]  }
 0x5ef   :  { %7426 = vmatprep.subr.bf16.mxu0 %v10109_v58  ;;  %v10193_v58 = vld [vmem:[%s14198_s5 + $0x74c] ss:$16 sps:$4 sm:$0xff]  }
 0x5f1   :  { %7263 = vmatpush1.bf16.msra.mxu1 %v10104_v25  ;;  %v10188_v25 = vld [vmem:[%s14198_s5 + $0x740] ss:$16 sps:$4 sm:$0xff]  }
 0x5f2   :  { %7427 = vmatpush1.bf16.msra.mxu0 %v10107_v53  ;;  %7264 = vmatprep.subr.bf16.mxu1 %v10112_v59  ;;  %v10191_v53 = vld [vmem:[%s14198_s5 + $0x748] ss:$16 sps:$4 sm:$0xff]   ;;  %v10196_v59 = vld [vmem:[%s14198_s5 + $0x764] ss:$16 sps:$4 sm:$0xff]  }
 0x5f3   :  { %7428 = vmatprep.subr.bf16.mxu0 %v10115_v22  ;;  %v10199_v22 = vld [vmem:[%s14198_s5 + $0x76c] ss:$16 sps:$4 sm:$0xff]  }
 0x5f5   :  { %7265 = vmatpush1.bf16.msra.mxu1 %v10110_v35  ;;  %v10194_v35 = vld [vmem:[%s14198_s5 + $0x760] ss:$16 sps:$4 sm:$0xff]  }
 0x5f6   :  { %7429 = vmatpush1.bf16.msra.mxu0 %v10113_v10  ;;  %7266 = vmatprep.subr.bf16.mxu1 %v10118_v12  ;;  %v10197_v10 = vld [vmem:[%s14198_s5 + $0x768] ss:$16 sps:$4 sm:$0xff]   ;;  %v10202_v12 = vld [vmem:[%s14198_s5 + $0x784] ss:$16 sps:$4 sm:$0xff]  }
 0x5f7   :  { %7430 = vmatprep.subr.bf16.mxu0 %v10121_v42  ;;  %v10205_v42 = vld [vmem:[%s14198_s5 + $0x78c] ss:$16 sps:$4 sm:$0xff]  }
 0x5f9   :  { %7267 = vmatpush1.bf16.msra.mxu1 %v10116_v24  ;;  %v10200_v24 = vld [vmem:[%s14198_s5 + $0x780] ss:$16 sps:$4 sm:$0xff]  }
 0x5fa   :  { %7431 = vmatpush1.bf16.msra.mxu0 %v10119_v3  ;;  %7268 = vmatprep.subr.bf16.mxu1 %v10124_v13  ;;  %v10203_v3 = vld [vmem:[%s14198_s5 + $0x788] ss:$16 sps:$4 sm:$0xff]   ;;  %v10208_v13 = vld [vmem:[%s14198_s5 + $0x7a4] ss:$16 sps:$4 sm:$0xff]  }
 0x5fb   :  { %7432 = vmatprep.subr.bf16.mxu0 %v10127_v36  ;;  %v10211_v36 = vld [vmem:[%s14198_s5 + $0x7ac] ss:$16 sps:$4 sm:$0xff]  }
 0x5fd   :  { %7269 = vmatpush1.bf16.msra.mxu1 %v10122_v8  ;;  %v10206_v8 = vld [vmem:[%s14198_s5 + $0x7a0] ss:$16 sps:$4 sm:$0xff]  }
 0x5fe   :  { %7433 = vmatpush1.bf16.msra.mxu0 %v10125_v52  ;;  %7279 = vmatprep.subr.bf16.mxu1 %v10130_v56  ;;  %v10209_v52 = vld [vmem:[%s14198_s5 + $0x7a8] ss:$16 sps:$4 sm:$0xff]   ;;  %v10214_v56 = vld [vmem:[%s14198_s5 + $0x7c4] ss:$16 sps:$4 sm:$0xff]  }
 0x5ff   :  { %7443 = vmatprep.subr.bf16.mxu0 %v10133_v55  ;;  %v10217_v55 = vld [vmem:[%s14198_s5 + $0x7cc] ss:$16 sps:$4 sm:$0xff]  }
 0x600   :  { %7271 = vmatmul.mubr.bf16.vlgmr.msra.gmra.mrb[16].mxu1 %v5594_v63 }
 0x601   :  { %7435 = vmatmul.mubr.bf16.vlgmr.msra.gmra.mrb[28].mxu0 %v5594_v63  ;;  %7280 = vmatpush1.bf16.msra.mxu1 %v10128_v5  ;;  %v10215_v5 = vld [vmem:[%s14198_s5 + $0x7c8] ss:$16 sps:$4 sm:$0xff]   ;;  %v10220_v63 = vld [vmem:[%s14198_s5 + $0x7e4] ss:$16 sps:$4 sm:$0xff]  }
 0x602   :  { %7311 = vmatprep.mubr.bf16.mxu1 %v5597_v62  ;;  %7444 = vmatpush1.bf16.msra.mxu0 %v10131_v44  ;;  %v10223_v44 = vld [vmem:[%s14198_s5 + $0x7ec] ss:$16 sps:$4 sm:$0xff]  }
 0x603   :  { %7475 = vmatprep.mubr.bf16.mxu0 %v5597_v62  ;;  %7281 = vmatprep.subr.bf16.mxu1 %v10136_v45  ;;  %v10218_v45 = vld [vmem:[%s14198_s5 + $0x7e0] ss:$16 sps:$4 sm:$0xff]   ;;  %v10221_v62 = vld [vmem:[%s14198_s5 + $0x7e8] ss:$16 sps:$4 sm:$0xff]  }
 0x604   :  { %7445 = vmatprep.subr.bf16.mxu0 %v10139_v27  ;;  %v5579_v27 = vcombine.high %v13487_v26, %v13487_v26  ;;  %v10227_v26 = vld [vmem:[%s14200_s7 + $0x8] sm:$0xff]  }
 0x605   :  { %7282 = vmatpush1.bf16.msra.mxu1 %v10134_v41  ;;  %v10224_v41 = vld [vmem:[%s14200_s7 + $0x40] sm:$0xff]  }
 0x606   :  { %7446 = vmatpush1.bf16.msra.mxu0 %v10137_v54  ;;  %7283 = vmatprep.subr.bf16.mxu1 %v10142_v6  ;;  %v10225_v54 = vld [vmem:[%s14200_s7] sm:$0xff]   ;;  %v5596_v6 = vpack.c.bf16 %v5579_v27, %v5579_v27 }
 0x607   :  { %7447 = vmatprep.subr.bf16.mxu0 %v10145_v18  ;;  %v10226_v18 = vld [vmem:[%s14200_s7 + $0x48] sm:$0xff]   ;;  %v8672_v27 = vld [vmem:[%s14201_s8] ss:$0 sm:$0xff] }
 0x609   :  { %7284 = vmatpush1.bf16.msra.mxu1 %v10140_v38  ;;  %v10228_v38 = vld [vmem:[%s14200_s7 + $0x50] sm:$0xff]  }
 0x60a   :  { %7448 = vmatpush1.bf16.msra.mxu0 %v10143_v23  ;;  %7285 = vmatprep.subr.bf16.mxu1 %v10148_v1  ;;  %v10229_v23 = vld [vmem:[%s14200_s7 + $0x10] sm:$0xff]   ;;  %v10230_v1 = vld [vmem:[%s14200_s7 + $0x58] sm:$0xff]  }
 0x60b   :  { %7449 = vmatprep.subr.bf16.mxu0 %v10151_v51  ;;  %v10231_v51 = vld [vmem:[%s14200_s7 + $0x18] sm:$0xff]  }
 0x60d   :  { %7286 = vmatpush1.bf16.msra.mxu1 %v10146_v7  ;;  %v10232_v7 = vld [vmem:[%s14200_s7 + $0x60] sm:$0xff]  }
 0x60e   :  { %7450 = vmatpush1.bf16.msra.mxu0 %v10149_v15  ;;  %7287 = vmatprep.subr.bf16.mxu1 %v10154_v39  ;;  %v10233_v15 = vld [vmem:[%s14200_s7 + $0x20] sm:$0xff]   ;;  %v10234_v39 = vld [vmem:[%s14200_s7 + $0x68] sm:$0xff]  }
 0x60f   :  { %7451 = vmatprep.subr.bf16.mxu0 %v10157_v46  ;;  %v10235_v46 = vld [vmem:[%s14200_s7 + $0x28] sm:$0xff]  }
 0x611   :  { %7288 = vmatpush1.bf16.msra.mxu1 %v10152_v20  ;;  %v10236_v20 = vld [vmem:[%s14200_s7 + $0x70] sm:$0xff]  }
 0x612   :  { %7452 = vmatpush1.bf16.msra.mxu0 %v10155_v47  ;;  %7289 = vmatprep.subr.bf16.mxu1 %v10160_v29  ;;  %v10237_v47 = vld [vmem:[%s14200_s7 + $0x30] sm:$0xff]   ;;  %v10238_v29 = vld [vmem:[%s14200_s7 + $0x78] sm:$0xff]  }
 0x613   :  { %7453 = vmatprep.subr.bf16.mxu0 %v10163_v19  ;;  %v10239_v19 = vld [vmem:[%s14200_s7 + $0x38] sm:$0xff]  }
 0x615   :  { %7290 = vmatpush1.bf16.msra.mxu1 %v10158_v60  ;;  %v10240_v60 = vld [vmem:[%s14200_s7 + $0xc0] sm:$0xff]  }
 0x616   :  { %7454 = vmatpush1.bf16.msra.mxu0 %v10161_v48  ;;  %7291 = vmatprep.subr.bf16.mxu1 %v10166_v4  ;;  %v5854_v48 = vld [vmem:[%s14199_s6] sm:$0xf] }
 0x617   :  { %7455 = vmatprep.subr.bf16.mxu0 %v10169_v21  ;;  %v5859_v4 = vrot.slane %v5854_v48, %v14299_v16  ;;  %v5863_v21 = vrot.slane %v5854_v48, %v14300_v34  ;;  %v10241_v16 = vld [vmem:[%s14200_s7 + $0x80] sm:$0xff]  }
 0x619   :  { %7292 = vmatpush1.bf16.msra.mxu1 %v10164_v14  ;;  %v5871_v14 = vrot.slane %v5854_v48, %v14301_v61  ;;  %v10242_v61 = vld [vmem:[%s14200_s7 + $0xc8] sm:$0xff]  }
 0x61a   :  { %7456 = vmatpush1.bf16.msra.mxu0 %v10167_v49  ;;  %7293 = vmatprep.subr.bf16.mxu1 %v10172_v43 }
 0x61b   :  { %7457 = vmatprep.subr.bf16.mxu0 %v10175_v57 }
 0x61d   :  { %7294 = vmatpush1.bf16.msra.mxu1 %v10170_v2 }
 0x61e   :  { %7458 = vmatpush1.bf16.msra.mxu0 %v10173_v33  ;;  %7295 = vmatprep.subr.bf16.mxu1 %v10178_v37 }
 0x61f   :  { %7459 = vmatprep.subr.bf16.mxu0 %v10181_v40 }
 0x621   :  { %7296 = vmatpush1.bf16.msra.mxu1 %v10176_v28 }
 0x622   :  { %7460 = vmatpush1.bf16.msra.mxu0 %v10179_v9  ;;  %7297 = vmatprep.subr.bf16.mxu1 %v10184_v50 }
 0x623   :  { %7461 = vmatprep.subr.bf16.mxu0 %v10187_v32 }
 0x625   :  { %7298 = vmatpush1.bf16.msra.mxu1 %v10182_v17 }
 0x626   :  { %7462 = vmatpush1.bf16.msra.mxu0 %v10185_v31  ;;  %7299 = vmatprep.subr.bf16.mxu1 %v10190_v11 }
 0x627   :  { %7463 = vmatprep.subr.bf16.mxu0 %v10193_v58 }
 0x629   :  { %7300 = vmatpush1.bf16.msra.mxu1 %v10188_v25 }
 0x62a   :  { %7464 = vmatpush1.bf16.msra.mxu0 %v10191_v53  ;;  %7301 = vmatprep.subr.bf16.mxu1 %v10196_v59  ;;  %v10243_v53 = vld [vmem:[%s14200_s7 + $0x88] sm:$0xff]   ;;  %v10244_v59 = vld [vmem:[%s14200_s7 + $0xd0] sm:$0xff]  }
 0x62b   :  { %7465 = vmatprep.subr.bf16.mxu0 %v10199_v22  ;;  %v10245_v22 = vld [vmem:[%s14200_s7 + $0x90] sm:$0xff]  }
 0x62d   :  { %7302 = vmatpush1.bf16.msra.mxu1 %v10194_v35  ;;  %v10246_v35 = vld [vmem:[%s14200_s7 + $0xd8] sm:$0xff]  }
 0x62e   :  { %7466 = vmatpush1.bf16.msra.mxu0 %v10197_v10  ;;  %7303 = vmatprep.subr.bf16.mxu1 %v10202_v12  ;;  %v10247_v10 = vld [vmem:[%s14200_s7 + $0x98] sm:$0xff]   ;;  %v10248_v12 = vld [vmem:[%s14200_s7 + $0xe0] sm:$0xff]  }
 0x62f   :  { %7467 = vmatprep.subr.bf16.mxu0 %v10205_v42  ;;  %v10249_v42 = vld [vmem:[%s14200_s7 + $0xa0] sm:$0xff]  }
 0x631   :  { %7304 = vmatpush1.bf16.msra.mxu1 %v10200_v24  ;;  %v10250_v24 = vld [vmem:[%s14200_s7 + $0xe8] sm:$0xff]  }
 0x632   :  { %7468 = vmatpush1.bf16.msra.mxu0 %v10203_v3  ;;  %7305 = vmatprep.subr.bf16.mxu1 %v10208_v13  ;;  %v10251_v3 = vld [vmem:[%s14200_s7 + $0xa8] sm:$0xff]   ;;  %v5867_v13 = vrot.slane %v5854_v48, %v14302_v30  ;;  %v10255_v30 = vld [vmem:[%s14200_s7 + $0xb8] sm:$0xff]  }
 0x633   :  { %7469 = vmatprep.subr.bf16.mxu0 %v10211_v36  ;;  %v10252_v36 = vld [vmem:[%s14200_s7 + $0xf0] sm:$0xff]  }
 0x635   :  { %7306 = vmatpush1.bf16.msra.mxu1 %v10206_v8  ;;  %v10253_v8 = vld [vmem:[%s14200_s7 + $0xb0] sm:$0xff]  }
 0x636   :  { %7470 = vmatpush1.bf16.msra.mxu0 %v10209_v52  ;;  %7307 = vmatprep.subr.bf16.mxu1 %v10214_v56  ;;  %v10254_v56 = vld [vmem:[%s14200_s7 + $0xf8] sm:$0xff]   ;;  %s10259_s7 = scalar_lea.vmem %s7843_s19, 32 }
 0x637   :  { %7471 = vmatprep.subr.bf16.mxu0 %v10217_v55  ;;  %p10260_p0 = scmp.ne.s32.totalorder %s7843_s19, %s10259_s7  ;;  %p10265_p2 = scmp.lt.s32.totalorder %s10259_s7, %s10259_s7 }
 0x639   :  { %7308 = vmatpush1.bf16.msra.mxu1 %v10212_v0  ;;  %p10266_p3 = por %p10265_p2, %p10264_p1 }
 0x63a   :  { %7472 = vmatpush1.bf16.msra.mxu0 %v10215_v5  ;;  %7309 = vmatprep.subr.bf16.mxu1 %v10220_v63 }
 0x63b   :  { %7473 = vmatprep.subr.bf16.mxu0 %v10223_v44  ;;  %p10267_p4 = pnand %p10266_p3, %p10260_p0 }
 0x63d   :  { %7310 = vmatpush1.bf16.msra.mxu1 %v10218_v45 }
 0x63e   :  { %7474 = vmatpush1.bf16.msra.mxu0 %v10221_v62  ;;  %8705 = vmatprep.subr.bf16.mxu1 %v10224_v41 }
 0x640   :  { %7312 = vmatmul.mubr.bf16.vlgmr.msra.gmra.mrb[16].mxu1 %v5596_v6 }
 0x641   :  { %7476 = vmatmul.mubr.bf16.vlgmr.msra.gmra.mrb[28].mxu0 %v5596_v6  ;;  %8706 = vmatpush3.bf16.msra.mxu1 %v10225_v54 }
 0x642   :  { %8707 = vmatprep.subr.bf16.mxu1 %v10226_v18 }
 0x645   :  { %8708 = vmatpush3.bf16.msra.mxu1 %v10227_v26 }
 0x646   :  { %8709 = vmatprep.subr.bf16.mxu1 %v10228_v38 }
 0x649   :  { %8710 = vmatpush3.bf16.msra.mxu1 %v10229_v23 }
 0x64a   :  { %8711 = vmatprep.subr.bf16.mxu1 %v10230_v1 }
 0x64d   :  { %8712 = vmatpush3.bf16.msra.mxu1 %v10231_v51 }
 0x64e   :  { %8713 = vmatprep.subr.bf16.mxu1 %v10232_v7 }
 0x651   :  { %8714 = vmatpush3.bf16.msra.mxu1 %v10233_v15 }
 0x652   :  { %8715 = vmatprep.subr.bf16.mxu1 %v10234_v39 }
 0x655   :  { %8716 = vmatpush3.bf16.msra.mxu1 %v10235_v46 }
 0x656   :  { %8717 = vmatprep.subr.bf16.mxu1 %v10236_v20 }
 0x659   :  { %8718 = vmatpush3.bf16.msra.mxu1 %v10237_v47 }
 0x65a   :  { %8719 = vmatprep.subr.bf16.mxu1 %v10238_v29 }
 0x65d   :  { %8720 = vmatpush3.bf16.msra.mxu1 %v10239_v19 }
 0x65e   :  { %8727 = vmatprep.subr.bf16.mxu1 %v10240_v60 }
 0x713   :  { %v7313_v49 = vpop.f32.mrb[16].mxu1 }
 0x714   :  { %v8757_v43 = vadd.f32 %v7313_v49, %v5859_v4  ;;  %v7477_v57 = vpop.f32.mrb[28].mxu0  ;;  %v7315_v2 = vpop.f32.mrb[17].mxu1 }
 0x715   :  { %v8758_v33 = vadd.f32 %v7315_v2, %v5863_v21  ;;  %v7479_v37 = vpop.f32.mrb[29].mxu0  ;;  %v7317_v40 = vpop.f32.mrb[18].mxu1  ;;  %v8759_v52 = vadd.f32 %v7477_v57, %v5867_v13 }
 0x716   :  { %v7484_v28 = vmax.f32 %v8757_v43, 0.0  ;;  %v8760_v9 = vadd.f32 %v7479_v37, %v5871_v14  ;;  %v7481_v50 = vpop.f32.mrb[30].mxu0  ;;  %v7318_v32 = vpop.f32.mrb[19].mxu1 }
 0x717   :  { %v7485_v17 = vmax.f32 %v8758_v33, 0.0  ;;  %v7482_v31 = vpop.f32.mrb[31].mxu0  ;;  %v7486_v55 = vmax.f32 %v8759_v52, 0.0 }
 0x718   :  { %v7487_v11 = vmax.f32 %v8760_v9, 0.0  ;;  %v7488_v34 = vpack.c.bf16 %v7484_v28, %v7484_v28 }
 0x719   :  { %v7489_v58 = vpack.c.bf16 %v7485_v17, %v7485_v17  ;;  %v7490_v0 = vpack.c.bf16 %v7486_v55, %v7486_v55 }
 0x71a   :  { %v7491_v25 = vpack.c.bf16 %v7487_v11, %v7487_v11 }
 0x71b   :  { %7787 = vmatprep.mubr.bf16.mxu1 %v7489_v58 }
 0x71c   :  { %7788 = vmatmul.mubr.bf16.vlgmr.msra.gmra.mrb[20].mxu1 %v7488_v34 }
 0x71d   :  { %8728 = vmatpush3.bf16.msra.mxu1 %v10241_v16  ;;  %7827 = vmatprep.mubr.bf16.mxu1 %v7491_v25 }
 0x71e   :  { %8729 = vmatprep.subr.bf16.mxu1 %v10242_v61 }
 0x721   :  { %8730 = vmatpush3.bf16.msra.mxu1 %v10243_v53 }
 0x722   :  { %8731 = vmatprep.subr.bf16.mxu1 %v10244_v59 }
 0x725   :  { %8732 = vmatpush3.bf16.msra.mxu1 %v10245_v22 }
 0x726   :  { %8733 = vmatprep.subr.bf16.mxu1 %v10246_v35 }
 0x729   :  { %8734 = vmatpush3.bf16.msra.mxu1 %v10247_v10 }
 0x72a   :  { %8735 = vmatprep.subr.bf16.mxu1 %v10248_v12 }
 0x72d   :  { %8736 = vmatpush3.bf16.msra.mxu1 %v10249_v42 }
 0x72e   :  { %8737 = vmatprep.subr.bf16.mxu1 %v10250_v24 }
 0x731   :  { %8738 = vmatpush3.bf16.msra.mxu1 %v10251_v3 }
 0x732   :  { %8739 = vmatprep.subr.bf16.mxu1 %v10252_v36 }
 0x735   :  { %8740 = vmatpush3.bf16.msra.mxu1 %v10253_v8 }
 0x736   :  { %8741 = vmatprep.subr.bf16.mxu1 %v10254_v56 }
 0x739   :  { %8742 = vmatpush3.bf16.msra.mxu1 %v10255_v30 }
 0x73c   :  { %7828 = vmatmul.mubr.bf16.vlgmr.msra.gmra.mrb[24].mxu1 %v7490_v0 }
 0x7ef   :  { %v8721_v5 = vpop.f32.mrb[20].mxu1 }
 0x7f0   :  { %v8722_v63 = vpop.f32.mrb[21].mxu1 }
 0x7f1   :  { %v8723_v44 = vadd.f32 %v8722_v63, %v8721_v5  ;;  %v8724_v45 = vpop.f32.mrb[22].mxu1 }
 0x7f2   :  { %v8725_v62 = vpop.f32.mrb[23].mxu1 }
 0x7f3   :  { %v7790_v6 = vadd.f32 %v8723_v44, %v8672_v27 }
 0x80f   :  { %v8743_v41 = vpop.f32.mrb[24].mxu1 }
 0x810   :  { %v8744_v54 = vpop.f32.mrb[25].mxu1 }
 0x811   :  { %v8745_v18 = vadd.f32 %v8744_v54, %v8743_v41  ;;  %v8746_v26 = vpop.f32.mrb[26].mxu1 }
 0x812   :  { %v8747_v38 = vpop.f32.mrb[27].mxu1 }
 0x813   :  { %v7830_v23 = vadd.f32 %v8745_v18, %v7790_v6 }
 0x815   :  { %7835 = vst [vmem:[#allocation2] sm:$0x3] %v7830_v23 }
 0x816   :  { %10270 = shalt.err (!%p10267_p4)
}
 0x817   :  { %s10271_s15 = scalar_lea.hbm %s14202_s9, 32 }
 0x818   :  { %p10272_p5 = scmp.ne.s32.totalorder %s14202_s9, %s10271_s15  ;;  %p10275_p6 = scmp.lt.u32.totalorder %s10271_s15, %s14202_s9 }
 0x81a   :  { %p10277_p7 = pnand %p10275_p6, %p10272_p5 }
 0x81c   :  { %10280 = shalt.err (!%p10277_p7)
}
 0x81d   :  { %7845 = dma.vmem_to_hbm [thread:$0]  %s7843_s19, 32, %s14202_s9, [#allocation3]  }
 0x81e   :  { %10281 = dma.done.wait [#allocation3], 32  }
 0x81f   :  { %10282 = vsyncadd [#allocation3], 4294967264 }
 0x820   :  { %7849 = vsyncpa [#allocation3], 1 }

</bundles_post_ra>
